<compile_context>
chip_gen: v6e
topology: v6e:2x2x1
jax: 0.10.0
libtpu: 0.0.40
codegen_flags: <defaults>
</compile_context>

<pallas_src>
import functools

import jax
import jax.numpy as jnp
import numpy as np
from jax.experimental import pallas as pl
from jax.experimental.pallas import tpu as pltpu


# ----------------------------------------------------------------------------
# In-kernel helpers (pure jnp on values -- no strided ref indexing)
# ----------------------------------------------------------------------------
def _pad_hw(x, value):
    """(H, W, C) -> (H+2, W+2, C): 1-pixel halo pad, built via concatenation."""
    H, W, C = x.shape
    row = jnp.full((1, W, C), value, x.dtype)
    x = jnp.concatenate([row, x, row], axis=0)          # (H+2, W, C)
    col = jnp.full((H + 2, 1, C), value, x.dtype)
    return jnp.concatenate([col, x, col], axis=1)       # (H+2, W+2, C)


def _maxpool_3x3_s2_p1(x):
    """MaxPool2d(kernel=3, stride=2, padding=1) on (H, W, C) with H, W even.

    Stride-2 selection is done with unstrided slices + concatenation (both
    well-supported by Mosaic), not strided indexing.
    """
    H, W, C = x.shape
    Ho, Wo = H // 2, W // 2
    xp = _pad_hw(x, -jnp.inf)                                        # (H+2, W+2, C)
    # max over the 3 kw taps (slices along W), then keep even columns.
    cm = jnp.maximum(jnp.maximum(xp[:, 0:W, :], xp[:, 1:W + 1, :]),
                     xp[:, 2:W + 2, :])                               # (H+2, W, C)
    cm = jnp.concatenate([cm[:, 2 * j:2 * j + 1, :] for j in range(Wo)],
                         axis=1)                                      # (H+2, Wo, C)
    # max over the 3 kh taps (slices along H), then keep even rows.
    rm = jnp.maximum(jnp.maximum(cm[0:H, :, :], cm[1:H + 1, :, :]),
                     cm[2:H + 2, :, :])                               # (H, Wo, C)
    return jnp.concatenate([rm[2 * i:2 * i + 1, :, :] for i in range(Ho)],
                           axis=0)                                    # (Ho, Wo, C)


# ----------------------------------------------------------------------------
# Fused kernel: one batch element per grid step, everything stays in VMEM.
# ----------------------------------------------------------------------------
def tcnn_fused_kernel(x_ref, w0_ref, b0_ref, w1_ref, b1_ref, w2_ref, b2_ref,
                      o_ref):
    H, W = x_ref.shape[1], x_ref.shape[2]
    Cin = x_ref.shape[3]                  # input channels (zero-padded to 8)
    C0 = w0_ref.shape[1]                  # 64
    C1 = w1_ref.shape[1]                  # 128
    # C2 = w2_ref.shape[1]                # 128 (lane-padded Cout)

    # ---- conv0 (3x3, pad 1, stride 1) + ReLU ---------------------------------
    # Cin is tiny, so accumulate the 9 taps directly (K = Cin each); FLOPs are
    # negligible and this avoids unaligned 3-wide lane packing.
    x = x_ref[0].astype(jnp.float32)                       # (H, W, Cin)
    xp = _pad_hw(x, 0.0)                                   # (H+2, W+2, Cin)
    w0 = w0_ref[...].astype(jnp.float32)                   # (9*Cin, C0)
    acc0 = jnp.zeros((H * W, C0), jnp.float32)
    for kh in range(3):
        for kw in range(3):
            t = kh * 3 + kw
            win = xp[kh:kh + H, kw:kw + W, :].reshape(H * W, Cin)
            acc0 = acc0 + jnp.dot(win, w0[t * Cin:(t + 1) * Cin, :],
                                  preferred_element_type=jnp.float32)
    a0 = jnp.maximum(acc0 + b0_ref[...].astype(jnp.float32), 0.0)    # (H*W, C0)

    # ---- pool0 (3x3, stride 2, pad 1) -- on the in-register conv output ------
    p0 = _maxpool_3x3_s2_p1(a0.reshape(H, W, C0))          # (H/2, W/2, C0)

    # ---- conv1 (3x3, pad 1) + ReLU: single im2col matmul, K = 9*C0 -----------
    H1, W1 = H // 2, W // 2
    p0p = _pad_hw(p0, 0.0)                                 # (H1+2, W1+2, C0)
    cols = []
    for kh in range(3):
        for kw in range(3):
            cols.append(p0p[kh:kh + H1, kw:kw + W1, :].reshape(H1 * W1, C0))
    im1 = jnp.concatenate(cols, axis=1)                    # (H1*W1, 9*C0)
    a1 = jnp.dot(im1, w1_ref[...].astype(jnp.float32),
                 preferred_element_type=jnp.float32)
    a1 = jnp.maximum(a1 + b1_ref[...].astype(jnp.float32), 0.0)      # (H1*W1, C1)

    # ---- pool1 ---------------------------------------------------------------
    p1 = _maxpool_3x3_s2_p1(a1.reshape(H1, W1, C1))        # (H/4, W/4, C1)

    # ---- conv2 (3x3, pad 1) + ReLU + global average pool (fused) -------------
    H2, W2 = H1 // 2, W1 // 2
    p1p = _pad_hw(p1, 0.0)                                 # (H2+2, W2+2, C1)
    rows = []
    for i in range(H2):
        taps = []
        for kh in range(3):
            for kw in range(3):
                taps.append(p1p[i + kh, kw:kw + W2, :])    # (W2, C1)
        rows.append(jnp.concatenate(taps, axis=1))         # (W2, 9*C1)
    im2 = jnp.concatenate(rows, axis=0)                    # (H2*W2, 9*C1)
    a2 = jnp.dot(im2, w2_ref[...].astype(jnp.float32),
                 preferred_element_type=jnp.float32)
    a2 = jnp.maximum(a2 + b2_ref[...].astype(jnp.float32), 0.0)      # (H2*W2, C2)

    pooled = jnp.sum(a2, axis=0, keepdims=True) * (1.0 / (H2 * W2))  # (1, C2)
    # Fill the whole (1, 8, C2) output block (lane-dense store); the wrapper
    # keeps only row 0 and the first `output_size` lanes.
    o_ref[...] = jnp.broadcast_to(pooled[None], o_ref.shape).astype(o_ref.dtype)


# ----------------------------------------------------------------------------
# Wrapper
# ----------------------------------------------------------------------------
@functools.partial(jax.jit, static_argnames=("output_size",))
def tcnn_forward(x_nchw, params, output_size=8):
    # NCHW (PyTorch) -> NHWC once, on the tiny input; pad Cin to 8.
    x = jnp.transpose(x_nchw, (0, 2, 3, 1))
    N, H, W, cin = x.shape
    cin_pad = params["w0"].shape[0] // 9
    if cin_pad > cin:
        x = jnp.pad(x, ((0, 0), (0, 0), (0, 0), (0, cin_pad - cin)))

    c2 = params["w2"].shape[1]            # lane-padded Cout (128)
    out = pl.pallas_call(
        tcnn_fused_kernel,
        out_shape=jax.ShapeDtypeStruct((N, 8, c2), jnp.float32),
        grid=(N,),
        in_specs=[
            pl.BlockSpec((1, H, W, cin_pad), lambda n: (n, 0, 0, 0)),
            pl.BlockSpec(params["w0"].shape, lambda n: (0, 0)),
            pl.BlockSpec(params["b0"].shape, lambda n: (0, 0)),
            pl.BlockSpec(params["w1"].shape, lambda n: (0, 0)),
            pl.BlockSpec(params["b1"].shape, lambda n: (0, 0)),
            pl.BlockSpec(params["w2"].shape, lambda n: (0, 0)),
            pl.BlockSpec(params["b2"].shape, lambda n: (0, 0)),
        ],
        out_specs=pl.BlockSpec((1, 8, c2), lambda n: (n, 0, 0)),
        compiler_params=pltpu.CompilerParams(
            dimension_semantics=("parallel",)),
    )(x, params["w0"], params["b0"], params["w1"], params["b1"],
      params["w2"], params["b2"])
    # == AdaptiveAvgPool2d((1,1)) + view(-1, output_size)
    return out[:, 0, :output_size]


def prepare_params(w0, b0, w1, b1, w2, b2, *, cin_pad=8, cout_pad=128):
    """PyTorch conv weights (Cout, Cin, KH, KW) -> im2col layout (KH*KW*Cin, Cout)."""

    def to_im2col(w, cin_to=None):
        cout, cin, kh, kw = w.shape
        wt = jnp.transpose(w, (2, 3, 1, 0))               # (KH, KW, Cin, Cout)
        if cin_to is not None and cin_to > cin:
            wt = jnp.pad(wt, ((0, 0), (0, 0), (0, cin_to - cin), (0, 0)))
            cin = cin_to
        return wt.reshape(kh * kw * cin, cout)

    w0r = to_im2col(w0, cin_to=cin_pad)                   # (9*8, 64)
    w1r = to_im2col(w1)                                   # (576, 128)
    w2r = to_im2col(w2)                                   # (1152, output_size)
    k2, cout2 = w2r.shape
    w2p = jnp.zeros((k2, cout_pad), w2r.dtype).at[:, :cout2].set(w2r)
    b2p = jnp.zeros((cout_pad,), b2.dtype).at[:cout2].set(b2)
    return {
        "w0": w0r, "b0": b0.reshape(1, -1),
        "w1": w1r, "b1": b1.reshape(1, -1),
        "w2": w2p, "b2": b2p.reshape(1, -1),
    }


# ----------------------------------------------------------------------------
# Pure-JAX reference (for correctness check)
# ----------------------------------------------------------------------------
def ref_forward(x_nchw, torch_weights):
    x = jnp.transpose(x_nchw, (0, 2, 3, 1))

    def conv(x, w, b):                        # w: (Cout, Cin, 3, 3)
        wk = jnp.transpose(w, (2, 3, 1, 0))   # HWIO
        y = jax.lax.conv_general_dilated(
            x, wk, (1, 1), ((1, 1), (1, 1)),
            dimension_numbers=("NHWC", "HWIO", "NHWC"),
            precision=jax.lax.Precision.HIGHEST)
        return jax.nn.relu(y + b)

    def maxpool(x):
        return jax.lax.reduce_window(
            x, -jnp.inf, jax.lax.max,
            (1, 3, 3, 1), (1, 2, 2, 1),
            ((0, 0), (1, 1), (1, 1), (0, 0)))

    (w0, b0), (w1, b1), (w2, b2) = torch_weights
    y = maxpool(conv(x, w0, b0))
    y = maxpool(conv(y, w1, b1))
    y = conv(y, w2, b2)
    return jnp.mean(y, axis=(1, 2))


# ----------------------------------------------------------------------------
if __name__ == "__main__":
    output_size = 8
    key = jax.random.PRNGKey(0)
    k_param, k_x = jax.random.split(key)
    ks = jax.random.split(k_param, 6)
    w0 = jax.random.normal(ks[0], (64, 3, 3, 3), jnp.float32) * 0.1
    b0 = jax.random.normal(ks[1], (64,), jnp.float32) * 0.1
    w1 = jax.random.normal(ks[2], (128, 64, 3, 3), jnp.float32) * 0.05
    b1 = jax.random.normal(ks[3], (128,), jnp.float32) * 0.1
    w2 = jax.random.normal(ks[4], (output_size, 128, 3, 3), jnp.float32) * 0.05
    b2 = jax.random.normal(ks[5], (output_size,), jnp.float32) * 0.1

    params = prepare_params(w0, b0, w1, b1, w2, b2)

    # NCHW input, as the PyTorch module expects.
    x = jax.random.normal(k_x, (2, 3, 16, 16), jnp.float32)

    out = jax.block_until_ready(tcnn_forward(x, params, output_size=output_size))
    assert out.shape == (2, output_size), out.shape

    ref = jax.block_until_ready(ref_forward(x, ((w0, b0), (w1, b1), (w2, b2))))
    np.testing.assert_allclose(np.asarray(out), np.asarray(ref),
                               rtol=2e-2, atol=2e-3)

    print("KERNEL_OK")
</pallas_src>

<mosaic_0001>
module attributes {stable_mosaic.version = 11 : i64} {
  func.func @tcnn_fused_kernel(%arg0: i32, %arg1: memref<1x16x16x8xf32, #tpu.memory_space<vmem>>, %arg2: memref<72x64xf32, #tpu.memory_space<vmem>>, %arg3: memref<1x64xf32, #tpu.memory_space<vmem>>, %arg4: memref<576x128xf32, #tpu.memory_space<vmem>>, %arg5: memref<1x128xf32, #tpu.memory_space<vmem>>, %arg6: memref<1152x128xf32, #tpu.memory_space<vmem>>, %arg7: memref<1x128xf32, #tpu.memory_space<vmem>>, %arg8: memref<1x8x128xf32, #tpu.memory_space<vmem>>) attributes {dimension_semantics = [#tpu.dimension_semantics<parallel>], iteration_bounds = array<i64: 2>, scalar_prefetch = 0 : i64, scratch_operands = 0 : i64, tpu.core_type = #tpu.core_type<tc>, window_params = [{transform_indices = @transform_0, window_bounds = array<i64: 1, 16, 16, 8>}, {pipeline_mode = #tpu.pipeline_mode<synchronous>, transform_indices = @transform_1, window_bounds = array<i64: 72, 64>}, {pipeline_mode = #tpu.pipeline_mode<synchronous>, transform_indices = @transform_2, window_bounds = array<i64: 1, 64>}, {pipeline_mode = #tpu.pipeline_mode<synchronous>, transform_indices = @transform_3, window_bounds = array<i64: 576, 128>}, {pipeline_mode = #tpu.pipeline_mode<synchronous>, transform_indices = @transform_4, window_bounds = array<i64: 1, 128>}, {pipeline_mode = #tpu.pipeline_mode<synchronous>, transform_indices = @transform_5, window_bounds = array<i64: 1152, 128>}, {pipeline_mode = #tpu.pipeline_mode<synchronous>, transform_indices = @transform_6, window_bounds = array<i64: 1, 128>}, {transform_indices = @transform_7, window_bounds = array<i64: 1, 8, 128>}]} {
    %c0 = arith.constant 0 : index
    %c0_0 = arith.constant 0 : index
    %c0_1 = arith.constant 0 : index
    %c0_2 = arith.constant 0 : index
    %0 = vector.load %arg1[%c0, %c0_0, %c0_1, %c0_2] : memref<1x16x16x8xf32, #tpu.memory_space<vmem>>, vector<1x16x16x8xf32>
    %1 = vector.shape_cast %0 : vector<1x16x16x8xf32> to vector<16x16x8xf32>
    %cst = arith.constant 0.000000e+00 : f32
    %2 = vector.broadcast %cst : f32 to vector<1x16x8xf32>
    %3 = tpu.concatenate %2, %1, %2 in 0 : vector<1x16x8xf32>, vector<16x16x8xf32>, vector<1x16x8xf32> -> vector<18x16x8xf32>
    %cst_3 = arith.constant 0.000000e+00 : f32
    %4 = vector.broadcast %cst_3 : f32 to vector<18x1x8xf32>
    %5 = tpu.concatenate %4, %3, %4 in 1 : vector<18x1x8xf32>, vector<18x16x8xf32>, vector<18x1x8xf32> -> vector<18x18x8xf32>
    %c0_4 = arith.constant 0 : index
    %c0_5 = arith.constant 0 : index
    %6 = vector.load %arg2[%c0_4, %c0_5] : memref<72x64xf32, #tpu.memory_space<vmem>>, vector<72x64xf32>
    %cst_6 = arith.constant 0.000000e+00 : f32
    %7 = vector.broadcast %cst_6 : f32 to vector<256x64xf32>
    %8 = vector.extract_strided_slice %5 {offsets = [0, 0, 0], sizes = [16, 16, 8], strides = [1, 1, 1]} : vector<18x18x8xf32> to vector<16x16x8xf32>
    %9 = vector.shape_cast %8 : vector<16x16x8xf32> to vector<256x8xf32>
    %10 = vector.extract_strided_slice %6 {offsets = [0, 0], sizes = [8, 64], strides = [1, 1]} : vector<72x64xf32> to vector<8x64xf32>
    %cst_7 = arith.constant dense<0.000000e+00> : vector<256x64xf32>
    %11 = tpu.matmul %9, %10, %cst_7 {dimension_numbers = #tpu.dot_dimension_numbers<[1], [0], [0], [1], [0, 0, 1, 1], [], []>} : vector<256x8xf32>, vector<8x64xf32>, vector<256x64xf32> -> vector<256x64xf32>
    %12 = arith.addf %7, %11 : vector<256x64xf32>
    %13 = vector.extract_strided_slice %5 {offsets = [0, 1, 0], sizes = [16, 16, 8], strides = [1, 1, 1]} : vector<18x18x8xf32> to vector<16x16x8xf32>
    %14 = vector.shape_cast %13 : vector<16x16x8xf32> to vector<256x8xf32>
    %15 = vector.extract_strided_slice %6 {offsets = [8, 0], sizes = [8, 64], strides = [1, 1]} : vector<72x64xf32> to vector<8x64xf32>
    %cst_8 = arith.constant dense<0.000000e+00> : vector<256x64xf32>
    %16 = tpu.matmul %14, %15, %cst_8 {dimension_numbers = #tpu.dot_dimension_numbers<[1], [0], [0], [1], [0, 0, 1, 1], [], []>} : vector<256x8xf32>, vector<8x64xf32>, vector<256x64xf32> -> vector<256x64xf32>
    %17 = arith.addf %12, %16 : vector<256x64xf32>
    %18 = vector.extract_strided_slice %5 {offsets = [0, 2, 0], sizes = [16, 16, 8], strides = [1, 1, 1]} : vector<18x18x8xf32> to vector<16x16x8xf32>
    %19 = vector.shape_cast %18 : vector<16x16x8xf32> to vector<256x8xf32>
    %20 = vector.extract_strided_slice %6 {offsets = [16, 0], sizes = [8, 64], strides = [1, 1]} : vector<72x64xf32> to vector<8x64xf32>
    %cst_9 = arith.constant dense<0.000000e+00> : vector<256x64xf32>
    %21 = tpu.matmul %19, %20, %cst_9 {dimension_numbers = #tpu.dot_dimension_numbers<[1], [0], [0], [1], [0, 0, 1, 1], [], []>} : vector<256x8xf32>, vector<8x64xf32>, vector<256x64xf32> -> vector<256x64xf32>
    %22 = arith.addf %17, %21 : vector<256x64xf32>
    %23 = vector.extract_strided_slice %5 {offsets = [1, 0, 0], sizes = [16, 16, 8], strides = [1, 1, 1]} : vector<18x18x8xf32> to vector<16x16x8xf32>
    %24 = vector.shape_cast %23 : vector<16x16x8xf32> to vector<256x8xf32>
    %25 = vector.extract_strided_slice %6 {offsets = [24, 0], sizes = [8, 64], strides = [1, 1]} : vector<72x64xf32> to vector<8x64xf32>
    %cst_10 = arith.constant dense<0.000000e+00> : vector<256x64xf32>
    %26 = tpu.matmul %24, %25, %cst_10 {dimension_numbers = #tpu.dot_dimension_numbers<[1], [0], [0], [1], [0, 0, 1, 1], [], []>} : vector<256x8xf32>, vector<8x64xf32>, vector<256x64xf32> -> vector<256x64xf32>
    %27 = arith.addf %22, %26 : vector<256x64xf32>
    %28 = vector.extract_strided_slice %5 {offsets = [1, 1, 0], sizes = [16, 16, 8], strides = [1, 1, 1]} : vector<18x18x8xf32> to vector<16x16x8xf32>
    %29 = vector.shape_cast %28 : vector<16x16x8xf32> to vector<256x8xf32>
    %30 = vector.extract_strided_slice %6 {offsets = [32, 0], sizes = [8, 64], strides = [1, 1]} : vector<72x64xf32> to vector<8x64xf32>
    %cst_11 = arith.constant dense<0.000000e+00> : vector<256x64xf32>
    %31 = tpu.matmul %29, %30, %cst_11 {dimension_numbers = #tpu.dot_dimension_numbers<[1], [0], [0], [1], [0, 0, 1, 1], [], []>} : vector<256x8xf32>, vector<8x64xf32>, vector<256x64xf32> -> vector<256x64xf32>
    %32 = arith.addf %27, %31 : vector<256x64xf32>
    %33 = vector.extract_strided_slice %5 {offsets = [1, 2, 0], sizes = [16, 16, 8], strides = [1, 1, 1]} : vector<18x18x8xf32> to vector<16x16x8xf32>
    %34 = vector.shape_cast %33 : vector<16x16x8xf32> to vector<256x8xf32>
    %35 = vector.extract_strided_slice %6 {offsets = [40, 0], sizes = [8, 64], strides = [1, 1]} : vector<72x64xf32> to vector<8x64xf32>
    %cst_12 = arith.constant dense<0.000000e+00> : vector<256x64xf32>
    %36 = tpu.matmul %34, %35, %cst_12 {dimension_numbers = #tpu.dot_dimension_numbers<[1], [0], [0], [1], [0, 0, 1, 1], [], []>} : vector<256x8xf32>, vector<8x64xf32>, vector<256x64xf32> -> vector<256x64xf32>
    %37 = arith.addf %32, %36 : vector<256x64xf32>
    %38 = vector.extract_strided_slice %5 {offsets = [2, 0, 0], sizes = [16, 16, 8], strides = [1, 1, 1]} : vector<18x18x8xf32> to vector<16x16x8xf32>
    %39 = vector.shape_cast %38 : vector<16x16x8xf32> to vector<256x8xf32>
    %40 = vector.extract_strided_slice %6 {offsets = [48, 0], sizes = [8, 64], strides = [1, 1]} : vector<72x64xf32> to vector<8x64xf32>
    %cst_13 = arith.constant dense<0.000000e+00> : vector<256x64xf32>
    %41 = tpu.matmul %39, %40, %cst_13 {dimension_numbers = #tpu.dot_dimension_numbers<[1], [0], [0], [1], [0, 0, 1, 1], [], []>} : vector<256x8xf32>, vector<8x64xf32>, vector<256x64xf32> -> vector<256x64xf32>
    %42 = arith.addf %37, %41 : vector<256x64xf32>
    %43 = vector.extract_strided_slice %5 {offsets = [2, 1, 0], sizes = [16, 16, 8], strides = [1, 1, 1]} : vector<18x18x8xf32> to vector<16x16x8xf32>
    %44 = vector.shape_cast %43 : vector<16x16x8xf32> to vector<256x8xf32>
    %45 = vector.extract_strided_slice %6 {offsets = [56, 0], sizes = [8, 64], strides = [1, 1]} : vector<72x64xf32> to vector<8x64xf32>
    %cst_14 = arith.constant dense<0.000000e+00> : vector<256x64xf32>
    %46 = tpu.matmul %44, %45, %cst_14 {dimension_numbers = #tpu.dot_dimension_numbers<[1], [0], [0], [1], [0, 0, 1, 1], [], []>} : vector<256x8xf32>, vector<8x64xf32>, vector<256x64xf32> -> vector<256x64xf32>
    %47 = arith.addf %42, %46 : vector<256x64xf32>
    %48 = vector.extract_strided_slice %5 {offsets = [2, 2, 0], sizes = [16, 16, 8], strides = [1, 1, 1]} : vector<18x18x8xf32> to vector<16x16x8xf32>
    %49 = vector.shape_cast %48 : vector<16x16x8xf32> to vector<256x8xf32>
    %50 = vector.extract_strided_slice %6 {offsets = [64, 0], sizes = [8, 64], strides = [1, 1]} : vector<72x64xf32> to vector<8x64xf32>
    %cst_15 = arith.constant dense<0.000000e+00> : vector<256x64xf32>
    %51 = tpu.matmul %49, %50, %cst_15 {dimension_numbers = #tpu.dot_dimension_numbers<[1], [0], [0], [1], [0, 0, 1, 1], [], []>} : vector<256x8xf32>, vector<8x64xf32>, vector<256x64xf32> -> vector<256x64xf32>
    %52 = arith.addf %47, %51 : vector<256x64xf32>
    %c0_16 = arith.constant 0 : index
    %c0_17 = arith.constant 0 : index
    %53 = vector.load %arg3[%c0_16, %c0_17] : memref<1x64xf32, #tpu.memory_space<vmem>>, vector<1x64xf32>
    %54 = vector.broadcast %53 : vector<1x64xf32> to vector<256x64xf32>
    %55 = arith.addf %52, %54 : vector<256x64xf32>
    %cst_18 = arith.constant 0.000000e+00 : f32
    %56 = vector.broadcast %cst_18 : f32 to vector<256x64xf32>
    %57 = arith.maximumf %55, %56 : vector<256x64xf32>
    %58 = vector.shape_cast %57 : vector<256x64xf32> to vector<16x16x64xf32>
    %cst_19 = arith.constant 0xFF800000 : f32
    %59 = vector.broadcast %cst_19 : f32 to vector<1x16x64xf32>
    %60 = tpu.concatenate %59, %58, %59 in 0 : vector<1x16x64xf32>, vector<16x16x64xf32>, vector<1x16x64xf32> -> vector<18x16x64xf32>
    %cst_20 = arith.constant 0xFF800000 : f32
    %61 = vector.broadcast %cst_20 : f32 to vector<18x1x64xf32>
    %62 = tpu.concatenate %61, %60, %61 in 1 : vector<18x1x64xf32>, vector<18x16x64xf32>, vector<18x1x64xf32> -> vector<18x18x64xf32>
    %63 = vector.extract_strided_slice %62 {offsets = [0, 0, 0], sizes = [18, 16, 64], strides = [1, 1, 1]} : vector<18x18x64xf32> to vector<18x16x64xf32>
    %64 = vector.extract_strided_slice %62 {offsets = [0, 1, 0], sizes = [18, 16, 64], strides = [1, 1, 1]} : vector<18x18x64xf32> to vector<18x16x64xf32>
    %65 = arith.maximumf %63, %64 : vector<18x16x64xf32>
    %66 = vector.extract_strided_slice %62 {offsets = [0, 2, 0], sizes = [18, 16, 64], strides = [1, 1, 1]} : vector<18x18x64xf32> to vector<18x16x64xf32>
    %67 = arith.maximumf %65, %66 : vector<18x16x64xf32>
    %68 = vector.extract_strided_slice %67 {offsets = [0, 0, 0], sizes = [18, 1, 64], strides = [1, 1, 1]} : vector<18x16x64xf32> to vector<18x1x64xf32>
    %69 = vector.extract_strided_slice %67 {offsets = [0, 2, 0], sizes = [18, 1, 64], strides = [1, 1, 1]} : vector<18x16x64xf32> to vector<18x1x64xf32>
    %70 = vector.extract_strided_slice %67 {offsets = [0, 4, 0], sizes = [18, 1, 64], strides = [1, 1, 1]} : vector<18x16x64xf32> to vector<18x1x64xf32>
    %71 = vector.extract_strided_slice %67 {offsets = [0, 6, 0], sizes = [18, 1, 64], strides = [1, 1, 1]} : vector<18x16x64xf32> to vector<18x1x64xf32>
    %72 = vector.extract_strided_slice %67 {offsets = [0, 8, 0], sizes = [18, 1, 64], strides = [1, 1, 1]} : vector<18x16x64xf32> to vector<18x1x64xf32>
    %73 = vector.extract_strided_slice %67 {offsets = [0, 10, 0], sizes = [18, 1, 64], strides = [1, 1, 1]} : vector<18x16x64xf32> to vector<18x1x64xf32>
    %74 = vector.extract_strided_slice %67 {offsets = [0, 12, 0], sizes = [18, 1, 64], strides = [1, 1, 1]} : vector<18x16x64xf32> to vector<18x1x64xf32>
    %75 = vector.extract_strided_slice %67 {offsets = [0, 14, 0], sizes = [18, 1, 64], strides = [1, 1, 1]} : vector<18x16x64xf32> to vector<18x1x64xf32>
    %76 = tpu.concatenate %68, %69, %70, %71, %72, %73, %74, %75 in 1 : vector<18x1x64xf32>, vector<18x1x64xf32>, vector<18x1x64xf32>, vector<18x1x64xf32>, vector<18x1x64xf32>, vector<18x1x64xf32>, vector<18x1x64xf32>, vector<18x1x64xf32> -> vector<18x8x64xf32>
    %77 = vector.extract_strided_slice %76 {offsets = [0, 0, 0], sizes = [16, 8, 64], strides = [1, 1, 1]} : vector<18x8x64xf32> to vector<16x8x64xf32>
    %78 = vector.extract_strided_slice %76 {offsets = [1, 0, 0], sizes = [16, 8, 64], strides = [1, 1, 1]} : vector<18x8x64xf32> to vector<16x8x64xf32>
    %79 = arith.maximumf %77, %78 : vector<16x8x64xf32>
    %80 = vector.extract_strided_slice %76 {offsets = [2, 0, 0], sizes = [16, 8, 64], strides = [1, 1, 1]} : vector<18x8x64xf32> to vector<16x8x64xf32>
    %81 = arith.maximumf %79, %80 : vector<16x8x64xf32>
    %82 = vector.extract_strided_slice %81 {offsets = [0, 0, 0], sizes = [1, 8, 64], strides = [1, 1, 1]} : vector<16x8x64xf32> to vector<1x8x64xf32>
    %83 = vector.extract_strided_slice %81 {offsets = [2, 0, 0], sizes = [1, 8, 64], strides = [1, 1, 1]} : vector<16x8x64xf32> to vector<1x8x64xf32>
    %84 = vector.extract_strided_slice %81 {offsets = [4, 0, 0], sizes = [1, 8, 64], strides = [1, 1, 1]} : vector<16x8x64xf32> to vector<1x8x64xf32>
    %85 = vector.extract_strided_slice %81 {offsets = [6, 0, 0], sizes = [1, 8, 64], strides = [1, 1, 1]} : vector<16x8x64xf32> to vector<1x8x64xf32>
    %86 = vector.extract_strided_slice %81 {offsets = [8, 0, 0], sizes = [1, 8, 64], strides = [1, 1, 1]} : vector<16x8x64xf32> to vector<1x8x64xf32>
    %87 = vector.extract_strided_slice %81 {offsets = [10, 0, 0], sizes = [1, 8, 64], strides = [1, 1, 1]} : vector<16x8x64xf32> to vector<1x8x64xf32>
    %88 = vector.extract_strided_slice %81 {offsets = [12, 0, 0], sizes = [1, 8, 64], strides = [1, 1, 1]} : vector<16x8x64xf32> to vector<1x8x64xf32>
    %89 = vector.extract_strided_slice %81 {offsets = [14, 0, 0], sizes = [1, 8, 64], strides = [1, 1, 1]} : vector<16x8x64xf32> to vector<1x8x64xf32>
    %90 = tpu.concatenate %82, %83, %84, %85, %86, %87, %88, %89 in 0 : vector<1x8x64xf32>, vector<1x8x64xf32>, vector<1x8x64xf32>, vector<1x8x64xf32>, vector<1x8x64xf32>, vector<1x8x64xf32>, vector<1x8x64xf32>, vector<1x8x64xf32> -> vector<8x8x64xf32>
    %cst_21 = arith.constant 0.000000e+00 : f32
    %91 = vector.broadcast %cst_21 : f32 to vector<1x8x64xf32>
    %92 = tpu.concatenate %91, %90, %91 in 0 : vector<1x8x64xf32>, vector<8x8x64xf32>, vector<1x8x64xf32> -> vector<10x8x64xf32>
    %cst_22 = arith.constant 0.000000e+00 : f32
    %93 = vector.broadcast %cst_22 : f32 to vector<10x1x64xf32>
    %94 = tpu.concatenate %93, %92, %93 in 1 : vector<10x1x64xf32>, vector<10x8x64xf32>, vector<10x1x64xf32> -> vector<10x10x64xf32>
    %95 = vector.extract_strided_slice %94 {offsets = [0, 0, 0], sizes = [8, 8, 64], strides = [1, 1, 1]} : vector<10x10x64xf32> to vector<8x8x64xf32>
    %96 = vector.shape_cast %95 : vector<8x8x64xf32> to vector<64x64xf32>
    %97 = vector.extract_strided_slice %94 {offsets = [0, 1, 0], sizes = [8, 8, 64], strides = [1, 1, 1]} : vector<10x10x64xf32> to vector<8x8x64xf32>
    %98 = vector.shape_cast %97 : vector<8x8x64xf32> to vector<64x64xf32>
    %99 = vector.extract_strided_slice %94 {offsets = [0, 2, 0], sizes = [8, 8, 64], strides = [1, 1, 1]} : vector<10x10x64xf32> to vector<8x8x64xf32>
    %100 = vector.shape_cast %99 : vector<8x8x64xf32> to vector<64x64xf32>
    %101 = vector.extract_strided_slice %94 {offsets = [1, 0, 0], sizes = [8, 8, 64], strides = [1, 1, 1]} : vector<10x10x64xf32> to vector<8x8x64xf32>
    %102 = vector.shape_cast %101 : vector<8x8x64xf32> to vector<64x64xf32>
    %103 = vector.extract_strided_slice %94 {offsets = [1, 1, 0], sizes = [8, 8, 64], strides = [1, 1, 1]} : vector<10x10x64xf32> to vector<8x8x64xf32>
    %104 = vector.shape_cast %103 : vector<8x8x64xf32> to vector<64x64xf32>
    %105 = vector.extract_strided_slice %94 {offsets = [1, 2, 0], sizes = [8, 8, 64], strides = [1, 1, 1]} : vector<10x10x64xf32> to vector<8x8x64xf32>
    %106 = vector.shape_cast %105 : vector<8x8x64xf32> to vector<64x64xf32>
    %107 = vector.extract_strided_slice %94 {offsets = [2, 0, 0], sizes = [8, 8, 64], strides = [1, 1, 1]} : vector<10x10x64xf32> to vector<8x8x64xf32>
    %108 = vector.shape_cast %107 : vector<8x8x64xf32> to vector<64x64xf32>
    %109 = vector.extract_strided_slice %94 {offsets = [2, 1, 0], sizes = [8, 8, 64], strides = [1, 1, 1]} : vector<10x10x64xf32> to vector<8x8x64xf32>
    %110 = vector.shape_cast %109 : vector<8x8x64xf32> to vector<64x64xf32>
    %111 = vector.extract_strided_slice %94 {offsets = [2, 2, 0], sizes = [8, 8, 64], strides = [1, 1, 1]} : vector<10x10x64xf32> to vector<8x8x64xf32>
    %112 = vector.shape_cast %111 : vector<8x8x64xf32> to vector<64x64xf32>
    %113 = tpu.concatenate %96, %98, %100, %102, %104, %106, %108, %110, %112 in 1 : vector<64x64xf32>, vector<64x64xf32>, vector<64x64xf32>, vector<64x64xf32>, vector<64x64xf32>, vector<64x64xf32>, vector<64x64xf32>, vector<64x64xf32>, vector<64x64xf32> -> vector<64x576xf32>
    %c0_23 = arith.constant 0 : index
    %c0_24 = arith.constant 0 : index
    %114 = vector.load %arg4[%c0_23, %c0_24] : memref<576x128xf32, #tpu.memory_space<vmem>>, vector<576x128xf32>
    %cst_25 = arith.constant dense<0.000000e+00> : vector<64x128xf32>
    %115 = tpu.matmul %113, %114, %cst_25 {dimension_numbers = #tpu.dot_dimension_numbers<[1], [0], [0], [1], [0, 0, 1, 1], [], []>} : vector<64x576xf32>, vector<576x128xf32>, vector<64x128xf32> -> vector<64x128xf32>
    %c0_26 = arith.constant 0 : index
    %c0_27 = arith.constant 0 : index
    %116 = vector.load %arg5[%c0_26, %c0_27] : memref<1x128xf32, #tpu.memory_space<vmem>>, vector<1x128xf32>
    %117 = vector.broadcast %116 : vector<1x128xf32> to vector<64x128xf32>
    %118 = arith.addf %115, %117 : vector<64x128xf32>
    %cst_28 = arith.constant 0.000000e+00 : f32
    %119 = vector.broadcast %cst_28 : f32 to vector<64x128xf32>
    %120 = arith.maximumf %118, %119 : vector<64x128xf32>
    %121 = vector.shape_cast %120 : vector<64x128xf32> to vector<8x8x128xf32>
    %cst_29 = arith.constant 0xFF800000 : f32
    %122 = vector.broadcast %cst_29 : f32 to vector<1x8x128xf32>
    %123 = tpu.concatenate %122, %121, %122 in 0 : vector<1x8x128xf32>, vector<8x8x128xf32>, vector<1x8x128xf32> -> vector<10x8x128xf32>
    %cst_30 = arith.constant 0xFF800000 : f32
    %124 = vector.broadcast %cst_30 : f32 to vector<10x1x128xf32>
    %125 = tpu.concatenate %124, %123, %124 in 1 : vector<10x1x128xf32>, vector<10x8x128xf32>, vector<10x1x128xf32> -> vector<10x10x128xf32>
    %126 = vector.extract_strided_slice %125 {offsets = [0, 0, 0], sizes = [10, 8, 128], strides = [1, 1, 1]} : vector<10x10x128xf32> to vector<10x8x128xf32>
    %127 = vector.extract_strided_slice %125 {offsets = [0, 1, 0], sizes = [10, 8, 128], strides = [1, 1, 1]} : vector<10x10x128xf32> to vector<10x8x128xf32>
    %128 = arith.maximumf %126, %127 : vector<10x8x128xf32>
    %129 = vector.extract_strided_slice %125 {offsets = [0, 2, 0], sizes = [10, 8, 128], strides = [1, 1, 1]} : vector<10x10x128xf32> to vector<10x8x128xf32>
    %130 = arith.maximumf %128, %129 : vector<10x8x128xf32>
    %131 = vector.extract_strided_slice %130 {offsets = [0, 0, 0], sizes = [10, 1, 128], strides = [1, 1, 1]} : vector<10x8x128xf32> to vector<10x1x128xf32>
    %132 = vector.extract_strided_slice %130 {offsets = [0, 2, 0], sizes = [10, 1, 128], strides = [1, 1, 1]} : vector<10x8x128xf32> to vector<10x1x128xf32>
    %133 = vector.extract_strided_slice %130 {offsets = [0, 4, 0], sizes = [10, 1, 128], strides = [1, 1, 1]} : vector<10x8x128xf32> to vector<10x1x128xf32>
    %134 = vector.extract_strided_slice %130 {offsets = [0, 6, 0], sizes = [10, 1, 128], strides = [1, 1, 1]} : vector<10x8x128xf32> to vector<10x1x128xf32>
    %135 = tpu.concatenate %131, %132, %133, %134 in 1 : vector<10x1x128xf32>, vector<10x1x128xf32>, vector<10x1x128xf32>, vector<10x1x128xf32> -> vector<10x4x128xf32>
    %136 = vector.extract_strided_slice %135 {offsets = [0, 0, 0], sizes = [8, 4, 128], strides = [1, 1, 1]} : vector<10x4x128xf32> to vector<8x4x128xf32>
    %137 = vector.extract_strided_slice %135 {offsets = [1, 0, 0], sizes = [8, 4, 128], strides = [1, 1, 1]} : vector<10x4x128xf32> to vector<8x4x128xf32>
    %138 = arith.maximumf %136, %137 : vector<8x4x128xf32>
    %139 = vector.extract_strided_slice %135 {offsets = [2, 0, 0], sizes = [8, 4, 128], strides = [1, 1, 1]} : vector<10x4x128xf32> to vector<8x4x128xf32>
    %140 = arith.maximumf %138, %139 : vector<8x4x128xf32>
    %141 = vector.extract_strided_slice %140 {offsets = [0, 0, 0], sizes = [1, 4, 128], strides = [1, 1, 1]} : vector<8x4x128xf32> to vector<1x4x128xf32>
    %142 = vector.extract_strided_slice %140 {offsets = [2, 0, 0], sizes = [1, 4, 128], strides = [1, 1, 1]} : vector<8x4x128xf32> to vector<1x4x128xf32>
    %143 = vector.extract_strided_slice %140 {offsets = [4, 0, 0], sizes = [1, 4, 128], strides = [1, 1, 1]} : vector<8x4x128xf32> to vector<1x4x128xf32>
    %144 = vector.extract_strided_slice %140 {offsets = [6, 0, 0], sizes = [1, 4, 128], strides = [1, 1, 1]} : vector<8x4x128xf32> to vector<1x4x128xf32>
    %145 = tpu.concatenate %141, %142, %143, %144 in 0 : vector<1x4x128xf32>, vector<1x4x128xf32>, vector<1x4x128xf32>, vector<1x4x128xf32> -> vector<4x4x128xf32>
    %cst_31 = arith.constant 0.000000e+00 : f32
    %146 = vector.broadcast %cst_31 : f32 to vector<1x4x128xf32>
    %147 = tpu.concatenate %146, %145, %146 in 0 : vector<1x4x128xf32>, vector<4x4x128xf32>, vector<1x4x128xf32> -> vector<6x4x128xf32>
    %cst_32 = arith.constant 0.000000e+00 : f32
    %148 = vector.broadcast %cst_32 : f32 to vector<6x1x128xf32>
    %149 = tpu.concatenate %148, %147, %148 in 1 : vector<6x1x128xf32>, vector<6x4x128xf32>, vector<6x1x128xf32> -> vector<6x6x128xf32>
    %150 = vector.extract_strided_slice %149 {offsets = [0, 0, 0], sizes = [1, 4, 128], strides = [1, 1, 1]} : vector<6x6x128xf32> to vector<1x4x128xf32>
    %151 = vector.shape_cast %150 : vector<1x4x128xf32> to vector<4x128xf32>
    %152 = vector.extract_strided_slice %149 {offsets = [0, 1, 0], sizes = [1, 4, 128], strides = [1, 1, 1]} : vector<6x6x128xf32> to vector<1x4x128xf32>
    %153 = vector.shape_cast %152 : vector<1x4x128xf32> to vector<4x128xf32>
    %154 = vector.extract_strided_slice %149 {offsets = [0, 2, 0], sizes = [1, 4, 128], strides = [1, 1, 1]} : vector<6x6x128xf32> to vector<1x4x128xf32>
    %155 = vector.shape_cast %154 : vector<1x4x128xf32> to vector<4x128xf32>
    %156 = vector.extract_strided_slice %149 {offsets = [1, 0, 0], sizes = [1, 4, 128], strides = [1, 1, 1]} : vector<6x6x128xf32> to vector<1x4x128xf32>
    %157 = vector.shape_cast %156 : vector<1x4x128xf32> to vector<4x128xf32>
    %158 = vector.extract_strided_slice %149 {offsets = [1, 1, 0], sizes = [1, 4, 128], strides = [1, 1, 1]} : vector<6x6x128xf32> to vector<1x4x128xf32>
    %159 = vector.shape_cast %158 : vector<1x4x128xf32> to vector<4x128xf32>
    %160 = vector.extract_strided_slice %149 {offsets = [1, 2, 0], sizes = [1, 4, 128], strides = [1, 1, 1]} : vector<6x6x128xf32> to vector<1x4x128xf32>
    %161 = vector.shape_cast %160 : vector<1x4x128xf32> to vector<4x128xf32>
    %162 = vector.extract_strided_slice %149 {offsets = [2, 0, 0], sizes = [1, 4, 128], strides = [1, 1, 1]} : vector<6x6x128xf32> to vector<1x4x128xf32>
    %163 = vector.shape_cast %162 : vector<1x4x128xf32> to vector<4x128xf32>
    %164 = vector.extract_strided_slice %149 {offsets = [2, 1, 0], sizes = [1, 4, 128], strides = [1, 1, 1]} : vector<6x6x128xf32> to vector<1x4x128xf32>
    %165 = vector.shape_cast %164 : vector<1x4x128xf32> to vector<4x128xf32>
    %166 = vector.extract_strided_slice %149 {offsets = [2, 2, 0], sizes = [1, 4, 128], strides = [1, 1, 1]} : vector<6x6x128xf32> to vector<1x4x128xf32>
    %167 = vector.shape_cast %166 : vector<1x4x128xf32> to vector<4x128xf32>
    %168 = tpu.concatenate %151, %153, %155, %157, %159, %161, %163, %165, %167 in 1 : vector<4x128xf32>, vector<4x128xf32>, vector<4x128xf32>, vector<4x128xf32>, vector<4x128xf32>, vector<4x128xf32>, vector<4x128xf32>, vector<4x128xf32>, vector<4x128xf32> -> vector<4x1152xf32>
    %169 = vector.extract_strided_slice %149 {offsets = [1, 0, 0], sizes = [1, 4, 128], strides = [1, 1, 1]} : vector<6x6x128xf32> to vector<1x4x128xf32>
    %170 = vector.shape_cast %169 : vector<1x4x128xf32> to vector<4x128xf32>
    %171 = vector.extract_strided_slice %149 {offsets = [1, 1, 0], sizes = [1, 4, 128], strides = [1, 1, 1]} : vector<6x6x128xf32> to vector<1x4x128xf32>
    %172 = vector.shape_cast %171 : vector<1x4x128xf32> to vector<4x128xf32>
    %173 = vector.extract_strided_slice %149 {offsets = [1, 2, 0], sizes = [1, 4, 128], strides = [1, 1, 1]} : vector<6x6x128xf32> to vector<1x4x128xf32>
    %174 = vector.shape_cast %173 : vector<1x4x128xf32> to vector<4x128xf32>
    %175 = vector.extract_strided_slice %149 {offsets = [2, 0, 0], sizes = [1, 4, 128], strides = [1, 1, 1]} : vector<6x6x128xf32> to vector<1x4x128xf32>
    %176 = vector.shape_cast %175 : vector<1x4x128xf32> to vector<4x128xf32>
    %177 = vector.extract_strided_slice %149 {offsets = [2, 1, 0], sizes = [1, 4, 128], strides = [1, 1, 1]} : vector<6x6x128xf32> to vector<1x4x128xf32>
    %178 = vector.shape_cast %177 : vector<1x4x128xf32> to vector<4x128xf32>
    %179 = vector.extract_strided_slice %149 {offsets = [2, 2, 0], sizes = [1, 4, 128], strides = [1, 1, 1]} : vector<6x6x128xf32> to vector<1x4x128xf32>
    %180 = vector.shape_cast %179 : vector<1x4x128xf32> to vector<4x128xf32>
    %181 = vector.extract_strided_slice %149 {offsets = [3, 0, 0], sizes = [1, 4, 128], strides = [1, 1, 1]} : vector<6x6x128xf32> to vector<1x4x128xf32>
    %182 = vector.shape_cast %181 : vector<1x4x128xf32> to vector<4x128xf32>
    %183 = vector.extract_strided_slice %149 {offsets = [3, 1, 0], sizes = [1, 4, 128], strides = [1, 1, 1]} : vector<6x6x128xf32> to vector<1x4x128xf32>
    %184 = vector.shape_cast %183 : vector<1x4x128xf32> to vector<4x128xf32>
    %185 = vector.extract_strided_slice %149 {offsets = [3, 2, 0], sizes = [1, 4, 128], strides = [1, 1, 1]} : vector<6x6x128xf32> to vector<1x4x128xf32>
    %186 = vector.shape_cast %185 : vector<1x4x128xf32> to vector<4x128xf32>
    %187 = tpu.concatenate %170, %172, %174, %176, %178, %180, %182, %184, %186 in 1 : vector<4x128xf32>, vector<4x128xf32>, vector<4x128xf32>, vector<4x128xf32>, vector<4x128xf32>, vector<4x128xf32>, vector<4x128xf32>, vector<4x128xf32>, vector<4x128xf32> -> vector<4x1152xf32>
    %188 = vector.extract_strided_slice %149 {offsets = [2, 0, 0], sizes = [1, 4, 128], strides = [1, 1, 1]} : vector<6x6x128xf32> to vector<1x4x128xf32>
    %189 = vector.shape_cast %188 : vector<1x4x128xf32> to vector<4x128xf32>
    %190 = vector.extract_strided_slice %149 {offsets = [2, 1, 0], sizes = [1, 4, 128], strides = [1, 1, 1]} : vector<6x6x128xf32> to vector<1x4x128xf32>
    %191 = vector.shape_cast %190 : vector<1x4x128xf32> to vector<4x128xf32>
    %192 = vector.extract_strided_slice %149 {offsets = [2, 2, 0], sizes = [1, 4, 128], strides = [1, 1, 1]} : vector<6x6x128xf32> to vector<1x4x128xf32>
    %193 = vector.shape_cast %192 : vector<1x4x128xf32> to vector<4x128xf32>
    %194 = vector.extract_strided_slice %149 {offsets = [3, 0, 0], sizes = [1, 4, 128], strides = [1, 1, 1]} : vector<6x6x128xf32> to vector<1x4x128xf32>
    %195 = vector.shape_cast %194 : vector<1x4x128xf32> to vector<4x128xf32>
    %196 = vector.extract_strided_slice %149 {offsets = [3, 1, 0], sizes = [1, 4, 128], strides = [1, 1, 1]} : vector<6x6x128xf32> to vector<1x4x128xf32>
    %197 = vector.shape_cast %196 : vector<1x4x128xf32> to vector<4x128xf32>
    %198 = vector.extract_strided_slice %149 {offsets = [3, 2, 0], sizes = [1, 4, 128], strides = [1, 1, 1]} : vector<6x6x128xf32> to vector<1x4x128xf32>
    %199 = vector.shape_cast %198 : vector<1x4x128xf32> to vector<4x128xf32>
    %200 = vector.extract_strided_slice %149 {offsets = [4, 0, 0], sizes = [1, 4, 128], strides = [1, 1, 1]} : vector<6x6x128xf32> to vector<1x4x128xf32>
    %201 = vector.shape_cast %200 : vector<1x4x128xf32> to vector<4x128xf32>
    %202 = vector.extract_strided_slice %149 {offsets = [4, 1, 0], sizes = [1, 4, 128], strides = [1, 1, 1]} : vector<6x6x128xf32> to vector<1x4x128xf32>
    %203 = vector.shape_cast %202 : vector<1x4x128xf32> to vector<4x128xf32>
    %204 = vector.extract_strided_slice %149 {offsets = [4, 2, 0], sizes = [1, 4, 128], strides = [1, 1, 1]} : vector<6x6x128xf32> to vector<1x4x128xf32>
    %205 = vector.shape_cast %204 : vector<1x4x128xf32> to vector<4x128xf32>
    %206 = tpu.concatenate %189, %191, %193, %195, %197, %199, %201, %203, %205 in 1 : vector<4x128xf32>, vector<4x128xf32>, vector<4x128xf32>, vector<4x128xf32>, vector<4x128xf32>, vector<4x128xf32>, vector<4x128xf32>, vector<4x128xf32>, vector<4x128xf32> -> vector<4x1152xf32>
    %207 = vector.extract_strided_slice %149 {offsets = [3, 0, 0], sizes = [1, 4, 128], strides = [1, 1, 1]} : vector<6x6x128xf32> to vector<1x4x128xf32>
    %208 = vector.shape_cast %207 : vector<1x4x128xf32> to vector<4x128xf32>
    %209 = vector.extract_strided_slice %149 {offsets = [3, 1, 0], sizes = [1, 4, 128], strides = [1, 1, 1]} : vector<6x6x128xf32> to vector<1x4x128xf32>
    %210 = vector.shape_cast %209 : vector<1x4x128xf32> to vector<4x128xf32>
    %211 = vector.extract_strided_slice %149 {offsets = [3, 2, 0], sizes = [1, 4, 128], strides = [1, 1, 1]} : vector<6x6x128xf32> to vector<1x4x128xf32>
    %212 = vector.shape_cast %211 : vector<1x4x128xf32> to vector<4x128xf32>
    %213 = vector.extract_strided_slice %149 {offsets = [4, 0, 0], sizes = [1, 4, 128], strides = [1, 1, 1]} : vector<6x6x128xf32> to vector<1x4x128xf32>
    %214 = vector.shape_cast %213 : vector<1x4x128xf32> to vector<4x128xf32>
    %215 = vector.extract_strided_slice %149 {offsets = [4, 1, 0], sizes = [1, 4, 128], strides = [1, 1, 1]} : vector<6x6x128xf32> to vector<1x4x128xf32>
    %216 = vector.shape_cast %215 : vector<1x4x128xf32> to vector<4x128xf32>
    %217 = vector.extract_strided_slice %149 {offsets = [4, 2, 0], sizes = [1, 4, 128], strides = [1, 1, 1]} : vector<6x6x128xf32> to vector<1x4x128xf32>
    %218 = vector.shape_cast %217 : vector<1x4x128xf32> to vector<4x128xf32>
    %219 = vector.extract_strided_slice %149 {offsets = [5, 0, 0], sizes = [1, 4, 128], strides = [1, 1, 1]} : vector<6x6x128xf32> to vector<1x4x128xf32>
    %220 = vector.shape_cast %219 : vector<1x4x128xf32> to vector<4x128xf32>
    %221 = vector.extract_strided_slice %149 {offsets = [5, 1, 0], sizes = [1, 4, 128], strides = [1, 1, 1]} : vector<6x6x128xf32> to vector<1x4x128xf32>
    %222 = vector.shape_cast %221 : vector<1x4x128xf32> to vector<4x128xf32>
    %223 = vector.extract_strided_slice %149 {offsets = [5, 2, 0], sizes = [1, 4, 128], strides = [1, 1, 1]} : vector<6x6x128xf32> to vector<1x4x128xf32>
    %224 = vector.shape_cast %223 : vector<1x4x128xf32> to vector<4x128xf32>
    %225 = tpu.concatenate %208, %210, %212, %214, %216, %218, %220, %222, %224 in 1 : vector<4x128xf32>, vector<4x128xf32>, vector<4x128xf32>, vector<4x128xf32>, vector<4x128xf32>, vector<4x128xf32>, vector<4x128xf32>, vector<4x128xf32>, vector<4x128xf32> -> vector<4x1152xf32>
    %226 = tpu.concatenate %168, %187, %206, %225 in 0 : vector<4x1152xf32>, vector<4x1152xf32>, vector<4x1152xf32>, vector<4x1152xf32> -> vector<16x1152xf32>
    %c0_33 = arith.constant 0 : index
    %c0_34 = arith.constant 0 : index
    %227 = vector.load %arg6[%c0_33, %c0_34] : memref<1152x128xf32, #tpu.memory_space<vmem>>, vector<1152x128xf32>
    %cst_35 = arith.constant dense<0.000000e+00> : vector<16x128xf32>
    %228 = tpu.matmul %226, %227, %cst_35 {dimension_numbers = #tpu.dot_dimension_numbers<[1], [0], [0], [1], [0, 0, 1, 1], [], []>} : vector<16x1152xf32>, vector<1152x128xf32>, vector<16x128xf32> -> vector<16x128xf32>
    %c0_36 = arith.constant 0 : index
    %c0_37 = arith.constant 0 : index
    %229 = vector.load %arg7[%c0_36, %c0_37] : memref<1x128xf32, #tpu.memory_space<vmem>>, vector<1x128xf32>
    %230 = vector.broadcast %229 : vector<1x128xf32> to vector<16x128xf32>
    %231 = arith.addf %228, %230 : vector<16x128xf32>
    %cst_38 = arith.constant 0.000000e+00 : f32
    %232 = vector.broadcast %cst_38 : f32 to vector<16x128xf32>
    %233 = arith.maximumf %231, %232 : vector<16x128xf32>
    %cst_39 = arith.constant dense<0.000000e+00> : vector<128xf32>
    %234 = vector.multi_reduction <add>, %233, %cst_39 [0] : vector<16x128xf32> to vector<128xf32>
    %235 = vector.shape_cast %234 : vector<128xf32> to vector<1x128xf32>
    %cst_40 = arith.constant 6.250000e-02 : f32
    %236 = vector.broadcast %cst_40 : f32 to vector<1x128xf32>
    %237 = arith.mulf %235, %236 : vector<1x128xf32>
    %238 = vector.shape_cast %237 : vector<1x128xf32> to vector<1x1x128xf32>
    %239 = vector.shape_cast %238 : vector<1x1x128xf32> to vector<1x1x128xf32>
    %240 = vector.broadcast %239 : vector<1x1x128xf32> to vector<1x8x128xf32>
    %c0_41 = arith.constant 0 : index
    %c0_42 = arith.constant 0 : index
    %c0_43 = arith.constant 0 : index
    %241 = vector.load %arg8[%c0_41, %c0_42, %c0_43] : memref<1x8x128xf32, #tpu.memory_space<vmem>>, vector<1x8x128xf32>
    tpu.vector_store %arg8[%c0_41, %c0_42, %c0_43], %240 {strides = array<i32>} : memref<1x8x128xf32, #tpu.memory_space<vmem>>, vector<1x8x128xf32>,
    return
  }
  func.func @transform_0(%arg0: i32) -> (i32, i32, i32, i32) {
    %c0_i32 = arith.constant 0 : i32
    %c0_i32_0 = arith.constant 0 : i32
    %c0_i32_1 = arith.constant 0 : i32
    %c0_i32_2 = arith.constant 0 : i32
    return %arg0, %c0_i32, %c0_i32_0, %c0_i32_1 : i32, i32, i32, i32
  }
  func.func @transform_1(%arg0: i32) -> (i32, i32) {
    %c0_i32 = arith.constant 0 : i32
    %c0_i32_0 = arith.constant 0 : i32
    %c0_i32_1 = arith.constant 0 : i32
    return %c0_i32, %c0_i32_0 : i32, i32
  }
  func.func @transform_2(%arg0: i32) -> (i32, i32) {
    %c0_i32 = arith.constant 0 : i32
    %c0_i32_0 = arith.constant 0 : i32
    %c0_i32_1 = arith.constant 0 : i32
    return %c0_i32, %c0_i32_0 : i32, i32
  }
  func.func @transform_3(%arg0: i32) -> (i32, i32) {
    %c0_i32 = arith.constant 0 : i32
    %c0_i32_0 = arith.constant 0 : i32
    %c0_i32_1 = arith.constant 0 : i32
    return %c0_i32, %c0_i32_0 : i32, i32
  }
  func.func @transform_4(%arg0: i32) -> (i32, i32) {
    %c0_i32 = arith.constant 0 : i32
    %c0_i32_0 = arith.constant 0 : i32
    %c0_i32_1 = arith.constant 0 : i32
    return %c0_i32, %c0_i32_0 : i32, i32
  }
  func.func @transform_5(%arg0: i32) -> (i32, i32) {
    %c0_i32 = arith.constant 0 : i32
    %c0_i32_0 = arith.constant 0 : i32
    %c0_i32_1 = arith.constant 0 : i32
    return %c0_i32, %c0_i32_0 : i32, i32
  }
  func.func @transform_6(%arg0: i32) -> (i32, i32) {
    %c0_i32 = arith.constant 0 : i32
    %c0_i32_0 = arith.constant 0 : i32
    %c0_i32_1 = arith.constant 0 : i32
    return %c0_i32, %c0_i32_0 : i32, i32
  }
  func.func @transform_7(%arg0: i32) -> (i32, i32, i32) {
    %c0_i32 = arith.constant 0 : i32
    %c0_i32_0 = arith.constant 0 : i32
    %c0_i32_1 = arith.constant 0 : i32
    return %arg0, %c0_i32, %c0_i32_0 : i32, i32, i32
  }
}

</mosaic_0001>

<bundles_post_ra>
// kernel: tcnn_forward.1
= control target key start
LH: loop header
LB: loop body
LE: loop exit
PB: predicated region body
PF: predicated region fallthrough
CT: control target
= control target key end

     0   :  { %s7206_s24 = smov 0   ;;  %s10695_s0 = inlined_call_operand.vmem [shape: f32[2,16,16,8], index: 0, kind: input, shape index: {}]   ;;  %s10696_s1 = inlined_call_operand.vmem [shape: f32[72,64], index: 1, kind: input, shape index: {}]   ;;  %s10697_s2 = inlined_call_operand.vmem [shape: f32[1,64], index: 2, kind: input, shape index: {}]   ;;  %s10698_s3 = inlined_call_operand.vmem [shape: f32[576,128], index: 3, kind: input, shape index: {}]   ;;  %s10699_s4 = inlined_call_operand.vmem [shape: f32[1,128], index: 4, kind: input, shape index: {}]   ;;  %s10700_s5 = inlined_call_operand.vmem [shape: f32[1152,128], index: 5, kind: input, shape index: {}]   ;;  %s10701_s6 = inlined_call_operand.vmem [shape: f32[1,128], index: 6, kind: input, shape index: {}]   ;;  %s10702_s7 = inlined_call_operand.vmem [shape: f32[2,8,128], index: 7, kind: output, shape index: {}]  }
   0x1 LB: > { %s5680_s25 = sadd.s32 4294967295, %s7161_s24   ;;  %p5684_p0 = scmp.ge.s32.totalorder %s7161_s24, 1  ;;  %s7161_s24 = sphi %s7206_s24, %s17_s24  }
   0x2   : > { %p237_p1 = scmp.lt.s32.totalorder %s7161_s24, 3 }
   0x4   : > { %p238_p2 = pnand %p5684_p0, %p237_p1 }
   0x6   : > { %241 = sbr.rel (%p238_p2) target bundleno = 1319 (0x527), region = 48 }
   0xb   : > { %v461_v0 = vld [vmem:[%s10696_s1 + $0x8] sm:$0xff]  ;;  %v460_v1 = vld [vmem:[%s10696_s1] sm:$0xff]  ;;  %vm342_vm0 = vcmask 1040384   ;;  %v7163_v2 = vmov 0.0   ;;  %vm582_vm1 = vcmask 64512   ;;  %v462_v4 = vld [vmem:[%s10696_s1 + $0x10] sm:$0xff] }
   0xc   : > { %6585 = vmatprep.subr.mxu0 %v461_v0  ;;  %6635 = vmatprep.subr.mxu1 %v460_v1  ;;  %v7220_v3 = vrot.slane %v7163_v2, 7  ;;  %p268_p3 = scmp.lt.s32.totalorder %s5680_s25, 1  ;;  %v463_v5 = vld [vmem:[%s10696_s1 + $0x18] sm:$0xff]  ;;  %vm501_vm2 = vcmask 1046528   ;;  %v7264_v13 = vld [vmem:[%s10696_s1 + $0x20] sm:$0xff]  ;;  %v7362_v62 = vld [vmem:[%s10696_s1 + $0x28] sm:$0xff] }
   0xd   : > { %6586 = vmatpush3.msra.mxu0 %v461_v0  ;;  %6636 = vmatpush3.msra.mxu1 %v460_v1  ;;  %vm1161_vm3 = vcmask 1045504   ;;  %vm3996_vm4 = vcmask 1041408   ;;  %vm4014_vm5 = vcmask 1042432   ;;  %vm4032_vm6 = vcmask 1043456   ;;  %s7165_s26 = smov 64  }
   0xe   : > { %10802 = vst [vmem:[#allocation2_spill] sm:$0xff] %v7220_v3  ;;  %v7230_v6 = vsel %vm342_vm0, 0.0, %v7220_v3  ;;  %v503_v7 = vrot.slane %v7220_v3, 1  ;;  %v7235_v8 = vsel %vm342_vm0, %v7220_v3, 0.0  ;;  %6685 = vmatprep.subr.mxu0 %v462_v4  ;;  %s11013_s25 = smov (!%p268_p3, %s5680_s25), 1  ;;  %6735 = vmatprep.subr.mxu1 %v463_v5  ;;  %vm4050_vm7 = vcmask 1044480  }
   0xf   : > { %10803 = vst [vmem:[#allocation3_spill] sm:$0xff] %v7230_v6  ;;  %10804 = vst [vmem:[#allocation4_spill] sm:$0xff] %v7235_v8  ;;  %v10703_v9 = vrot.slane %v7230_v6, 1  ;;  %6637 = vmatprep.mubr.msk.f32.mxu1 %vm582_vm1, %v7230_v6  ;;  %v10704_v10 = vrot.slane %v7235_v8, 1  ;;  %s5989_s11 = sshll.u32 %s11013_s25, 8  ;;  %vm4315_vm8 = vcmask 523264  }
  0x10   : > { %6638 = vmatmul.mubr.msk.f32.vlgmr.msra.gmra.mxu1 %vm582_vm1, %v7220_v3  ;;  %s7259_s14 = scalar_lea.vmem %s10695_s0, %s5989_s11  ;;  %s5687_s28 = sshll.u32 %s11013_s25, 3 }
  0x11   : > { %v7249_v11 = vsel %vm501_vm2, %v10703_v9, %v503_v7  ;;  %v7254_v12 = vsel %vm501_vm2, %v503_v7, %v10704_v10  ;;  %6736 = vmatpush3.msra.mxu1 %v463_v5  ;;  %v277_v14 = vld [vmem:[%s7259_s14] sm:$0xff]  ;;  %v278_v15 = vld [vmem:[%s7259_s14 + $0x8] sm:$0xff]  ;;  %v279_v16 = vld [vmem:[%s7259_s14 + $0x10] sm:$0xff]  ;;  %s276_s8 = scalar_lea.vmem %s10702_s7, %s5687_s28 }
  0x12   : > { %10805 = vst [vmem:[#allocation5_spill] sm:$0xff] %v7249_v11  ;;  %10806 = vst [vmem:[#allocation6_spill] sm:$0xff] %v7254_v12  ;;  %6587 = vmatprep.mubr.msk.f32.mxu0 %vm582_vm1, %v7249_v11  ;;  %v345_v17 = vrot.slane %v277_v14, 7  ;;  %v346_v18 = vrot.slane %v278_v15, 7  ;;  %v280_v19 = vld [vmem:[%s7259_s14 + $0x18] sm:$0xff]  ;;  %v348_v20 = vrot.slane %v279_v16, 7  ;;  %6835 = vmatprep.subr.mxu1 %v7362_v62 }
  0x13   : > { %6588 = vmatmul.mubr.msk.f32.vlgmr.msra.gmra.mxu0 %vm582_vm1, %v7254_v12  ;;  %v281_v21 = vld [vmem:[%s7259_s14 + $0x20] sm:$0xff]  ;;  %v282_v22 = vld [vmem:[%s7259_s14 + $0x28] sm:$0xff]  ;;  %v349_v23 = vrot.slane %v280_v19, 7  ;;  %v283_v38 = vld [vmem:[%s7259_s14 + $0x30] sm:$0xff] }
  0x14   : > { %6686 = vmatpush3.msra.mxu0 %v462_v4  ;;  %v351_v24 = vrot.slane %v281_v21, 7  ;;  %v352_v25 = vrot.slane %v282_v22, 7  ;;  %v7277_v26 = vsel %vm342_vm0, %v345_v17, %v346_v18  ;;  %v7280_v27 = vsel %vm342_vm0, 0.0, %v345_v17  ;;  %v284_v39 = vld [vmem:[%s7259_s14 + $0x38] sm:$0xff]  ;;  %v285_v44 = vld [vmem:[%s7259_s14 + $0x40] sm:$0xff]  ;;  %v286_v45 = vld [vmem:[%s7259_s14 + $0x48] sm:$0xff] }
  0x15   : > { %v7283_v28 = vsel %vm342_vm0, %v346_v18, 0.0  ;;  %v7286_v29 = vsel %vm342_vm0, 0.0, %v348_v20  ;;  %6785 = vmatprep.subr.mxu0 %v7264_v13  ;;  %v507_v30 = vrot.slane %v7280_v27, 1  ;;  %v508_v31 = vrot.slane %v7277_v26, 1  ;;  %6640 = vmatprep.mubr.msk.f32.mxu1 %vm582_vm1, %v7280_v27  ;;  %v287_v52 = vld [vmem:[%s7259_s14 + $0x50] sm:$0xff]  ;;  %v288_v57 = vld [vmem:[%s7259_s14 + $0x58] sm:$0xff] }
  0x16   : > { %v510_v32 = vrot.slane %v7283_v28, 1  ;;  %v7295_v33 = vsel %vm342_vm0, %v348_v20, %v349_v23  ;;  %6641 = vmatmul.mubr.msk.f32.gmra.mxu1 %vm582_vm1, %v7277_v26  ;;  %v512_v34 = vrot.slane %v7286_v29, 1  ;;  %v7302_v36 = vsel %vm342_vm0, %v349_v23, 0.0  ;;  %v289_v7 = vld [vmem:[%s7259_s14 + $0x60] sm:$0xff]  ;;  %v290_v16 = vld [vmem:[%s7259_s14 + $0x68] sm:$0xff]  ;;  %v300_v10 = vld [vmem:[%s7259_s14 + $0xb8] sm:$0xff] }
  0x17   : > { %v513_v35 = vrot.slane %v7295_v33, 1  ;;  %v7305_v37 = vsel %vm342_vm0, %v351_v24, %v352_v25  ;;  %v7310_v40 = vsel %vm501_vm2, %v507_v30, %v508_v31  ;;  %6643 = vmatprep.mubr.msk.f32.mxu1 %vm582_vm1, %v7286_v29  ;;  %v515_v42 = vrot.slane %v7302_v36, 1  ;;  %v292_v30 = vld [vmem:[%s7259_s14 + $0x78] sm:$0xff] }
  0x18   : > { %v7313_v41 = vsel %vm501_vm2, %v508_v31, %v510_v32  ;;  %v7319_v43 = vsel %vm342_vm0, 0.0, %v351_v24  ;;  %6590 = vmatprep.mubr.msk.f32.mxu0 %vm582_vm1, %v7310_v40  ;;  %v518_v48 = vrot.slane %v7305_v37, 1  ;;  %v7331_v49 = vsel %vm342_vm0, %v352_v25, 0.0  ;;  %v291_v25 = vld [vmem:[%s7259_s14 + $0x70] sm:$0xff] }
  0x19   : > { %v7326_v46 = vsel %vm501_vm2, %v512_v34, %v513_v35  ;;  %v517_v47 = vrot.slane %v7319_v43, 1  ;;  %6591 = vmatmul.mubr.msk.f32.gmra.mxu0 %vm582_vm1, %v7313_v41  ;;  %v354_v50 = vrot.slane %v283_v38, 7  ;;  %v355_v51 = vrot.slane %v284_v39, 7 }
  0x1a   : > { %6593 = vmatprep.mubr.msk.f32.mxu0 %vm582_vm1, %v7326_v46  ;;  %v7339_v53 = vsel %vm501_vm2, %v513_v35, %v515_v42  ;;  %6644 = vmatmul.mubr.msk.f32.gmra.mxu1 %vm582_vm1, %v7295_v33  ;;  %v520_v54 = vrot.slane %v7331_v49, 1  ;;  %v357_v55 = vrot.slane %v285_v44, 7  ;;  %v358_v56 = vrot.slane %v286_v45, 7 }
  0x1b   : > { %10807 = vst [vmem:[#allocation7_spill] sm:$0xff] %v7339_v53  ;;  %v7346_v58 = vsel %vm501_vm2, %v517_v47, %v518_v48  ;;  %6646 = vmatprep.mubr.msk.f32.mxu1 %vm582_vm1, %v7319_v43  ;;  %v7351_v59 = vsel %vm342_vm0, %v354_v50, %v355_v51  ;;  %v7354_v60 = vsel %vm342_vm0, 0.0, %v354_v50  ;;  %v7357_v61 = vsel %vm342_vm0, %v355_v51, 0.0  ;;  %v294_v50 = vld [vmem:[%s7259_s14 + $0x88] sm:$0xff] }
  0x1c   : > { %10808 = vst [vmem:[#allocation8_spill] sm:$0xff] %v7346_v58  ;;  %v522_v63 = vrot.slane %v7354_v60, 1  ;;  %v523_v0 = vrot.slane %v7351_v59, 1  ;;  %v7367_v1 = vsel %vm342_vm0, %v357_v55, %v358_v56  ;;  %v360_v2 = vrot.slane %v287_v52, 7 }
  0x1d   : > { %6594 = vmatmul.mubr.msk.f32.gmra.mxu0 %vm582_vm1, %v7339_v53  ;;  %v7373_v4 = vsel %vm342_vm0, 0.0, %v357_v55  ;;  %v361_v5 = vrot.slane %v288_v57, 7  ;;  %v7379_v14 = vsel %vm501_vm2, %v518_v48, %v520_v54  ;;  %v525_v15 = vrot.slane %v7357_v61, 1  ;;  %v293_v48 = vld [vmem:[%s7259_s14 + $0x80] sm:$0xff] }
  0x1e   : > { %6596 = vmatprep.mubr.msk.f32.mxu0 %vm582_vm1, %v7346_v58  ;;  %10809 = vst [vmem:[#allocation9_spill] sm:$0xff] %v7379_v14  ;;  %6647 = vmatmul.mubr.msk.f32.gmra.mxu1 %vm582_vm1, %v7305_v37  ;;  %v7386_v17 = vsel %vm501_vm2, %v522_v63, %v523_v0  ;;  %v527_v18 = vrot.slane %v7373_v4, 1  ;;  %v528_v19 = vrot.slane %v7367_v1, 1  ;;  %v7393_v20 = vsel %vm342_vm0, %v358_v56, 0.0 }
  0x1f   : > { %10810 = vst [vmem:[#allocation10_spill] sm:$0xff] %v7386_v17  ;;  %6649 = vmatprep.mubr.msk.f32.mxu1 %vm582_vm1, %v7354_v60  ;;  %v7396_v21 = vsel %vm342_vm0, %v360_v2, %v361_v5  ;;  %v7399_v22 = vsel %vm342_vm0, 0.0, %v360_v2  ;;  %v363_v23 = vrot.slane %v289_v7, 7  ;;  %v364_v24 = vrot.slane %v290_v16, 7  ;;  %v295_v7 = vld [vmem:[%s7259_s14 + $0x90] sm:$0xff] }
  0x20   : > { %10811 = vst [vmem:[#allocation11_spill] sm:$0xff] %v7399_v22  ;;  %v7408_v31 = vsel %vm501_vm2, %v523_v0, %v525_v15  ;;  %v530_v32 = vrot.slane %v7393_v20, 1  ;;  %v7414_v34 = vsel %vm501_vm2, %v527_v18, %v528_v19  ;;  %v532_v35 = vrot.slane %v7399_v22, 1  ;;  %v296_v15 = vld [vmem:[%s7259_s14 + $0x98] sm:$0xff] }
  0x21   : > { %6597 = vmatmul.mubr.msk.f32.gmra.mxu0 %vm582_vm1, %v7379_v14  ;;  %10812 = vst [vmem:[#allocation12_spill] sm:$0xff] %v7408_v31  ;;  %10813 = vst [vmem:[#allocation13_spill] sm:$0xff] %v7414_v34  ;;  %v533_v38 = vrot.slane %v7396_v21, 1  ;;  %v7421_v39 = vsel %vm342_vm0, %v361_v5, 0.0  ;;  %v7424_v42 = vsel %vm342_vm0, %v363_v23, %v364_v24  ;;  %v7427_v44 = vsel %vm342_vm0, 0.0, %v363_v23 }
  0x22   : > { %6599 = vmatprep.mubr.msk.f32.mxu0 %vm582_vm1, %v7386_v17  ;;  %6650 = vmatmul.mubr.msk.f32.gmra.mxu1 %vm582_vm1, %v7351_v59  ;;  %10814 = vst [vmem:[#allocation14_spill] sm:$0xff] %v7427_v44  ;;  %v366_v45 = vrot.slane %v291_v25, 7  ;;  %v367_v47 = vrot.slane %v292_v30, 7  ;;  %v7436_v51 = vsel %vm501_vm2, %v528_v19, %v530_v32  ;;  %v535_v52 = vrot.slane %v7421_v39, 1  ;;  %v306_v17 = vld [vmem:[%s7259_s14 + $0xe8] sm:$0xff] }
  0x23   : > { %6652 = vmatprep.mubr.msk.f32.mxu1 %vm582_vm1, %v7373_v4  ;;  %10815 = vst [vmem:[#allocation15_spill] sm:$0xff] %v7436_v51  ;;  %v7442_v54 = vsel %vm501_vm2, %v532_v35, %v533_v38  ;;  %v537_v55 = vrot.slane %v7427_v44, 1  ;;  %v538_v56 = vrot.slane %v7424_v42, 1  ;;  %v7449_v57 = vsel %vm342_vm0, %v364_v24, 0.0 }
  0x24   : > { %10816 = vst [vmem:[#allocation16_spill] sm:$0xff] %v7442_v54  ;;  %v7452_v63 = vsel %vm342_vm0, %v366_v45, %v367_v47  ;;  %v7455_v0 = vsel %vm342_vm0, 0.0, %v366_v45  ;;  %v369_v2 = vrot.slane %v293_v48, 7  ;;  %v370_v5 = vrot.slane %v294_v50, 7  ;;  %v297_v45 = vld [vmem:[%s7259_s14 + $0xa0] sm:$0xff]  ;;  %v298_v48 = vld [vmem:[%s7259_s14 + $0xa8] sm:$0xff] }
  0x25   : > { %6600 = vmatmul.mubr.msk.f32.gmra.mxu0 %vm582_vm1, %v7408_v31  ;;  %10817 = vst [vmem:[#allocation17_spill] sm:$0xff] %v7455_v0  ;;  %v7464_v16 = vsel %vm501_vm2, %v533_v38, %v535_v52  ;;  %v540_v18 = vrot.slane %v7449_v57, 1  ;;  %v7470_v19 = vsel %vm501_vm2, %v537_v55, %v538_v56  ;;  %v542_v23 = vrot.slane %v7455_v0, 1 }
  0x26   : > { %6602 = vmatprep.mubr.msk.f32.mxu0 %vm582_vm1, %v7414_v34  ;;  %6653 = vmatmul.mubr.msk.f32.gmra.mxu1 %vm582_vm1, %v7367_v1  ;;  %10818 = vst [vmem:[#allocation18_spill] sm:$0xff] %v7464_v16  ;;  %10819 = vst [vmem:[#allocation19_spill] sm:$0xff] %v7470_v19  ;;  %v543_v24 = vrot.slane %v7452_v63, 1  ;;  %v7477_v25 = vsel %vm342_vm0, %v367_v47, 0.0  ;;  %v7480_v30 = vsel %vm342_vm0, %v369_v2, %v370_v5  ;;  %v7483_v32 = vsel %vm342_vm0, 0.0, %v369_v2 }
  0x27   : > { %6655 = vmatprep.mubr.msk.f32.mxu1 %vm582_vm1, %v7399_v22  ;;  %10820 = vst [vmem:[#allocation20_spill] sm:$0xff] %v7483_v32  ;;  %v372_v35 = vrot.slane %v295_v7, 7  ;;  %v373_v38 = vrot.slane %v296_v15, 7  ;;  %v7492_v47 = vsel %vm501_vm2, %v538_v56, %v540_v18  ;;  %v545_v50 = vrot.slane %v7477_v25, 1 }
  0x28   : > { %10821 = vst [vmem:[#allocation21_spill] sm:$0xff] %v7492_v47  ;;  %v7498_v52 = vsel %vm501_vm2, %v542_v23, %v543_v24  ;;  %v547_v55 = vrot.slane %v7483_v32, 1  ;;  %v548_v2 = vrot.slane %v7480_v30, 1  ;;  %v7505_v7 = vsel %vm342_vm0, %v370_v5, 0.0  ;;  %v299_v23 = vld [vmem:[%s7259_s14 + $0xb0] sm:$0xff] }
  0x29   : > { %6603 = vmatmul.mubr.msk.f32.gmra.mxu0 %vm582_vm1, %v7436_v51  ;;  %10822 = vst [vmem:[#allocation22_spill] sm:$0xff] %v7498_v52  ;;  %v7508_v56 = vsel %vm342_vm0, %v372_v35, %v373_v38  ;;  %v7511_v15 = vsel %vm342_vm0, 0.0, %v372_v35  ;;  %v375_v18 = vrot.slane %v297_v45, 7  ;;  %v376_v9 = vrot.slane %v298_v48, 7  ;;  %v304_v51 = vld [vmem:[%s7259_s14 + $0xd8] sm:$0xff] }
  0x2a   : > { %6605 = vmatprep.mubr.msk.f32.mxu0 %vm582_vm1, %v7442_v54  ;;  %6656 = vmatmul.mubr.msk.f32.gmra.mxu1 %vm582_vm1, %v7396_v21  ;;  %10823 = vst [vmem:[#allocation23_spill] sm:$0xff] %v7511_v15  ;;  %v7520_v5 = vsel %vm501_vm2, %v543_v24, %v545_v50  ;;  %v550_v35 = vrot.slane %v7505_v7, 1  ;;  %v7526_v45 = vsel %vm501_vm2, %v547_v55, %v548_v2  ;;  %v552_v48 = vrot.slane %v7511_v15, 1  ;;  %v301_v55 = vld [vmem:[%s7259_s14 + $0xc0] sm:$0xff] }
  0x2b   : > { %6658 = vmatprep.mubr.msk.f32.mxu1 %vm582_vm1, %v7427_v44  ;;  %10824 = vst [vmem:[#allocation24_spill] sm:$0xff] %v7520_v5  ;;  %10825 = vst [vmem:[#allocation25_spill] sm:$0xff] %v7526_v45  ;;  %v553_v12 = vrot.slane %v7508_v56, 1  ;;  %v7533_v11 = vsel %vm342_vm0, %v373_v38, 0.0  ;;  %v7536_v24 = vsel %vm342_vm0, %v375_v18, %v376_v9  ;;  %v7539_v50 = vsel %vm342_vm0, 0.0, %v375_v18 }
  0x2c   : > { %10826 = vst [vmem:[#allocation26_spill] sm:$0xff] %v7536_v24  ;;  %10827 = vst [vmem:[#allocation27_spill] sm:$0xff] %v7539_v50  ;;  %v7548_v38 = vsel %vm501_vm2, %v548_v2, %v550_v35  ;;  %v555_v18 = vrot.slane %v7533_v11, 1  ;;  %v385_v31 = vrot.slane %v304_v51, 7  ;;  %v388_v58 = vrot.slane %v306_v17, 7 }
  0x2d   : > { %6606 = vmatmul.mubr.msk.f32.gmra.mxu0 %vm582_vm1, %v7464_v16  ;;  %10828 = vst [vmem:[#allocation28_spill] sm:$0xff] %v7548_v38  ;;  %v381_v16 = vrot.slane %v301_v55, 7 }
  0x2e   : > { %6608 = vmatprep.mubr.msk.f32.mxu0 %vm582_vm1, %v7470_v19  ;;  %6659 = vmatmul.mubr.msk.f32.gmra.mxu1 %vm582_vm1, %v7424_v42  ;;  %v302_v19 = vld [vmem:[%s7259_s14 + $0xc8] sm:$0xff] }
  0x2f   : > { %6661 = vmatprep.mubr.msk.f32.mxu1 %vm582_vm1, %v7455_v0  ;;  %v382_v54 = vrot.slane %v302_v19, 7 }
  0x31   : > { %6609 = vmatmul.mubr.msk.f32.gmra.mxu0 %vm582_vm1, %v7492_v47  ;;  %v379_v47 = vrot.slane %v300_v10, 7  ;;  %v7554_v10 = vsel %vm501_vm2, %v552_v48, %v553_v12  ;;  %v303_v48 = vld [vmem:[%s7259_s14 + $0xd0] sm:$0xff] }
  0x32   : > { %6611 = vmatprep.mubr.msk.f32.mxu0 %vm582_vm1, %v7498_v52  ;;  %6662 = vmatmul.mubr.msk.f32.gmra.mxu1 %vm582_vm1, %v7452_v63  ;;  %v378_v52 = vrot.slane %v299_v23, 7  ;;  %10829 = vst [vmem:[#allocation29_spill] sm:$0xff] %v7554_v10  ;;  %v557_v23 = vrot.slane %v7539_v50, 1  ;;  %v384_v34 = vrot.slane %v303_v48, 7 }
  0x33   : > { %6664 = vmatprep.mubr.msk.f32.mxu1 %vm582_vm1, %v7483_v32 }
  0x34   : > { %v7564_v2 = vsel %vm342_vm0, %v378_v52, %v379_v47  ;;  %v7567_v35 = vsel %vm342_vm0, 0.0, %v378_v52 }
  0x35   : > { %6612 = vmatmul.mubr.msk.f32.gmra.mxu0 %vm582_vm1, %v7520_v5  ;;  %v558_v5 = vrot.slane %v7536_v24, 1  ;;  %10830 = vst [vmem:[#allocation30_spill] sm:$0xff] %v7564_v2  ;;  %10831 = vst [vmem:[#allocation31_spill] sm:$0xff] %v7567_v35  ;;  %v562_v55 = vrot.slane %v7567_v35, 1 }
  0x36   : > { %6614 = vmatprep.mubr.msk.f32.mxu0 %vm582_vm1, %v7526_v45  ;;  %6665 = vmatmul.mubr.msk.f32.gmra.mxu1 %vm582_vm1, %v7480_v30  ;;  %v7561_v45 = vsel %vm342_vm0, %v376_v9, 0.0  ;;  %v7576_v9 = vsel %vm501_vm2, %v553_v12, %v555_v18  ;;  %v7592_v12 = vsel %vm342_vm0, %v381_v16, %v382_v54  ;;  %v7595_v18 = vsel %vm342_vm0, 0.0, %v381_v16 }
  0x37   : > { %6667 = vmatprep.mubr.msk.f32.mxu1 %vm582_vm1, %v7511_v15  ;;  %10832 = vst [vmem:[#allocation32_spill] sm:$0xff] %v7576_v9  ;;  %v560_v52 = vrot.slane %v7561_v45, 1  ;;  %v7582_v19 = vsel %vm501_vm2, %v557_v23, %v558_v5  ;;  %10834 = vst [vmem:[#allocation34_spill] sm:$0xff] %v7592_v12  ;;  %v305_v23 = vld [vmem:[%s7259_s14 + $0xe0] sm:$0xff]  ;;  %v567_v51 = vrot.slane %v7595_v18, 1  ;;  %v568_v48 = vrot.slane %v7592_v12, 1 }
  0x38   : > { %10833 = vst [vmem:[#allocation33_spill] sm:$0xff] %v7582_v19  ;;  %10835 = vst [vmem:[#allocation35_spill] sm:$0xff] %v7595_v18 }
  0x39   : > { %6615 = vmatmul.mubr.msk.f32.gmra.mxu0 %vm582_vm1, %v7548_v38  ;;  %v563_v38 = vrot.slane %v7564_v2, 1  ;;  %v7604_v14 = vsel %vm501_vm2, %v558_v5, %v560_v52  ;;  %v7620_v5 = vsel %vm342_vm0, %v384_v34, %v385_v31  ;;  %v7623_v52 = vsel %vm342_vm0, 0.0, %v384_v34 }
  0x3a   : > { %6617 = vmatprep.mubr.msk.f32.mxu0 %vm582_vm1, %v7554_v10  ;;  %6668 = vmatmul.mubr.msk.f32.gmra.mxu1 %vm582_vm1, %v7508_v56  ;;  %v7589_v10 = vsel %vm342_vm0, %v379_v47, 0.0  ;;  %10837 = vst [vmem:[#allocation37_spill] sm:$0xff] %v7623_v52  ;;  %v7636_v53 = vsel %vm501_vm2, %v567_v51, %v568_v48  ;;  %v572_v17 = vrot.slane %v7623_v52, 1  ;;  %v573_v34 = vrot.slane %v7620_v5, 1 }
  0x3b   : > { %6670 = vmatprep.mubr.msk.f32.mxu1 %vm582_vm1, %v7539_v50  ;;  %v565_v47 = vrot.slane %v7589_v10, 1  ;;  %v7610_v16 = vsel %vm501_vm2, %v562_v55, %v563_v38  ;;  %10839 = vst [vmem:[#allocation39_spill] sm:$0xff] %v7636_v53 }
  0x3c   : > { %10836 = vst [vmem:[#allocation36_spill] sm:$0xff] %v7610_v16 }
  0x3d   : > { %6618 = vmatmul.mubr.msk.f32.gmra.mxu0 %vm582_vm1, %v7576_v9  ;;  %v387_v9 = vrot.slane %v305_v23, 7  ;;  %v7630_v55 = vsel %vm501_vm2, %v563_v38, %v565_v47  ;;  %v7643_v23 = vsel %vm342_vm0, %v385_v31, 0.0 }
  0x3e   : > { %6620 = vmatprep.mubr.msk.f32.mxu0 %vm582_vm1, %v7582_v19  ;;  %6671 = vmatmul.mubr.msk.f32.gmra.mxu1 %vm582_vm1, %v7536_v24  ;;  %v7617_v19 = vsel %vm342_vm0, %v382_v54, 0.0  ;;  %10838 = vst [vmem:[#allocation38_spill] sm:$0xff] %v7630_v55  ;;  %v575_v31 = vrot.slane %v7643_v23, 1 }
  0x3f   : > { %6673 = vmatprep.mubr.msk.f32.mxu1 %vm582_vm1, %v7567_v35  ;;  %v570_v54 = vrot.slane %v7617_v19, 1  ;;  %v7646_v38 = vsel %vm342_vm0, %v387_v9, %v388_v58  ;;  %v7649_v47 = vsel %vm342_vm0, 0.0, %v387_v9 }
  0x40   : > { %10840 = vst [vmem:[#allocation40_spill] sm:$0xff] %v7649_v47  ;;  %v577_v9 = vrot.slane %v7649_v47, 1 }
  0x41   : > { %6621 = vmatmul.mubr.msk.f32.gmra.mxu0 %vm582_vm1, %v7604_v14  ;;  %v7656_v51 = vsel %vm501_vm2, %v568_v48, %v570_v54  ;;  %v7676_v48 = vsel %vm501_vm2, %v573_v34, %v575_v31 }
  0x42   : > { %6623 = vmatprep.mubr.msk.f32.mxu0 %vm582_vm1, %v7610_v16  ;;  %6674 = vmatmul.mubr.msk.f32.gmra.mxu1 %vm582_vm1, %v7564_v2  ;;  %10841 = vst [vmem:[#allocation41_spill] sm:$0xff] %v7656_v51  ;;  %v7662_v16 = vsel %vm501_vm2, %v572_v17, %v573_v34  ;;  %v1168_v34 = vrot.slane %v7277_v26, 2 }
  0x43   : > { %6676 = vmatprep.mubr.msk.f32.mxu1 %vm582_vm1, %v7595_v18 }
  0x45   : > { %6624 = vmatmul.mubr.msk.f32.gmra.mxu0 %vm582_vm1, %v7630_v55  ;;  %v578_v55 = vrot.slane %v7646_v38, 1 }
  0x46   : > { %6626 = vmatprep.mubr.msk.f32.mxu0 %vm582_vm1, %v7636_v53  ;;  %6677 = vmatmul.mubr.msk.f32.gmra.mxu1 %vm582_vm1, %v7592_v12  ;;  %v7669_v53 = vsel %vm342_vm0, %v388_v58, 0.0  ;;  %v10752_v58 = vrot.slane %v7230_v6, 2 }
  0x47   : > { %6679 = vmatprep.mubr.msk.f32.mxu1 %vm582_vm1, %v7623_v52  ;;  %v580_v54 = vrot.slane %v7669_v53, 1  ;;  %v7682_v17 = vsel %vm501_vm2, %v577_v9, %v578_v55 }
  0x49   : > { %6627 = vmatmul.mubr.msk.f32.gmra.mxu0 %vm582_vm1, %v7656_v51  ;;  %v1163_v51 = vrot.slane %v7220_v3, 2  ;;  %v7694_v31 = vsel %vm501_vm2, %v578_v55, %v580_v54  ;;  %v1167_v3 = vrot.slane %v7280_v27, 2  ;;  %v7712_v55 = vld [vmem:[%s10696_s1 + $0x38] sm:$0xff]  ;;  %v10844_v54 = vrot.slane %v7235_v8, 2 }
  0x4a   : > { %6629 = vmatprep.mubr.msk.f32.mxu0 %vm582_vm1, %v7662_v16  ;;  %6680 = vmatmul.mubr.msk.f32.gmra.mxu1 %vm582_vm1, %v7620_v5  ;;  %10842 = vst [vmem:[#allocation42_spill] sm:$0xff] %v7694_v31  ;;  %v1188_v8 = vrot.slane %v7367_v1, 2 }
  0x4b   : > { %6682 = vmatprep.mubr.msk.f32.mxu1 %vm582_vm1, %v7649_v47  ;;  %v7701_v9 = vsel %vm1161_vm3, %v10752_v58, %v1163_v51  ;;  %v7719_v58 = vsel %vm1161_vm3, %v1163_v51, %v10844_v54  ;;  %v7725_v6 = vsel %vm1161_vm3, %v1167_v3, %v1168_v34  ;;  %v7735_v51 = vld [vmem:[%s10696_s1 + $0x30] sm:$0xff]  ;;  %v1178_v54 = vrot.slane %v7305_v37, 2 }
  0x4c   : > { %10843 = vst [vmem:[#allocation43_spill] sm:$0xff] %v7701_v9  ;;  %10845 = vst [vmem:[#allocation44_spill] sm:$0xff] %v7719_v58 }
  0x4d   : > { %6630 = vmatmul.mubr.msk.f32.gmra.mxu0 %vm582_vm1, %v7676_v48 }
  0x4e   : > { %6632 = vmatprep.mubr.msk.f32.mxu0 %vm582_vm1, %v7682_v17  ;;  %6683 = vmatmul.mubr.msk.f32.gmra.mxu1 %vm582_vm1, %v7646_v38 }
  0x4f   : > { %6737 = vmatprep.mubr.msk.f32.mxu1 %vm582_vm1, %v7280_v27  ;;  %v1170_v27 = vrot.slane %v7283_v28, 2 }
  0x51   : > { %6633 = vmatmul.mubr.msk.f32.gmra.mxu0 %vm582_vm1, %v7694_v31  ;;  %v1172_v31 = vrot.slane %v7286_v29, 2  ;;  %v7744_v3 = vsel %vm1161_vm3, %v1168_v34, %v1170_v27  ;;  %v1183_v27 = vrot.slane %v7351_v59, 2 }
  0x52   : > { %6687 = vmatprep.mubr.msk.f32.mxu0 %vm582_vm1, %v7701_v9  ;;  %6738 = vmatmul.mubr.msk.f32.vlgmr.msra.gmra.mxu1 %vm582_vm1, %v7277_v26  ;;  %v1173_v9 = vrot.slane %v7295_v33, 2  ;;  %v1175_v26 = vrot.slane %v7302_v36, 2  ;;  %v1180_v36 = vrot.slane %v7331_v49, 2 }
  0x53   : > { %6740 = vmatprep.mubr.msk.f32.mxu1 %vm582_vm1, %v7286_v29  ;;  %6836 = vmatpush3.msra.mxu1 %v7362_v62  ;;  %v1177_v62 = vrot.slane %v7319_v43, 2 }
  0x54   : > { %6935 = vmatprep.subr.mxu1 %v7712_v55  ;;  %v7750_v28 = vsel %vm1161_vm3, %v1172_v31, %v1173_v9  ;;  %v1182_v31 = vrot.slane %v7354_v60, 2  ;;  %v7779_v49 = vsel %vm1161_vm3, %v1178_v54, %v1180_v36 }
  0x55   : > { %6688 = vmatmul.mubr.msk.f32.vlgmr.msra.gmra.mxu0 %vm582_vm1, %v7719_v58  ;;  %v7768_v34 = vsel %vm1161_vm3, %v1177_v62, %v1178_v54  ;;  %v1187_v62 = vrot.slane %v7373_v4, 2  ;;  %v1190_v54 = vrot.slane %v7393_v20, 2  ;;  %v1193_v58 = vrot.slane %v7396_v21, 2 }
  0x56   : > { %6786 = vmatpush3.msra.mxu0 %v7264_v13  ;;  %6690 = vmatprep.mubr.msk.f32.mxu0 %vm582_vm1, %v7725_v6  ;;  %v7762_v13 = vsel %vm1161_vm3, %v1173_v9, %v1175_v26  ;;  %v1185_v9 = vrot.slane %v7357_v61, 2  ;;  %v7785_v26 = vsel %vm1161_vm3, %v1182_v31, %v1183_v27  ;;  %v1192_v31 = vrot.slane %v7399_v22, 2 }
  0x57   : > { %6741 = vmatmul.mubr.msk.f32.gmra.mxu1 %vm582_vm1, %v7295_v33  ;;  %6885 = vmatprep.subr.mxu0 %v7735_v51  ;;  %v7802_v36 = vsel %vm1161_vm3, %v1187_v62, %v1188_v8  ;;  %v7813_v20 = vsel %vm1161_vm3, %v1188_v8, %v1190_v54  ;;  %v1197_v62 = vrot.slane %v7427_v44, 2 }
  0x58   : > { %6743 = vmatprep.mubr.msk.f32.mxu1 %vm582_vm1, %v7319_v43  ;;  %v7796_v61 = vsel %vm1161_vm3, %v1183_v27, %v1185_v9  ;;  %10846 = vst [vmem:[#allocation45_spill] sm:$0xff] %v7802_v36  ;;  %10847 = vst [vmem:[#allocation46_spill] sm:$0xff] %v7813_v20  ;;  %v1195_v27 = vrot.slane %v7421_v39, 2  ;;  %v7819_v9 = vsel %vm1161_vm3, %v1192_v31, %v1193_v58  ;;  %v1200_v39 = vrot.slane %v7449_v57, 2 }
  0x59   : > { %6691 = vmatmul.mubr.msk.f32.gmra.mxu0 %vm582_vm1, %v7744_v3  ;;  %10848 = vst [vmem:[#allocation47_spill] sm:$0xff] %v7819_v9  ;;  %v1202_v31 = vrot.slane %v7455_v0, 2 }
  0x5a   : > { %6693 = vmatprep.mubr.msk.f32.mxu0 %vm582_vm1, %v7750_v28  ;;  %v7830_v8 = vsel %vm1161_vm3, %v1193_v58, %v1195_v27  ;;  %v1205_v58 = vrot.slane %v7477_v25, 2  ;;  %v1210_v25 = vrot.slane %v7505_v7, 2  ;;  %v1215_v7 = vrot.slane %v7533_v11, 2 }
  0x5b   : > { %6744 = vmatmul.mubr.msk.f32.gmra.mxu1 %vm582_vm1, %v7305_v37  ;;  %10849 = vst [vmem:[#allocation48_spill] sm:$0xff] %v7830_v8 }
  0x5c   : > { %6746 = vmatprep.mubr.msk.f32.mxu1 %vm582_vm1, %v7354_v60 }
  0x5d   : > { %6694 = vmatmul.mubr.msk.f32.gmra.mxu0 %vm582_vm1, %v7762_v13 }
  0x5e   : > { %6696 = vmatprep.mubr.msk.f32.mxu0 %vm582_vm1, %v7768_v34 }
  0x5f   : > { %6747 = vmatmul.mubr.msk.f32.gmra.mxu1 %vm582_vm1, %v7351_v59 }
  0x60   : > { %6749 = vmatprep.mubr.msk.f32.mxu1 %vm582_vm1, %v7373_v4 }
  0x61   : > { %6697 = vmatmul.mubr.msk.f32.gmra.mxu0 %vm582_vm1, %v7779_v49 }
  0x62   : > { %6699 = vmatprep.mubr.msk.f32.mxu0 %vm582_vm1, %v7785_v26 }
  0x63   : > { %6750 = vmatmul.mubr.msk.f32.gmra.mxu1 %vm582_vm1, %v7367_v1 }
  0x64   : > { %6752 = vmatprep.mubr.msk.f32.mxu1 %vm582_vm1, %v7399_v22  ;;  %v1198_v22 = vrot.slane %v7424_v42, 2 }
  0x65   : > { %6700 = vmatmul.mubr.msk.f32.gmra.mxu0 %vm582_vm1, %v7796_v61 }
  0x66   : > { %6702 = vmatprep.mubr.msk.f32.mxu0 %vm582_vm1, %v7802_v36  ;;  %v7836_v54 = vsel %vm1161_vm3, %v1197_v62, %v1198_v22  ;;  %v7847_v57 = vsel %vm1161_vm3, %v1198_v22, %v1200_v39  ;;  %v1207_v62 = vrot.slane %v7483_v32, 2 }
  0x67   : > { %6753 = vmatmul.mubr.msk.f32.gmra.mxu1 %vm582_vm1, %v7396_v21  ;;  %10850 = vst [vmem:[#allocation49_spill] sm:$0xff] %v7836_v54  ;;  %10851 = vst [vmem:[#allocation50_spill] sm:$0xff] %v7847_v57 }
  0x68   : > { %6755 = vmatprep.mubr.msk.f32.mxu1 %vm582_vm1, %v7427_v44  ;;  %v1203_v44 = vrot.slane %v7452_v63, 2 }
  0x69   : > { %6703 = vmatmul.mubr.msk.f32.gmra.mxu0 %vm582_vm1, %v7813_v20 }
  0x6a   : > { %6705 = vmatprep.mubr.msk.f32.mxu0 %vm582_vm1, %v7819_v9  ;;  %v7853_v27 = vsel %vm1161_vm3, %v1202_v31, %v1203_v44  ;;  %v7864_v22 = vsel %vm1161_vm3, %v1203_v44, %v1205_v58  ;;  %v1212_v31 = vrot.slane %v7511_v15, 2 }
  0x6b   : > { %6756 = vmatmul.mubr.msk.f32.gmra.mxu1 %vm582_vm1, %v7424_v42  ;;  %10852 = vst [vmem:[#allocation51_spill] sm:$0xff] %v7853_v27  ;;  %10853 = vst [vmem:[#allocation52_spill] sm:$0xff] %v7864_v22 }
  0x6c   : > { %6758 = vmatprep.mubr.msk.f32.mxu1 %vm582_vm1, %v7455_v0  ;;  %v1208_v0 = vrot.slane %v7480_v30, 2 }
  0x6d   : > { %6706 = vmatmul.mubr.msk.f32.gmra.mxu0 %vm582_vm1, %v7830_v8 }
  0x6e   : > { %6708 = vmatprep.mubr.msk.f32.mxu0 %vm582_vm1, %v7836_v54  ;;  %v7870_v39 = vsel %vm1161_vm3, %v1207_v62, %v1208_v0  ;;  %v7881_v44 = vsel %vm1161_vm3, %v1208_v0, %v1210_v25  ;;  %v1217_v62 = vrot.slane %v7539_v50, 2  ;;  %v1220_v0 = vrot.slane %v7561_v45, 2 }
  0x6f   : > { %6759 = vmatmul.mubr.msk.f32.gmra.mxu1 %vm582_vm1, %v7452_v63  ;;  %10854 = vst [vmem:[#allocation53_spill] sm:$0xff] %v7870_v39  ;;  %10855 = vst [vmem:[#allocation54_spill] sm:$0xff] %v7881_v44  ;;  %v1225_v45 = vrot.slane %v7589_v10, 2  ;;  %v1230_v10 = vrot.slane %v7617_v19, 2 }
  0x70   : > { %6761 = vmatprep.mubr.msk.f32.mxu1 %vm582_vm1, %v7483_v32  ;;  %v1213_v32 = vrot.slane %v7508_v56, 2 }
  0x71   : > { %6709 = vmatmul.mubr.msk.f32.gmra.mxu0 %vm582_vm1, %v7847_v57 }
  0x72   : > { %6711 = vmatprep.mubr.msk.f32.mxu0 %vm582_vm1, %v7853_v27  ;;  %v7887_v58 = vsel %vm1161_vm3, %v1212_v31, %v1213_v32  ;;  %v7898_v11 = vsel %vm1161_vm3, %v1213_v32, %v1215_v7  ;;  %v1222_v31 = vrot.slane %v7567_v35, 2 }
  0x73   : > { %6762 = vmatmul.mubr.msk.f32.gmra.mxu1 %vm582_vm1, %v7480_v30  ;;  %10856 = vst [vmem:[#allocation55_spill] sm:$0xff] %v7887_v58  ;;  %10857 = vst [vmem:[#allocation56_spill] sm:$0xff] %v7898_v11 }
  0x74   : > { %6764 = vmatprep.mubr.msk.f32.mxu1 %vm582_vm1, %v7511_v15  ;;  %v1218_v15 = vrot.slane %v7536_v24, 2 }
  0x75   : > { %6712 = vmatmul.mubr.msk.f32.gmra.mxu0 %vm582_vm1, %v7864_v22 }
  0x76   : > { %6714 = vmatprep.mubr.msk.f32.mxu0 %vm582_vm1, %v7870_v39  ;;  %v7904_v25 = vsel %vm1161_vm3, %v1217_v62, %v1218_v15  ;;  %v7915_v32 = vsel %vm1161_vm3, %v1218_v15, %v1220_v0  ;;  %v1227_v62 = vrot.slane %v7595_v18, 2  ;;  %v307_v0 = vld [vmem:[%s7259_s14 + $0xf0] sm:$0xff] }
  0x77   : > { %6765 = vmatmul.mubr.msk.f32.gmra.mxu1 %vm582_vm1, %v7508_v56  ;;  %10858 = vst [vmem:[#allocation57_spill] sm:$0xff] %v7904_v25  ;;  %10859 = vst [vmem:[#allocation58_spill] sm:$0xff] %v7915_v32 }
  0x78   : > { %6767 = vmatprep.mubr.msk.f32.mxu1 %vm582_vm1, %v7539_v50  ;;  %v1223_v50 = vrot.slane %v7564_v2, 2 }
  0x79   : > { %6715 = vmatmul.mubr.msk.f32.gmra.mxu0 %vm582_vm1, %v7881_v44 }
  0x7a   : > { %6717 = vmatprep.mubr.msk.f32.mxu0 %vm582_vm1, %v7887_v58  ;;  %v7921_v7 = vsel %vm1161_vm3, %v1222_v31, %v1223_v50  ;;  %v7932_v15 = vsel %vm1161_vm3, %v1223_v50, %v1225_v45  ;;  %v390_v50 = vrot.slane %v307_v0, 7  ;;  %v7948_v45 = vld [vmem:[%s7259_s14 + $0xf8] sm:$0xff]  ;;  %v1238_v0 = vrot.slane %v7646_v38, 2 }
  0x7b   : > { %6768 = vmatmul.mubr.msk.f32.gmra.mxu1 %vm582_vm1, %v7536_v24  ;;  %10860 = vst [vmem:[#allocation59_spill] sm:$0xff] %v7921_v7  ;;  %10861 = vst [vmem:[#allocation60_spill] sm:$0xff] %v7932_v15  ;;  %v10774_v24 = vrot.slane %v7948_v45, 7 }
  0x7c   : > { %6770 = vmatprep.mubr.msk.f32.mxu1 %vm582_vm1, %v7567_v35  ;;  %v1228_v35 = vrot.slane %v7592_v12, 2 }
  0x7d   : > { %6718 = vmatmul.mubr.msk.f32.gmra.mxu0 %vm582_vm1, %v7898_v11 }
  0x7e   : > { %6720 = vmatprep.mubr.msk.f32.mxu0 %vm582_vm1, %v7904_v25  ;;  %v7939_v31 = vsel %vm1161_vm3, %v1227_v62, %v1228_v35  ;;  %v7953_v19 = vsel %vm1161_vm3, %v1228_v35, %v1230_v10  ;;  %v1235_v62 = vrot.slane %v7643_v23, 2  ;;  %v7969_v35 = vsel %vm342_vm0, 0.0, %v390_v50 }
  0x7f   : > { %6771 = vmatmul.mubr.msk.f32.gmra.mxu1 %vm582_vm1, %v7564_v2  ;;  %10862 = vst [vmem:[#allocation61_spill] sm:$0xff] %v7939_v31  ;;  %v1233_v2 = vrot.slane %v7620_v5, 2  ;;  %10863 = vst [vmem:[#allocation62_spill] sm:$0xff] %v7953_v19  ;;  %v1240_v23 = vrot.slane %v7669_v53, 2 }
  0x80   : > { %6773 = vmatprep.mubr.msk.f32.mxu1 %vm582_vm1, %v7595_v18  ;;  %v1232_v18 = vrot.slane %v7623_v52, 2 }
  0x81   : > { %6721 = vmatmul.mubr.msk.f32.gmra.mxu0 %vm582_vm1, %v7915_v32  ;;  %v7994_v53 = vsel %vm1161_vm3, %v1238_v0, %v1240_v23  ;;  %v10876_v23 = vld [vmem:[#allocation21_spill] sm:$0xff] }
  0x82   : > { %6723 = vmatprep.mubr.msk.f32.mxu0 %vm582_vm1, %v7921_v7 }
  0x83   : > { %6774 = vmatmul.mubr.msk.f32.gmra.mxu1 %vm582_vm1, %v7592_v12  ;;  %v7959_v12 = vsel %vm1161_vm3, %v1232_v18, %v1233_v2  ;;  %v7974_v18 = vsel %vm1161_vm3, %v1233_v2, %v1235_v62  ;;  %v8012_v2 = vld [vmem:[%s10696_s1 + $0x40] sm:$0xff] }
  0x84   : > { %6776 = vmatprep.mubr.msk.f32.mxu1 %vm582_vm1, %v7623_v52  ;;  %10864 = vst [vmem:[#allocation63_spill] sm:$0xff] %v7959_v12  ;;  %v1237_v52 = vrot.slane %v7649_v47, 2  ;;  %v10874_v62 = vld [vmem:[#allocation18_spill] sm:$0xff] }
  0x85   : > { %6724 = vmatmul.mubr.msk.f32.gmra.mxu0 %vm582_vm1, %v7932_v15 }
  0x86   : > { %6726 = vmatprep.mubr.msk.f32.mxu0 %vm582_vm1, %v7939_v31  ;;  %v7980_v10 = vsel %vm1161_vm3, %v1237_v52, %v1238_v0  ;;  %v10869_v52 = vld [vmem:[#allocation10_spill] sm:$0xff]  ;;  %v10875_v0 = vld [vmem:[#allocation19_spill] sm:$0xff] }
  0x87   : > { %6777 = vmatmul.mubr.msk.f32.gmra.mxu1 %vm582_vm1, %v7620_v5  ;;  %10865 = vst [vmem:[#allocation64_spill] sm:$0xff] %v7980_v10 }
  0x88   : > { %6779 = vmatprep.mubr.msk.f32.mxu1 %vm582_vm1, %v7649_v47  ;;  %v7987_v47 = vsel %vm342_vm0, %v390_v50, %v10774_v24  ;;  %v10873_v50 = vld [vmem:[#allocation16_spill] sm:$0xff]  ;;  %v10877_v24 = vld [vmem:[#allocation22_spill] sm:$0xff] }
  0x89   : > { %6727 = vmatmul.mubr.msk.f32.gmra.mxu0 %vm582_vm1, %v7953_v19 }
  0x8a   : > { %6729 = vmatprep.mubr.msk.f32.mxu0 %vm582_vm1, %v7959_v12 }
  0x8b   : > { %6780 = vmatmul.mubr.msk.f32.gmra.mxu1 %vm582_vm1, %v7646_v38 }
  0x8c   : > { %6782 = vmatprep.mubr.msk.f32.mxu1 %vm582_vm1, %v7969_v35 }
  0x8d   : > { %6730 = vmatmul.mubr.msk.f32.gmra.mxu0 %vm582_vm1, %v7974_v18 }
  0x8e   : > { %6732 = vmatprep.mubr.msk.f32.mxu0 %vm582_vm1, %v7980_v10 }
  0x8f   : > { %6783 = vmatmul.mubr.msk.f32.gmra.mxu1 %vm582_vm1, %v7987_v47 }
  0x90   : > { %6837 = vmatprep.mubr.msk.f32.mxu1 %vm582_vm1, %v7725_v6  ;;  %v10866_v6 = vld [vmem:[#allocation7_spill] sm:$0xff] }
  0x91   : > { %6733 = vmatmul.mubr.msk.f32.gmra.mxu0 %vm582_vm1, %v7994_v53 }
  0x92   : > { %6787 = vmatprep.mubr.msk.f32.mxu0 %vm582_vm1, %v7310_v40  ;;  %v10867_v40 = vld [vmem:[#allocation8_spill] sm:$0xff] }
  0x93   : > { %6838 = vmatmul.mubr.msk.f32.vlgmr.msra.gmra.mxu1 %vm582_vm1, %v7744_v3  ;;  %v10872_v3 = vld [vmem:[#allocation15_spill] sm:$0xff] }
  0x94   : > { %6840 = vmatprep.mubr.msk.f32.mxu1 %vm582_vm1, %v7750_v28  ;;  %6936 = vmatpush3.msra.mxu1 %v7712_v55  ;;  %v10870_v55 = vld [vmem:[#allocation12_spill] sm:$0xff] }
  0x95   : > { %6788 = vmatmul.mubr.msk.f32.vlgmr.msra.gmra.mxu0 %vm582_vm1, %v7313_v41  ;;  %v10868_v41 = vld [vmem:[#allocation9_spill] sm:$0xff] }
  0x96   : > { %6886 = vmatpush3.msra.mxu0 %v7735_v51  ;;  %6790 = vmatprep.mubr.msk.f32.mxu0 %vm582_vm1, %v7326_v46  ;;  %v10871_v51 = vld [vmem:[#allocation13_spill] sm:$0xff] }
  0x97   : > { %6841 = vmatmul.mubr.msk.f32.gmra.mxu1 %vm582_vm1, %v7762_v13  ;;  %6985 = vmatprep.subr.mxu0 %v8012_v2 }
  0x98   : > { %6843 = vmatprep.mubr.msk.f32.mxu1 %vm582_vm1, %v7768_v34 }
  0x99   : > { %6791 = vmatmul.mubr.msk.f32.gmra.mxu0 %vm582_vm1, %v10866_v6 }
  0x9a   : > { %6793 = vmatprep.mubr.msk.f32.mxu0 %vm582_vm1, %v10867_v40 }
  0x9b   : > { %6844 = vmatmul.mubr.msk.f32.gmra.mxu1 %vm582_vm1, %v7779_v49 }
  0x9c   : > { %6846 = vmatprep.mubr.msk.f32.mxu1 %vm582_vm1, %v7785_v26 }
  0x9d   : > { %6794 = vmatmul.mubr.msk.f32.gmra.mxu0 %vm582_vm1, %v10868_v41 }
  0x9e   : > { %6796 = vmatprep.mubr.msk.f32.mxu0 %vm582_vm1, %v10869_v52 }
  0x9f   : > { %6847 = vmatmul.mubr.msk.f32.gmra.mxu1 %vm582_vm1, %v7796_v61 }
  0xa0   : > { %6849 = vmatprep.mubr.msk.f32.mxu1 %vm582_vm1, %v7802_v36 }
  0xa1   : > { %6797 = vmatmul.mubr.msk.f32.gmra.mxu0 %vm582_vm1, %v10870_v55 }
  0xa2   : > { %6799 = vmatprep.mubr.msk.f32.mxu0 %vm582_vm1, %v10871_v51 }
  0xa3   : > { %6850 = vmatmul.mubr.msk.f32.gmra.mxu1 %vm582_vm1, %v7813_v20 }
  0xa4   : > { %6852 = vmatprep.mubr.msk.f32.mxu1 %vm582_vm1, %v7819_v9 }
  0xa5   : > { %6800 = vmatmul.mubr.msk.f32.gmra.mxu0 %vm582_vm1, %v10872_v3 }
  0xa6   : > { %6802 = vmatprep.mubr.msk.f32.mxu0 %vm582_vm1, %v10873_v50 }
  0xa7   : > { %6853 = vmatmul.mubr.msk.f32.gmra.mxu1 %vm582_vm1, %v7830_v8  ;;  %v10879_v8 = vld [vmem:[#allocation25_spill] sm:$0xff] }
  0xa8   : > { %6855 = vmatprep.mubr.msk.f32.mxu1 %vm582_vm1, %v7836_v54  ;;  %v10878_v54 = vld [vmem:[#allocation24_spill] sm:$0xff] }
  0xa9   : > { %6803 = vmatmul.mubr.msk.f32.gmra.mxu0 %vm582_vm1, %v10874_v62 }
  0xaa   : > { %6805 = vmatprep.mubr.msk.f32.mxu0 %vm582_vm1, %v10875_v0 }
  0xab   : > { %6856 = vmatmul.mubr.msk.f32.gmra.mxu1 %vm582_vm1, %v7847_v57  ;;  %v10881_v57 = vld [vmem:[#allocation29_spill] sm:$0xff] }
  0xac   : > { %6858 = vmatprep.mubr.msk.f32.mxu1 %vm582_vm1, %v7853_v27  ;;  %v10880_v27 = vld [vmem:[#allocation28_spill] sm:$0xff] }
  0xad   : > { %6806 = vmatmul.mubr.msk.f32.gmra.mxu0 %vm582_vm1, %v10876_v23 }
  0xae   : > { %6808 = vmatprep.mubr.msk.f32.mxu0 %vm582_vm1, %v10877_v24 }
  0xaf   : > { %6859 = vmatmul.mubr.msk.f32.gmra.mxu1 %vm582_vm1, %v7864_v22  ;;  %v10883_v22 = vld [vmem:[#allocation33_spill] sm:$0xff] }
  0xb0   : > { %6861 = vmatprep.mubr.msk.f32.mxu1 %vm582_vm1, %v7870_v39  ;;  %v10882_v39 = vld [vmem:[#allocation32_spill] sm:$0xff] }
  0xb1   : > { %6809 = vmatmul.mubr.msk.f32.gmra.mxu0 %vm582_vm1, %v10878_v54 }
  0xb2   : > { %6811 = vmatprep.mubr.msk.f32.mxu0 %vm582_vm1, %v10879_v8 }
  0xb3   : > { %6862 = vmatmul.mubr.msk.f32.gmra.mxu1 %vm582_vm1, %v7881_v44  ;;  %v1827_v44 = vrot.slane %v7987_v47, 1 }
  0xb4   : > { %6864 = vmatprep.mubr.msk.f32.mxu1 %vm582_vm1, %v7887_v58  ;;  %v10884_v58 = vld [vmem:[#allocation36_spill] sm:$0xff] }
  0xb5   : > { %6812 = vmatmul.mubr.msk.f32.gmra.mxu0 %vm582_vm1, %v10880_v27 }
  0xb6   : > { %6814 = vmatprep.mubr.msk.f32.mxu0 %vm582_vm1, %v10881_v57 }
  0xb7   : > { %6865 = vmatmul.mubr.msk.f32.gmra.mxu1 %vm582_vm1, %v7898_v11  ;;  %v10886_v11 = vld [vmem:[#allocation39_spill] sm:$0xff] }
  0xb8   : > { %6867 = vmatprep.mubr.msk.f32.mxu1 %vm582_vm1, %v7904_v25  ;;  %v10885_v25 = vld [vmem:[#allocation38_spill] sm:$0xff] }
  0xb9   : > { %6815 = vmatmul.mubr.msk.f32.gmra.mxu0 %vm582_vm1, %v10882_v39 }
  0xba   : > { %6817 = vmatprep.mubr.msk.f32.mxu0 %vm582_vm1, %v10883_v22 }
  0xbb   : > { %6868 = vmatmul.mubr.msk.f32.gmra.mxu1 %vm582_vm1, %v7915_v32  ;;  %v2093_v32 = vrot.slane %v7987_v47, 2 }
  0xbc   : > { %6870 = vmatprep.mubr.msk.f32.mxu1 %vm582_vm1, %v7921_v7  ;;  %v2092_v7 = vrot.slane %v7969_v35, 2 }
  0xbd   : > { %6818 = vmatmul.mubr.msk.f32.gmra.mxu0 %vm582_vm1, %v7604_v14 }
  0xbe   : > { %6820 = vmatprep.mubr.msk.f32.mxu0 %vm582_vm1, %v10884_v58  ;;  %v8130_v20 = vsel %vm1161_vm3, %v2092_v7, %v2093_v32 }
  0xbf   : > { %6871 = vmatmul.mubr.msk.f32.gmra.mxu1 %vm582_vm1, %v7932_v15  ;;  %v10887_v15 = vld [vmem:[#allocation41_spill] sm:$0xff] }
  0xc0   : > { %6873 = vmatprep.mubr.msk.f32.mxu1 %vm582_vm1, %v7939_v31  ;;  %v1826_v31 = vrot.slane %v7969_v35, 1 }
  0xc1   : > { %6821 = vmatmul.mubr.msk.f32.gmra.mxu0 %vm582_vm1, %v10885_v25 }
  0xc2   : > { %6823 = vmatprep.mubr.msk.f32.mxu0 %vm582_vm1, %v10886_v11 }
  0xc3   : > { %6874 = vmatmul.mubr.msk.f32.gmra.mxu1 %vm582_vm1, %v7953_v19  ;;  %v10888_v19 = vrot.slane %v7948_v45, 7  ;;  %v8137_v45 = vsel %vm501_vm2, %v1826_v31, %v1827_v44 }
  0xc4   : > { %6876 = vmatprep.mubr.msk.f32.mxu1 %vm582_vm1, %v7959_v12 }
  0xc5   : > { %6824 = vmatmul.mubr.msk.f32.gmra.mxu0 %vm582_vm1, %v10887_v15  ;;  %v459_v12 = vsel %vm342_vm0, %v10888_v19, 0.0 }
  0xc6   : > { %6826 = vmatprep.mubr.msk.f32.mxu0 %vm582_vm1, %v7662_v16  ;;  %v2095_v9 = vrot.slane %v459_v12, 2  ;;  %v1829_v36 = vrot.slane %v459_v12, 1 }
  0xc7   : > { %6877 = vmatmul.mubr.msk.f32.gmra.mxu1 %vm582_vm1, %v7974_v18 }
  0xc8   : > { %6879 = vmatprep.mubr.msk.f32.mxu1 %vm582_vm1, %v7980_v10  ;;  %v8142_v19 = vsel %vm1161_vm3, %v2093_v32, %v2095_v9  ;;  %v10889_v10 = vld [vmem:[#allocation42_spill] sm:$0xff]  ;;  %v8149_v12 = vsel %vm501_vm2, %v1827_v44, %v1829_v36 }
  0xc9   : > { %6827 = vmatmul.mubr.msk.f32.gmra.mxu0 %vm582_vm1, %v7676_v48 }
  0xca   : > { %6829 = vmatprep.mubr.msk.f32.mxu0 %vm582_vm1, %v7682_v17 }
  0xcb   : > { %6880 = vmatmul.mubr.msk.f32.gmra.mxu1 %vm582_vm1, %v7994_v53 }
  0xcc   : > { %6882 = vmatprep.mubr.msk.f32.mxu1 %vm582_vm1, %v8130_v20 }
  0xcd   : > { %6830 = vmatmul.mubr.msk.f32.gmra.mxu0 %vm582_vm1, %v10889_v10 }
  0xce   : > { %6832 = vmatprep.mubr.msk.f32.mxu0 %vm582_vm1, %v8137_v45 }
  0xcf   : > { %6883 = vmatmul.mubr.msk.f32.gmra.mxu1 %vm582_vm1, %v8142_v19 }
  0xd0   : > { %v6639_v7 = vpop.f32.mrf.mxu1  ;;  %6937 = vmatprep.mubr.msk.f32.mxu1 %vm582_vm1, %v7326_v46 }
  0xd1   : > { %6833 = vmatmul.mubr.msk.f32.gmra.mxu0 %vm582_vm1, %v8149_v12 }
  0xd2   : > { %6887 = vmatprep.mubr.msk.f32.mxu0 %vm582_vm1, %v7286_v29  ;;  %v1002_v32 = vpop.f32.mrf.mxu1 }
  0xd3   : > { %v6589_v9 = vpop.f32.mrf.mxu0  ;;  %6938 = vmatmul.mubr.msk.f32.vlgmr.msra.gmra.mxu1 %vm582_vm1, %v10866_v6 }
  0xd4   : > { %v8159_v31 = vadd.f32 %v6639_v7, %v6589_v9  ;;  %6940 = vmatprep.mubr.msk.f32.mxu1 %vm582_vm1, %v10867_v40 }
  0xd5   : > { %v713_v36 = vpop.f32.mrf.mxu0  ;;  %6888 = vmatmul.mubr.msk.f32.vlgmr.msra.gmra.mxu0 %vm582_vm1, %v7295_v33 }
  0xd6   : > { %v8165_v44 = vadd.f32 %v1002_v32, %v713_v36  ;;  %6986 = vmatpush3.msra.mxu0 %v8012_v2  ;;  %6890 = vmatprep.mubr.msk.f32.mxu0 %vm582_vm1, %v7319_v43  ;;  %v6642_v29 = vpop.f32.mrf.mxu1  ;;  %v10890_v32 = vld [vmem:[#allocation11_spill] sm:$0xff] }
  0xd7   : > { %6941 = vmatmul.mubr.msk.f32.gmra.mxu1 %vm582_vm1, %v10868_v41 }
  0xd8   : > { %v1012_v46 = vpop.f32.mrf.mxu1  ;;  %6943 = vmatprep.mubr.msk.f32.mxu1 %vm582_vm1, %v10869_v52 }
  0xd9   : > { %v6592_v6 = vpop.f32.mrf.mxu0  ;;  %6891 = vmatmul.mubr.msk.f32.gmra.mxu0 %vm582_vm1, %v7305_v37 }
  0xda   : > { %v8178_v40 = vadd.f32 %v6642_v29, %v6592_v6  ;;  %6893 = vmatprep.mubr.msk.f32.mxu0 %vm582_vm1, %v7354_v60  ;;  %v6645_v33 = vpop.f32.mrf.mxu1 }
  0xdb   : > { %v723_v2 = vpop.f32.mrf.mxu0  ;;  %6944 = vmatmul.mubr.msk.f32.gmra.mxu1 %vm582_vm1, %v10870_v55 }
  0xdc   : > { %v8184_v43 = vadd.f32 %v1012_v46, %v723_v2  ;;  %v1022_v41 = vpop.f32.mrf.mxu1  ;;  %6946 = vmatprep.mubr.msk.f32.mxu1 %vm582_vm1, %v10871_v51  ;;  %v10891_v46 = vld [vmem:[#allocation14_spill] sm:$0xff] }
  0xdd   : > { %v6595_v52 = vpop.f32.mrf.mxu0  ;;  %6894 = vmatmul.mubr.msk.f32.gmra.mxu0 %vm582_vm1, %v7351_v59 }
  0xde   : > { %v8190_v37 = vadd.f32 %v6645_v33, %v6595_v52  ;;  %6896 = vmatprep.mubr.msk.f32.mxu0 %vm582_vm1, %v7373_v4  ;;  %v6648_v60 = vpop.f32.mrf.mxu1 }
  0xdf   : > { %v733_v7 = vpop.f32.mrf.mxu0  ;;  %6947 = vmatmul.mubr.msk.f32.gmra.mxu1 %vm582_vm1, %v10872_v3 }
  0xe0   : > { %v8196_v55 = vadd.f32 %v1022_v41, %v733_v7  ;;  %v1032_v9 = vpop.f32.mrf.mxu1  ;;  %6949 = vmatprep.mubr.msk.f32.mxu1 %vm582_vm1, %v10873_v50  ;;  %v10892_v41 = vld [vmem:[#allocation17_spill] sm:$0xff] }
  0xe1   : > { %v6598_v51 = vpop.f32.mrf.mxu0  ;;  %6897 = vmatmul.mubr.msk.f32.gmra.mxu0 %vm582_vm1, %v7367_v1 }
  0xe2   : > { %v8202_v59 = vadd.f32 %v6648_v60, %v6598_v51  ;;  %6899 = vmatprep.mubr.msk.f32.mxu0 %vm582_vm1, %v10890_v32  ;;  %v6651_v4 = vpop.f32.mrf.mxu1 }
  0xe3   : > { %v743_v36 = vpop.f32.mrf.mxu0  ;;  %6950 = vmatmul.mubr.msk.f32.gmra.mxu1 %vm582_vm1, %v10874_v62 }
  0xe4   : > { %v8208_v3 = vadd.f32 %v1032_v9, %v743_v36  ;;  %v1042_v29 = vpop.f32.mrf.mxu1  ;;  %6952 = vmatprep.mubr.msk.f32.mxu1 %vm582_vm1, %v10875_v0  ;;  %v10893_v9 = vld [vmem:[#allocation20_spill] sm:$0xff]  ;;  %v10894_v36 = vld [vmem:[#allocation23_spill] sm:$0xff] }
  0xe5   : > { %v6601_v50 = vpop.f32.mrf.mxu0  ;;  %6900 = vmatmul.mubr.msk.f32.gmra.mxu0 %vm582_vm1, %v7396_v21 }
  0xe6   : > { %v8214_v1 = vadd.f32 %v6651_v4, %v6601_v50  ;;  %6902 = vmatprep.mubr.msk.f32.mxu0 %vm582_vm1, %v10891_v46  ;;  %v6654_v6 = vpop.f32.mrf.mxu1 }
  0xe7   : > { %v753_v33 = vpop.f32.mrf.mxu0  ;;  %6953 = vmatmul.mubr.msk.f32.gmra.mxu1 %vm582_vm1, %v10876_v23 }
  0xe8   : > { %v8220_v62 = vadd.f32 %v1042_v29, %v753_v33  ;;  %v1052_v2 = vpop.f32.mrf.mxu1  ;;  %6955 = vmatprep.mubr.msk.f32.mxu1 %vm582_vm1, %v10877_v24 }
  0xe9   : > { %v6604_v0 = vpop.f32.mrf.mxu0  ;;  %6903 = vmatmul.mubr.msk.f32.gmra.mxu0 %vm582_vm1, %v7424_v42 }
  0xea   : > { %v8226_v21 = vadd.f32 %v6654_v6, %v6604_v0  ;;  %6905 = vmatprep.mubr.msk.f32.mxu0 %vm582_vm1, %v10892_v41  ;;  %v6657_v52 = vpop.f32.mrf.mxu1  ;;  %v10895_v6 = vld [vmem:[#allocation27_spill] sm:$0xff]  ;;  %v10896_v0 = vld [vmem:[#allocation26_spill] sm:$0xff] }
  0xeb   : > { %v763_v60 = vpop.f32.mrf.mxu0  ;;  %6956 = vmatmul.mubr.msk.f32.gmra.mxu1 %vm582_vm1, %v10878_v54  ;;  %v10897_v41 = vld [vmem:[#allocation31_spill] sm:$0xff] }
  0xec   : > { %v8232_v23 = vadd.f32 %v1052_v2, %v763_v60  ;;  %v1062_v7 = vpop.f32.mrf.mxu1  ;;  %6958 = vmatprep.mubr.msk.f32.mxu1 %vm582_vm1, %v10879_v8 }
  0xed   : > { %v6607_v24 = vpop.f32.mrf.mxu0  ;;  %6906 = vmatmul.mubr.msk.f32.gmra.mxu0 %vm582_vm1, %v7452_v63 }
  0xee   : > { %v8238_v42 = vadd.f32 %v6657_v52, %v6607_v24  ;;  %6908 = vmatprep.mubr.msk.f32.mxu0 %vm582_vm1, %v10893_v9  ;;  %v6660_v51 = vpop.f32.mrf.mxu1  ;;  %v10899_v9 = vld [vmem:[#allocation35_spill] sm:$0xff] }
  0xef   : > { %v773_v32 = vpop.f32.mrf.mxu0  ;;  %6959 = vmatmul.mubr.msk.f32.gmra.mxu1 %vm582_vm1, %v10880_v27 }
  0xf0   : > { %v8244_v54 = vadd.f32 %v1062_v7, %v773_v32  ;;  %v1072_v4 = vpop.f32.mrf.mxu1  ;;  %6961 = vmatprep.mubr.msk.f32.mxu1 %vm582_vm1, %v10881_v57  ;;  %v10898_v7 = vld [vmem:[#allocation30_spill] sm:$0xff] }
  0xf1   : > { %v6610_v8 = vpop.f32.mrf.mxu0  ;;  %6909 = vmatmul.mubr.msk.f32.gmra.mxu0 %vm582_vm1, %v7480_v30 }
  0xf2   : > { %v8250_v63 = vadd.f32 %v6660_v51, %v6610_v8  ;;  %6911 = vmatprep.mubr.msk.f32.mxu0 %vm582_vm1, %v10894_v36  ;;  %v6663_v29 = vpop.f32.mrf.mxu1  ;;  %v10902_v36 = vld [vmem:[#allocation37_spill] sm:$0xff] }
  0xf3   : > { %v783_v50 = vpop.f32.mrf.mxu0  ;;  %6962 = vmatmul.mubr.msk.f32.gmra.mxu1 %vm582_vm1, %v10882_v39 }
  0xf4   : > { %v8256_v27 = vadd.f32 %v1072_v4, %v783_v50  ;;  %v8258_v46 = vpop.f32.mrf.mxu1  ;;  %6964 = vmatprep.mubr.msk.f32.mxu1 %vm582_vm1, %v10883_v22  ;;  %v10901_v4 = vld [vmem:[#allocation34_spill] sm:$0xff] }
  0xf5   : > { %v6613_v57 = vpop.f32.mrf.mxu0  ;;  %6912 = vmatmul.mubr.msk.f32.gmra.mxu0 %vm582_vm1, %v7508_v56 }
  0xf6   : > { %v8264_v30 = vadd.f32 %v6663_v29, %v6613_v57  ;;  %6914 = vmatprep.mubr.msk.f32.mxu0 %vm582_vm1, %v10895_v6  ;;  %v6666_v33 = vpop.f32.mrf.mxu1  ;;  %v10905_v6 = vld [vmem:[#allocation40_spill] sm:$0xff] }
  0xf7   : > { %v8268_v2 = vpop.f32.mrf.mxu0  ;;  %6965 = vmatmul.mubr.msk.f32.gmra.mxu1 %vm582_vm1, %v7604_v14 }
  0xf8   : > { %v8272_v39 = vpop.f32.mrf.mxu1  ;;  %6967 = vmatprep.mubr.msk.f32.mxu1 %vm582_vm1, %v10884_v58 }
  0xf9   : > { %v6616_v22 = vpop.f32.mrf.mxu0  ;;  %6915 = vmatmul.mubr.msk.f32.gmra.mxu0 %vm582_vm1, %v10896_v0 }
  0xfa   : > { %v8278_v56 = vadd.f32 %v6666_v33, %v6616_v22  ;;  %6917 = vmatprep.mubr.msk.f32.mxu0 %vm582_vm1, %v10897_v41  ;;  %v6669_v52 = vpop.f32.mrf.mxu1 }
  0xfb   : > { %v8282_v60 = vpop.f32.mrf.mxu0  ;;  %6968 = vmatmul.mubr.msk.f32.gmra.mxu1 %vm582_vm1, %v10885_v25 }
  0xfc   : > { %v8286_v14 = vpop.f32.mrf.mxu1  ;;  %6970 = vmatprep.mubr.msk.f32.mxu1 %vm582_vm1, %v10886_v11 }
  0xfd   : > { %v6619_v58 = vpop.f32.mrf.mxu0  ;;  %6918 = vmatmul.mubr.msk.f32.gmra.mxu0 %vm582_vm1, %v10898_v7 }
  0xfe   : > { %v8292_v24 = vadd.f32 %v6669_v52, %v6619_v58  ;;  %6920 = vmatprep.mubr.msk.f32.mxu0 %vm582_vm1, %v10899_v9  ;;  %v6672_v51 = vpop.f32.mrf.mxu1  ;;  %v10907_v52 = vld [vmem:[#allocation5_spill] sm:$0xff]  ;;  %v10908_v58 = vld [vmem:[#allocation3_spill] sm:$0xff]  ;;  %v10909_v9 = vld [vmem:[#allocation6_spill] sm:$0xff] }
  0xff   : > { %v8296_v32 = vpop.f32.mrf.mxu0  ;;  %6971 = vmatmul.mubr.msk.f32.gmra.mxu1 %vm582_vm1, %v10887_v15 }
 0x100   : > { %v8300_v25 = vpop.f32.mrf.mxu1  ;;  %6973 = vmatprep.mubr.msk.f32.mxu1 %vm582_vm1, %v7662_v16 }
 0x101   : > { %10900 = vst [vmem:[#allocation7_spill] sm:$0xff] %v8300_v25  ;;  %v6622_v11 = vpop.f32.mrf.mxu0  ;;  %6921 = vmatmul.mubr.msk.f32.gmra.mxu0 %vm582_vm1, %v10901_v4  ;;  %v10927_v25 = vld [vmem:[#allocation60_spill] sm:$0xff] }
 0x102   : > { %v8306_v8 = vadd.f32 %v6672_v51, %v6622_v11  ;;  %6923 = vmatprep.mubr.msk.f32.mxu0 %vm582_vm1, %v10902_v36  ;;  %v6675_v29 = vpop.f32.mrf.mxu1  ;;  %v10910_v11 = vld [vmem:[#allocation2_spill] sm:$0xff] }
 0x103   : > { %v8310_v50 = vpop.f32.mrf.mxu0  ;;  %6974 = vmatmul.mubr.msk.f32.gmra.mxu1 %vm582_vm1, %v7676_v48 }
 0x104   : > { %10903 = vst [vmem:[#allocation8_spill] sm:$0xff] %v8310_v50  ;;  %v8314_v15 = vpop.f32.mrf.mxu1  ;;  %6976 = vmatprep.mubr.msk.f32.mxu1 %vm582_vm1, %v7682_v17 }
 0x105   : > { %10904 = vst [vmem:[#allocation9_spill] sm:$0xff] %v8314_v15  ;;  %v6625_v16 = vpop.f32.mrf.mxu0  ;;  %6924 = vmatmul.mubr.msk.f32.gmra.mxu0 %vm582_vm1, %v7620_v5  ;;  %v10923_v15 = vld [vmem:[#allocation57_spill] sm:$0xff] }
 0x106   : > { %v8320_v57 = vadd.f32 %v6675_v29, %v6625_v16  ;;  %6926 = vmatprep.mubr.msk.f32.mxu0 %vm582_vm1, %v10905_v6  ;;  %v6678_v33 = vpop.f32.mrf.mxu1 }
 0x107   : > { %v8324_v22 = vpop.f32.mrf.mxu0  ;;  %6977 = vmatmul.mubr.msk.f32.gmra.mxu1 %vm582_vm1, %v10889_v10 }
 0x108   : > { %10906 = vst [vmem:[#allocation10_spill] sm:$0xff] %v8324_v22  ;;  %v8328_v48 = vpop.f32.mrf.mxu1  ;;  %6979 = vmatprep.mubr.msk.f32.mxu1 %vm582_vm1, %v8137_v45 }
 0x109   : > { %v6628_v17 = vpop.f32.mrf.mxu0  ;;  %6927 = vmatmul.mubr.msk.f32.gmra.mxu0 %vm582_vm1, %v7646_v38 }
 0x10a   : > { %v8334_v5 = vadd.f32 %v6678_v33, %v6628_v17  ;;  %6929 = vmatprep.mubr.msk.f32.mxu0 %vm582_vm1, %v7969_v35  ;;  %v6681_v0 = vpop.f32.mrf.mxu1 }
 0x10b   : > { %v8338_v41 = vpop.f32.mrf.mxu0  ;;  %6980 = vmatmul.mubr.msk.f32.gmra.mxu1 %vm582_vm1, %v8149_v12 }
 0x10c   : > { %v8342_v10 = vpop.f32.mrf.mxu1  ;;  %6982 = vmatprep.mubr.msk.f32.mxu1 %vm582_vm1, %v10907_v52 }
 0x10d   : > { %v6631_v45 = vpop.f32.mrf.mxu0  ;;  %6930 = vmatmul.mubr.msk.f32.gmra.mxu0 %vm582_vm1, %v7987_v47 }
 0x10e   : > { %v8348_v38 = vadd.f32 %v6681_v0, %v6631_v45  ;;  %6932 = vmatprep.mubr.msk.f32.mxu0 %vm582_vm1, %v10908_v58  ;;  %v6684_v35 = vpop.f32.mrf.mxu1  ;;  %v10921_v58 = vld [vmem:[#allocation55_spill] sm:$0xff] }
 0x10f   : > { %v8352_v7 = vpop.f32.mrf.mxu0  ;;  %6983 = vmatmul.mubr.msk.f32.gmra.mxu1 %vm582_vm1, %v10909_v9 }
 0x110   : > { %v8356_v12 = vpop.f32.mrf.mxu1 }
 0x111   : > { %v6634_v51 = vpop.f32.mrf.mxu0  ;;  %6933 = vmatmul.mubr.msk.f32.gmra.mxu0 %vm582_vm1, %v10910_v11  ;;  %v10911_v11 = vld [vmem:[#allocation45_spill] sm:$0xff] }
 0x112   : > { %v8360_v4 = vadd.f32 %v6684_v35, %v6634_v51  ;;  %6987 = vmatprep.mubr.msk.f32.mxu0 %vm582_vm1, %v7750_v28  ;;  %v6739_v47 = vpop.f32.mrf.mxu1 }
 0x113   : > { %v8364_v36 = vpop.f32.mrf.mxu0 }
 0x114   : > { %v8366_v29 = vpop.f32.mrf.mxu1 }
 0x115   : > { %v6689_v16 = vpop.f32.mrf.mxu0  ;;  %6988 = vmatmul.mubr.msk.f32.vlgmr.msra.gmra.mxu0 %vm582_vm1, %v7762_v13 }
 0x116   : > { %v1532_v6 = vadd.f32 %v6689_v16, %v8159_v31  ;;  %6990 = vmatprep.mubr.msk.f32.mxu0 %vm582_vm1, %v7768_v34 }
 0x117   : > { %v1372_v33 = vpop.f32.mrf.mxu0  ;;  %v6742_v17 = vpop.f32.mrf.mxu1 }
 0x118   : > { %v8374_v0 = vadd.f32 %v1372_v33, %v8165_v44  ;;  %v8376_v28 = vadd.f32 %v6739_v47, %v1532_v6  ;;  %v10912_v6 = vld [vmem:[#allocation46_spill] sm:$0xff] }
 0x119   : > { %v6692_v52 = vpop.f32.mrf.mxu0  ;;  %6991 = vmatmul.mubr.msk.f32.gmra.mxu0 %vm582_vm1, %v7779_v49  ;;  %v8380_v45 = vpop.f32.mrf.mxu1 }
 0x11a   : > { %v1534_v13 = vadd.f32 %v6692_v52, %v8178_v40  ;;  %6993 = vmatprep.mubr.msk.f32.mxu0 %vm582_vm1, %v7785_v26 }
 0x11b   : > { %v1382_v31 = vpop.f32.mrf.mxu0  ;;  %v6745_v34 = vpop.f32.mrf.mxu1 }
 0x11c   : > { %v8386_v35 = vadd.f32 %v1382_v31, %v8184_v43  ;;  %v8388_v44 = vadd.f32 %v6742_v17, %v1534_v13  ;;  %v10913_v17 = vld [vmem:[#allocation47_spill] sm:$0xff] }
 0x11d   : > { %v6695_v9 = vpop.f32.mrf.mxu0  ;;  %6994 = vmatmul.mubr.msk.f32.gmra.mxu0 %vm582_vm1, %v7796_v61  ;;  %v8392_v51 = vpop.f32.mrf.mxu1 }
 0x11e   : > { %v1536_v49 = vadd.f32 %v6695_v9, %v8190_v37  ;;  %6996 = vmatprep.mubr.msk.f32.mxu0 %vm582_vm1, %v10911_v11  ;;  %v10915_v11 = vld [vmem:[#allocation49_spill] sm:$0xff] }
 0x11f   : > { %v1392_v40 = vpop.f32.mrf.mxu0  ;;  %v6748_v26 = vpop.f32.mrf.mxu1 }
 0x120   : > { %v8398_v47 = vadd.f32 %v1392_v40, %v8196_v55  ;;  %v8400_v43 = vadd.f32 %v6745_v34, %v1536_v49  ;;  %v10914_v34 = vld [vmem:[#allocation48_spill] sm:$0xff] }
 0x121   : > { %v6698_v16 = vpop.f32.mrf.mxu0  ;;  %6997 = vmatmul.mubr.msk.f32.gmra.mxu0 %vm582_vm1, %v10912_v6  ;;  %v8404_v33 = vpop.f32.mrf.mxu1  ;;  %v10916_v6 = vld [vmem:[#allocation50_spill] sm:$0xff] }
 0x122   : > { %v1538_v61 = vadd.f32 %v6698_v16, %v8202_v59  ;;  %6999 = vmatprep.mubr.msk.f32.mxu0 %vm582_vm1, %v10913_v17 }
 0x123   : > { %v1402_v37 = vpop.f32.mrf.mxu0  ;;  %v6751_v52 = vpop.f32.mrf.mxu1 }
 0x124   : > { %v8410_v13 = vadd.f32 %v1402_v37, %v8208_v3  ;;  %v8412_v55 = vadd.f32 %v6748_v26, %v1538_v61  ;;  %v10917_v37 = vld [vmem:[#allocation51_spill] sm:$0xff] }
 0x125   : > { %v6701_v31 = vpop.f32.mrf.mxu0  ;;  %7000 = vmatmul.mubr.msk.f32.gmra.mxu0 %vm582_vm1, %v10914_v34  ;;  %v8416_v9 = vpop.f32.mrf.mxu1 }
 0x126   : > { %v1540_v49 = vadd.f32 %v6701_v31, %v8214_v1  ;;  %7002 = vmatprep.mubr.msk.f32.mxu0 %vm582_vm1, %v10915_v11 }
 0x127   : > { %v1412_v59 = vpop.f32.mrf.mxu0  ;;  %v6754_v40 = vpop.f32.mrf.mxu1 }
 0x128   : > { %v8422_v16 = vadd.f32 %v1412_v59, %v8220_v62  ;;  %v8424_v3 = vadd.f32 %v6751_v52, %v1540_v49  ;;  %v10918_v49 = vld [vmem:[#allocation52_spill] sm:$0xff] }
 0x129   : > { %v6704_v26 = vpop.f32.mrf.mxu0  ;;  %7003 = vmatmul.mubr.msk.f32.gmra.mxu0 %vm582_vm1, %v10916_v6  ;;  %v8428_v61 = vpop.f32.mrf.mxu1  ;;  %v10919_v6 = vld [vmem:[#allocation53_spill] sm:$0xff] }
 0x12a   : > { %v1542_v17 = vadd.f32 %v6704_v26, %v8226_v21  ;;  %7005 = vmatprep.mubr.msk.f32.mxu0 %vm582_vm1, %v10917_v37 }
 0x12b   : > { %v1422_v1 = vpop.f32.mrf.mxu0  ;;  %v6757_v31 = vpop.f32.mrf.mxu1 }
 0x12c   : > { %v8434_v34 = vadd.f32 %v1422_v1, %v8232_v23  ;;  %v8436_v62 = vadd.f32 %v6754_v40, %v1542_v17  ;;  %v10920_v17 = vld [vmem:[#allocation54_spill] sm:$0xff] }
 0x12d   : > { %v6707_v52 = vpop.f32.mrf.mxu0  ;;  %7006 = vmatmul.mubr.msk.f32.gmra.mxu0 %vm582_vm1, %v10918_v49  ;;  %v8440_v11 = vpop.f32.mrf.mxu1 }
 0x12e   : > { %v1544_v59 = vadd.f32 %v6707_v52, %v8238_v42  ;;  %7008 = vmatprep.mubr.msk.f32.mxu0 %vm582_vm1, %v10919_v6 }
 0x12f   : > { %v1432_v21 = vpop.f32.mrf.mxu0  ;;  %v6760_v26 = vpop.f32.mrf.mxu1 }
 0x130   : > { %v8446_v37 = vadd.f32 %v1432_v21, %v8244_v54  ;;  %v8448_v23 = vadd.f32 %v6757_v31, %v1544_v59  ;;  %v10922_v59 = vld [vmem:[#allocation56_spill] sm:$0xff] }
 0x131   : > { %v6710_v40 = vpop.f32.mrf.mxu0  ;;  %7009 = vmatmul.mubr.msk.f32.gmra.mxu0 %vm582_vm1, %v10920_v17  ;;  %v8452_v1 = vpop.f32.mrf.mxu1 }
 0x132   : > { %v1546_v49 = vadd.f32 %v6710_v40, %v8250_v63  ;;  %7011 = vmatprep.mubr.msk.f32.mxu0 %vm582_vm1, %v10921_v58 }
 0x133   : > { %v1442_v42 = vpop.f32.mrf.mxu0  ;;  %v6763_v52 = vpop.f32.mrf.mxu1 }
 0x134   : > { %v8458_v6 = vadd.f32 %v1442_v42, %v8256_v27  ;;  %v8460_v54 = vadd.f32 %v6760_v26, %v1546_v49  ;;  %v10924_v42 = vld [vmem:[#allocation58_spill] sm:$0xff] }
 0x135   : > { %v6713_v31 = vpop.f32.mrf.mxu0  ;;  %7012 = vmatmul.mubr.msk.f32.gmra.mxu0 %vm582_vm1, %v10922_v59  ;;  %v8464_v21 = vpop.f32.mrf.mxu1  ;;  %v10926_v59 = vld [vmem:[#allocation59_spill] sm:$0xff] }
 0x136   : > { %v1548_v17 = vadd.f32 %v6713_v31, %v8264_v30  ;;  %7014 = vmatprep.mubr.msk.f32.mxu0 %vm582_vm1, %v10923_v15 }
 0x137   : > { %v8469_v63 = vpop.f32.mrf.mxu0  ;;  %v6766_v58 = vpop.f32.mrf.mxu1 }
 0x138   : > { %v8471_v40 = vadd.f32 %v6763_v52, %v1548_v17 }
 0x139   : > { %v6716_v27 = vpop.f32.mrf.mxu0  ;;  %7015 = vmatmul.mubr.msk.f32.gmra.mxu0 %vm582_vm1, %v10924_v42  ;;  %v8475_v26 = vpop.f32.mrf.mxu1  ;;  %v10929_v42 = vld [vmem:[#allocation61_spill] sm:$0xff] }
 0x13a   : > { %10925 = vst [vmem:[#allocation12_spill] sm:$0xff] %v8475_v26  ;;  %v1550_v49 = vadd.f32 %v6716_v27, %v8278_v56  ;;  %7017 = vmatprep.mubr.msk.f32.mxu0 %vm582_vm1, %v10926_v59  ;;  %v10930_v26 = vld [vmem:[#allocation62_spill] sm:$0xff] }
 0x13b   : > { %v8480_v30 = vpop.f32.mrf.mxu0  ;;  %v6769_v31 = vpop.f32.mrf.mxu1 }
 0x13c   : > { %v8482_v15 = vadd.f32 %v6766_v58, %v1550_v49  ;;  %v10932_v49 = vld [vmem:[#allocation63_spill] sm:$0xff] }
 0x13d   : > { %v6719_v22 = vpop.f32.mrf.mxu0  ;;  %7018 = vmatmul.mubr.msk.f32.gmra.mxu0 %vm582_vm1, %v10927_v25  ;;  %v8486_v52 = vpop.f32.mrf.mxu1 }
 0x13e   : > { %10928 = vst [vmem:[#allocation13_spill] sm:$0xff] %v8486_v52  ;;  %v1552_v17 = vadd.f32 %v6719_v22, %v8292_v24  ;;  %7020 = vmatprep.mubr.msk.f32.mxu0 %vm582_vm1, %v10929_v42 }
 0x13f   : > { %v8491_v56 = vpop.f32.mrf.mxu0  ;;  %v6772_v27 = vpop.f32.mrf.mxu1 }
 0x140   : > { %v8493_v59 = vadd.f32 %v6769_v31, %v1552_v17  ;;  %v10934_v17 = vld [vmem:[#allocation64_spill] sm:$0xff] }
 0x141   : > { %v6722_v50 = vpop.f32.mrf.mxu0  ;;  %7021 = vmatmul.mubr.msk.f32.gmra.mxu0 %vm582_vm1, %v10930_v26  ;;  %v8497_v58 = vpop.f32.mrf.mxu1 }
 0x142   : > { %10931 = vst [vmem:[#allocation15_spill] sm:$0xff] %v8497_v58  ;;  %v1554_v25 = vadd.f32 %v6722_v50, %v8306_v8  ;;  %7023 = vmatprep.mubr.msk.f32.mxu0 %vm582_vm1, %v10932_v49 }
 0x143   : > { %v8502_v24 = vpop.f32.mrf.mxu0  ;;  %v6775_v22 = vpop.f32.mrf.mxu1 }
 0x144   : > { %v8504_v42 = vadd.f32 %v6772_v27, %v1554_v25 }
 0x145   : > { %v6725_v52 = vpop.f32.mrf.mxu0  ;;  %7024 = vmatmul.mubr.msk.f32.gmra.mxu0 %vm582_vm1, %v7974_v18  ;;  %v8508_v31 = vpop.f32.mrf.mxu1  ;;  %v1133_v18 = vadd.f32 %v8328_v48, %v8338_v41 }
 0x146   : > { %10933 = vst [vmem:[#allocation16_spill] sm:$0xff] %v8508_v31  ;;  %v1556_v26 = vadd.f32 %v6725_v52, %v8320_v57  ;;  %7026 = vmatprep.mubr.msk.f32.mxu0 %vm582_vm1, %v10934_v17 }
 0x147   : > { %v8513_v8 = vpop.f32.mrf.mxu0  ;;  %v6778_v50 = vpop.f32.mrf.mxu1 }
 0x148   : > { %v8515_v49 = vadd.f32 %v6775_v22, %v1556_v26 }
 0x149   : > { %v6728_v58 = vpop.f32.mrf.mxu0  ;;  %7027 = vmatmul.mubr.msk.f32.gmra.mxu0 %vm582_vm1, %v7994_v53  ;;  %v1764_v27 = vpop.f32.mrf.mxu1  ;;  %v1143_v53 = vadd.f32 %v8342_v10, %v8352_v7  ;;  %v1153_v10 = vadd.f32 %v8356_v12, %v8364_v36 }
 0x14a   : > { %v1558_v25 = vadd.f32 %v6728_v58, %v8334_v5  ;;  %7029 = vmatprep.mubr.msk.f32.mxu0 %vm582_vm1, %v8130_v20  ;;  %v10935_v5 = vld [vmem:[#allocation43_spill] sm:$0xff] }
 0x14b   : > { %v1502_v57 = vpop.f32.mrf.mxu0  ;;  %v6781_v52 = vpop.f32.mrf.mxu1 }
 0x14c   : > { %v1557_v17 = vadd.f32 %v1502_v57, %v1133_v18  ;;  %v8524_v31 = vadd.f32 %v6778_v50, %v1558_v25  ;;  %v10936_v57 = vld [vmem:[#allocation44_spill] sm:$0xff] }
 0x14d   : > { %v6731_v22 = vpop.f32.mrf.mxu0  ;;  %7030 = vmatmul.mubr.msk.f32.gmra.mxu0 %vm582_vm1, %v8142_v19  ;;  %v1774_v26 = vpop.f32.mrf.mxu1 }
 0x14e   : > { %v1560_v48 = vadd.f32 %v6731_v22, %v8348_v38  ;;  %v8531_v41 = vadd.f32 %v1764_v27, %v1557_v17  ;;  %7032 = vmatprep.mubr.msk.f32.mxu0 %vm582_vm1, %v10935_v5 }
 0x14f   : > { %v1512_v20 = vpop.f32.mrf.mxu0  ;;  %v6784_v58 = vpop.f32.mrf.mxu1 }
 0x150   : > { %v1559_v18 = vadd.f32 %v1512_v20, %v1143_v53  ;;  %v8535_v50 = vadd.f32 %v6781_v52, %v1560_v48  ;;  %v1793_v48 = vadd.f32 %v8366_v29, %v8374_v0 }
 0x151   : > { %v6734_v25 = vpop.f32.mrf.mxu0  ;;  %7033 = vmatmul.mubr.msk.f32.gmra.mxu0 %vm582_vm1, %v10936_v57  ;;  %v1784_v19 = vpop.f32.mrf.mxu1 }
 0x152   : > { %v1562_v38 = vadd.f32 %v6734_v25, %v8360_v4  ;;  %v8542_v7 = vadd.f32 %v1774_v26, %v1559_v18  ;;  %v1795_v25 = vadd.f32 %v8380_v45, %v8386_v35 }
 0x153   : > { %v1522_v27 = vpop.f32.mrf.mxu0  ;;  %v6839_v17 = vpop.f32.mrf.mxu1 }
 0x154   : > { %v1561_v22 = vadd.f32 %v1522_v27, %v1153_v10  ;;  %v8544_v5 = vadd.f32 %v6784_v58, %v1562_v38  ;;  %v1797_v27 = vadd.f32 %v8392_v51, %v8398_v47 }
 0x155   : > { %v6789_v53 = vpop.f32.mrf.mxu0  ;;  %v8546_v52 = vpop.f32.mrf.mxu1 }
 0x156   : > { %v8550_v20 = vadd.f32 %v1784_v19, %v1561_v22  ;;  %v2061_v57 = vadd.f32 %v6789_v53, %v8376_v28 }
 0x157   : > { %v1901_v12 = vpop.f32.mrf.mxu0  ;;  %v8553_v36 = vpop.f32.mrf.mxu1 }
 0x158   : > { %v8555_v4 = vadd.f32 %v1901_v12, %v1793_v48  ;;  %v8557_v26 = vadd.f32 %v6839_v17, %v2061_v57 }
 0x159   : > { %v6792_v18 = vpop.f32.mrf.mxu0  ;;  %v8559_v58 = vpop.f32.mrf.mxu1 }
 0x15a   : > { %10937 = vst [vmem:[#allocation18_spill] sm:$0xff] %v8559_v58  ;;  %v8564_v10 = vadd.f32 %v6792_v18, %v8388_v44  ;;  %v1799_v44 = vadd.f32 %v8404_v33, %v8410_v13 }
 0x15b   : > { %v1911_v29 = vpop.f32.mrf.mxu0  ;;  %v6845_v0 = vpop.f32.mrf.mxu1 }
 0x15c   : > { %v8566_v19 = vadd.f32 %v1911_v29, %v1795_v25 }
 0x15d   : > { %v6795_v28 = vpop.f32.mrf.mxu0  ;;  %v2187_v38 = vpop.f32.mrf.mxu1 }
 0x15e   : > { %v2065_v17 = vadd.f32 %v6795_v28, %v8400_v43 }
 0x15f   : > { %v1921_v22 = vpop.f32.mrf.mxu0  ;;  %v6848_v53 = vpop.f32.mrf.mxu1 }
 0x160   : > { %v2064_v48 = vadd.f32 %v1921_v22, %v1797_v27  ;;  %v8571_v57 = vadd.f32 %v6845_v0, %v2065_v17  ;;  %v1801_v0 = vadd.f32 %v8416_v9, %v8422_v16 }
 0x161   : > { %v6798_v45 = vpop.f32.mrf.mxu0  ;;  %v2197_v35 = vpop.f32.mrf.mxu1 }
 0x162   : > { %v2067_v12 = vadd.f32 %v6798_v45, %v8412_v55  ;;  %v8576_v18 = vadd.f32 %v2187_v38, %v2064_v48 }
 0x163   : > { %v1931_v25 = vpop.f32.mrf.mxu0  ;;  %v6851_v29 = vpop.f32.mrf.mxu1 }
 0x164   : > { %v2066_v58 = vadd.f32 %v1931_v25, %v1799_v44  ;;  %v8578_v51 = vadd.f32 %v6848_v53, %v2067_v12  ;;  %v1803_v53 = vadd.f32 %v8428_v61, %v8434_v34  ;;  %v1805_v12 = vadd.f32 %v8440_v11, %v8446_v37 }
 0x165   : > { %v6801_v47 = vpop.f32.mrf.mxu0  ;;  %v2207_v43 = vpop.f32.mrf.mxu1  ;;  %v1083_v34 = vadd.f32 %v8258_v46, %v8268_v2 }
 0x166   : > { %v2069_v28 = vadd.f32 %v6801_v47, %v8424_v3  ;;  %v8583_v27 = vadd.f32 %v2197_v35, %v2066_v58 }
 0x167   : > { %v1941_v17 = vpop.f32.mrf.mxu0  ;;  %v6854_v33 = vpop.f32.mrf.mxu1 }
 0x168   : > { %v2068_v13 = vadd.f32 %v1941_v17, %v1801_v0  ;;  %v8585_v55 = vadd.f32 %v6851_v29, %v2069_v28  ;;  %v1807_v17 = vadd.f32 %v8452_v1, %v8458_v6 }
 0x169   : > { %v6804_v38 = vpop.f32.mrf.mxu0  ;;  %v2217_v22 = vpop.f32.mrf.mxu1 }
 0x16a   : > { %v2071_v48 = vadd.f32 %v6804_v38, %v8436_v62  ;;  %v8590_v45 = vadd.f32 %v2207_v43, %v2068_v13  ;;  %v1093_v38 = vadd.f32 %v8272_v39, %v8282_v60 }
 0x16b   : > { %v1951_v44 = vpop.f32.mrf.mxu0  ;;  %v6857_v9 = vpop.f32.mrf.mxu1 }
 0x16c   : > { %v2070_v16 = vadd.f32 %v1951_v44, %v1803_v53  ;;  %v8592_v3 = vadd.f32 %v6854_v33, %v2071_v48  ;;  %v1547_v33 = vadd.f32 %v8469_v63, %v1083_v34  ;;  %v1549_v1 = vadd.f32 %v8480_v30, %v1093_v38  ;;  %v10940_v34 = vld [vmem:[#allocation7_spill] sm:$0xff]  ;;  %v10942_v38 = vld [vmem:[#allocation10_spill] sm:$0xff] }
 0x16d   : > { %v6807_v58 = vpop.f32.mrf.mxu0  ;;  %v2227_v35 = vpop.f32.mrf.mxu1 }
 0x16e   : > { %v2073_v25 = vadd.f32 %v6807_v58, %v8448_v23  ;;  %v8597_v29 = vadd.f32 %v2217_v22, %v2070_v16  ;;  %v1809_v48 = vadd.f32 %v8464_v21, %v1547_v33 }
 0x16f   : > { %v1961_v47 = vpop.f32.mrf.mxu0  ;;  %v6860_v61 = vpop.f32.mrf.mxu1 }
 0x170   : > { %v2072_v62 = vadd.f32 %v1961_v47, %v1805_v12  ;;  %v8601_v43 = vadd.f32 %v6857_v9, %v2073_v25  ;;  %v1103_v9 = vadd.f32 %v8286_v14, %v8296_v32 }
 0x171   : > { %v6810_v0 = vpop.f32.mrf.mxu0  ;;  %v2237_v28 = vpop.f32.mrf.mxu1 }
 0x172   : > { %v2075_v11 = vadd.f32 %v6810_v0, %v8460_v54  ;;  %v8607_v37 = vadd.f32 %v2227_v35, %v2072_v62  ;;  %v10938_v35 = vld [vmem:[#allocation12_spill] sm:$0xff]  ;;  %v1551_v21 = vadd.f32 %v8491_v56, %v1103_v9 }
 0x173   : > { %v1971_v23 = vpop.f32.mrf.mxu0  ;;  %v6863_v13 = vpop.f32.mrf.mxu1  ;;  %v1811_v12 = vadd.f32 %v10938_v35, %v1549_v1 }
 0x174   : > { %v2074_v46 = vadd.f32 %v1971_v23, %v1807_v17  ;;  %v8611_v2 = vadd.f32 %v6860_v61, %v2075_v11  ;;  %v10939_v61 = vld [vmem:[#allocation8_spill] sm:$0xff]  ;;  %v10941_v17 = vld [vmem:[#allocation13_spill] sm:$0xff] }
 0x175   : > { %v6813_v22 = vpop.f32.mrf.mxu0  ;;  %v2247_v53 = vpop.f32.mrf.mxu1  ;;  %v1113_v62 = vadd.f32 %v10940_v34, %v10939_v61  ;;  %v1813_v33 = vadd.f32 %v10941_v17, %v1551_v21 }
 0x176   : > { %v2077_v6 = vadd.f32 %v6813_v22, %v8471_v40  ;;  %v8616_v63 = vadd.f32 %v2237_v28, %v2074_v46  ;;  %v10943_v46 = vld [vmem:[#allocation9_spill] sm:$0xff] }
 0x177   : > { %v1981_v54 = vpop.f32.mrf.mxu0  ;;  %v6866_v44 = vpop.f32.mrf.mxu1  ;;  %v1553_v11 = vadd.f32 %v8502_v24, %v1113_v62  ;;  %v1123_v22 = vadd.f32 %v10943_v46, %v10942_v38 }
 0x178   : > { %v2076_v16 = vadd.f32 %v1981_v54, %v1809_v48  ;;  %v8620_v39 = vadd.f32 %v6863_v13, %v2077_v6  ;;  %v10944_v54 = vld [vmem:[#allocation15_spill] sm:$0xff] }
 0x179   : > { %v6816_v60 = vpop.f32.mrf.mxu0  ;;  %v2257_v58 = vpop.f32.mrf.mxu1  ;;  %v1555_v9 = vadd.f32 %v8513_v8, %v1123_v22 }
 0x17a   : > { %v2079_v30 = vadd.f32 %v6816_v60, %v8482_v15  ;;  %v8625_v25 = vadd.f32 %v2247_v53, %v2076_v16 }
 0x17b   : > { %v1991_v40 = vpop.f32.mrf.mxu0  ;;  %v6869_v47 = vpop.f32.mrf.mxu1 }
 0x17c   : > { %v2078_v0 = vadd.f32 %v1991_v40, %v1811_v12  ;;  %v8629_v14 = vadd.f32 %v6866_v44, %v2079_v30  ;;  %v1815_v44 = vadd.f32 %v10944_v54, %v1553_v11  ;;  %v10945_v30 = vld [vmem:[#allocation16_spill] sm:$0xff] }
 0x17d   : > { %v6819_v32 = vpop.f32.mrf.mxu0  ;;  %v2267_v28 = vpop.f32.mrf.mxu1  ;;  %v1817_v40 = vadd.f32 %v10945_v30, %v1555_v9 }
 0x17e   : > { %v2081_v56 = vadd.f32 %v6819_v32, %v8493_v59  ;;  %v8634_v23 = vadd.f32 %v2257_v58, %v2078_v0 }
 0x17f   : > { %v2001_v15 = vpop.f32.mrf.mxu0  ;;  %v6872_v13 = vpop.f32.mrf.mxu1 }
 0x180   : > { %v2080_v53 = vadd.f32 %v2001_v15, %v1813_v33  ;;  %v8638_v48 = vadd.f32 %v6869_v47, %v2081_v56 }
 0x181   : > { %v6822_v1 = vpop.f32.mrf.mxu0  ;;  %v2277_v6 = vpop.f32.mrf.mxu1 }
 0x182   : > { %v2083_v24 = vadd.f32 %v6822_v1, %v8504_v42  ;;  %v8643_v16 = vadd.f32 %v2267_v28, %v2080_v53 }
 0x183   : > { %v2011_v59 = vpop.f32.mrf.mxu0  ;;  %v6875_v60 = vpop.f32.mrf.mxu1 }
 0x184   : > { %v2082_v58 = vadd.f32 %v2011_v59, %v1815_v44  ;;  %v8645_v35 = vadd.f32 %v6872_v13, %v2083_v24 }
 0x185   : > { %v6825_v12 = vpop.f32.mrf.mxu0  ;;  %v2287_v21 = vpop.f32.mrf.mxu1 }
 0x186   : > { %v2085_v47 = vadd.f32 %v6825_v12, %v8515_v49  ;;  %v8649_v61 = vadd.f32 %v2277_v6, %v2082_v58 }
 0x187   : > { %v2021_v34 = vpop.f32.mrf.mxu0  ;;  %v6878_v62 = vpop.f32.mrf.mxu1 }
 0x188   : > { %v2084_v8 = vadd.f32 %v2021_v34, %v1817_v40  ;;  %v8651_v0 = vadd.f32 %v6875_v60, %v2085_v47 }
 0x189   : > { %v6828_v42 = vpop.f32.mrf.mxu0  ;;  %v2297_v32 = vpop.f32.mrf.mxu1 }
 0x18a   : > { %v2087_v28 = vadd.f32 %v6828_v42, %v8524_v31  ;;  %v8654_v17 = vadd.f32 %v2287_v21, %v2084_v8 }
 0x18b   : > { %v2031_v33 = vpop.f32.mrf.mxu0  ;;  %v6881_v11 = vpop.f32.mrf.mxu1 }
 0x18c   : > { %v2086_v56 = vadd.f32 %v2031_v33, %v8531_v41  ;;  %v8657_v15 = vadd.f32 %v6878_v62, %v2087_v28 }
 0x18d   : > { %v6831_v49 = vpop.f32.mrf.mxu0  ;;  %v2307_v13 = vpop.f32.mrf.mxu1 }
 0x18e   : > { %v2089_v38 = vadd.f32 %v6831_v49, %v8535_v50  ;;  %v8660_v46 = vadd.f32 %v2297_v32, %v2086_v56 }
 0x18f   : > { %v2041_v22 = vpop.f32.mrf.mxu0  ;;  %v6884_v53 = vpop.f32.mrf.mxu1 }
 0x190   : > { %v2088_v1 = vadd.f32 %v2041_v22, %v8542_v7  ;;  %v8663_v6 = vadd.f32 %v6881_v11, %v2089_v38 }
 0x191   : > { %v6834_v31 = vpop.f32.mrf.mxu0  ;;  %v2317_v54 = vpop.f32.mrf.mxu1 }
 0x192   : > { %v2091_v44 = vadd.f32 %v6834_v31, %v8544_v5  ;;  %v8666_v9 = vadd.f32 %v2307_v13, %v2088_v1 }
 0x193   : > { %v2051_v41 = vpop.f32.mrf.mxu0  ;;  %v8668_v24 = vpop.f32.mrf.mxu1 }
 0x194   : > { %v2090_v59 = vadd.f32 %v2051_v41, %v8550_v20  ;;  %v8671_v50 = vadd.f32 %v6884_v53, %v2091_v44 }
 0x195   : > { %v6889_v60 = vpop.f32.mrf.mxu0  ;;  %v8673_v58 = vpop.f32.mrf.mxu1 }
 0x196   : > { %v8675_v12 = vadd.f32 %v2317_v54, %v2090_v59  ;;  %v8678_v7 = vadd.f32 %v6889_v60, %v8557_v26 }
 0x197   : > { %v8680_v21 = vpop.f32.mrf.mxu0  ;;  %v8682_v5 = vpop.f32.mrf.mxu1 }
 0x199   : > { %v8684_v30 = vpop.f32.mrf.mxu0  ;;  %v8686_v40 = vpop.f32.mrf.mxu1 }
 0x19b   : > { %v8688_v47 = vpop.f32.mrf.mxu0  ;;  %v8690_v20 = vpop.f32.mrf.mxu1 }
 0x19d   : > { %v6895_v34 = vpop.f32.mrf.mxu0  ;;  %v8692_v62 = vpop.f32.mrf.mxu1 }
 0x19e   : > { %v8695_v8 = vadd.f32 %v6895_v34, %v8571_v57 }
 0x19f   : > { %v2444_v26 = vpop.f32.mrf.mxu0  ;;  %v8697_v42 = vpop.f32.mrf.mxu1 }
 0x1a0   : > { %v8700_v32 = vadd.f32 %v2444_v26, %v8576_v18 }
 0x1a1   : > { %v6898_v28 = vpop.f32.mrf.mxu0  ;;  %v8702_v33 = vpop.f32.mrf.mxu1 }
 0x1a2   : > { %v8705_v11 = vadd.f32 %v6898_v28, %v8578_v51 }
 0x1a3   : > { %v2454_v56 = vpop.f32.mrf.mxu0  ;;  %v8707_v49 = vpop.f32.mrf.mxu1 }
 0x1a4   : > { %v8710_v13 = vadd.f32 %v2454_v56, %v8583_v27 }
 0x1a5   : > { %v6901_v57 = vpop.f32.mrf.mxu0  ;;  %v8712_v38 = vpop.f32.mrf.mxu1 }
 0x1a6   : > { %v8715_v22 = vadd.f32 %v6901_v57, %v8585_v55  ;;  %v7164_v55 = vmov -inf  }
 0x1a7   : > { %v2464_v18 = vpop.f32.mrf.mxu0  ;;  %v8717_v53 = vpop.f32.mrf.mxu1  ;;  %v8732_v59 = vrot.slane %v7164_v55, 7 }
 0x1a8   : > { %v8720_v1 = vadd.f32 %v2464_v18, %v8590_v45 }
 0x1a9   : > { %v6904_v51 = vpop.f32.mrf.mxu0  ;;  %v8722_v31 = vpop.f32.mrf.mxu1  ;;  %v8746_v56 = vsel %vm342_vm0, -inf, %v8732_v59  ;;  %v3402_v55 = vrot.slane %v8732_v59, 1 }
 0x1aa   : > { %v8725_v54 = vadd.f32 %v6904_v51, %v8592_v3  ;;  %10948 = vst [vmem:[#allocation22_spill] sm:$0xff] %v8746_v56 }
 0x1ab   : > { %v2474_v27 = vpop.f32.mrf.mxu0  ;;  %v8727_v44 = vpop.f32.mrf.mxu1 }
 0x1ac   : > { %v8730_v41 = vadd.f32 %v2474_v27, %v8597_v29 }
 0x1ad   : > { %v6907_v60 = vpop.f32.mrf.mxu0  ;;  %v8734_v34 = vpop.f32.mrf.mxu1 }
 0x1ae   : > { %10946 = vst [vmem:[#allocation19_spill] sm:$0xff] %v8734_v34  ;;  %v8737_v45 = vadd.f32 %v6907_v60, %v8601_v43  ;;  %v10795_v43 = vrot.slane %v8746_v56, 1 }
 0x1af   : > { %v2484_v26 = vpop.f32.mrf.mxu0  ;;  %v8739_v28 = vpop.f32.mrf.mxu1 }
 0x1b0   : > { %10947 = vst [vmem:[#allocation21_spill] sm:$0xff] %v8739_v28  ;;  %v8742_v3 = vadd.f32 %v2484_v26, %v8607_v37 }
 0x1b1   : > { %v6910_v29 = vpop.f32.mrf.mxu0  ;;  %v8748_v57 = vpop.f32.mrf.mxu1 }
 0x1b2   : > { %10949 = vst [vmem:[#allocation24_spill] sm:$0xff] %v8748_v57  ;;  %v8751_v18 = vadd.f32 %v6910_v29, %v8611_v2  ;;  %v3403_v2 = vsel %vm501_vm2, %v10795_v43, %v3402_v55 }
 0x1b3   : > { %v2494_v51 = vpop.f32.mrf.mxu0  ;;  %v8753_v27 = vpop.f32.mrf.mxu1  ;;  %v3520_v29 = vmax.f32 %v8746_v56, %v3403_v2  ;;  %v4411_v2 = vld [vmem:[%s10698_s3 + $0x230] sm:$0xff] }
 0x1b4   : > { %10950 = vst [vmem:[#allocation25_spill] sm:$0xff] %v8753_v27  ;;  %v8758_v37 = vadd.f32 %v2494_v51, %v8616_v63  ;;  %v3555_v27 = vrot.slane %v8732_v59, 2 }
 0x1b5   : > { %v6913_v60 = vpop.f32.mrf.mxu0  ;;  %v8760_v26 = vpop.f32.mrf.mxu1 }
 0x1b6   : > { %10951 = vst [vmem:[#allocation28_spill] sm:$0xff] %v8758_v37  ;;  %10952 = vst [vmem:[#allocation29_spill] sm:$0xff] %v8760_v26  ;;  %v8763_v28 = vadd.f32 %v6913_v60, %v8620_v39  ;;  %v8779_v39 = vsel %vm342_vm0, %v8732_v59, -inf  ;;  %v4412_v60 = vld [vmem:[%s10698_s3 + $0x238] sm:$0xff] }
 0x1b7   : > { %v2504_v57 = vpop.f32.mrf.mxu0  ;;  %v8765_v34 = vpop.f32.mrf.mxu1  ;;  %10957 = vst [vmem:[#allocation39_spill] sm:$0xff] %v8779_v39  ;;  %7035 = vmatprep.subr.mxu0 %v4412_v60 }
 0x1b8   : > { %10953 = vst [vmem:[#allocation32_spill] sm:$0xff] %v8763_v28  ;;  %10954 = vst [vmem:[#allocation33_spill] sm:$0xff] %v8765_v34  ;;  %v8773_v63 = vadd.f32 %v2504_v57, %v8625_v25  ;;  %v10960_v57 = vrot.slane %v8746_v56, 2  ;;  %7036 = vmatpush3.msra.mxu0 %v4412_v60 }
 0x1b9   : > { %v6916_v51 = vpop.f32.mrf.mxu0  ;;  %v8775_v37 = vpop.f32.mrf.mxu1  ;;  %7037 = vmatprep.subr.mxu0 %v4411_v2 }
 0x1ba   : > { %10955 = vst [vmem:[#allocation36_spill] sm:$0xff] %v8773_v63  ;;  %10956 = vst [vmem:[#allocation38_spill] sm:$0xff] %v8775_v37  ;;  %v8785_v43 = vadd.f32 %v6916_v51, %v8629_v14  ;;  %v3556_v37 = vsel %vm1161_vm3, %v10960_v57, %v3555_v27  ;;  %v10796_v63 = vrot.slane %v8779_v39, 1  ;;  %7038 = vmatpush3.msra.mxu0 %v4411_v2 }
 0x1bb   : > { %v2514_v34 = vpop.f32.mrf.mxu0  ;;  %v8788_v25 = vpop.f32.mrf.mxu1  ;;  %v3673_v51 = vmax.f32 %v3520_v29, %v3556_v37 }
 0x1bc   : > { %10958 = vst [vmem:[#allocation41_spill] sm:$0xff] %v8785_v43  ;;  %10959 = vst [vmem:[#allocation42_spill] sm:$0xff] %v8788_v25  ;;  %v8794_v26 = vadd.f32 %v2514_v34, %v8634_v23  ;;  %v3405_v23 = vsel %vm501_vm2, %v3402_v55, %v10796_v63  ;;  %v10801_v34 = vrot.slane %v8779_v39, 2 }
 0x1bd   : > { %v6919_v28 = vpop.f32.mrf.mxu0  ;;  %v8803_v43 = vpop.f32.mrf.mxu1  ;;  %v3724_v29 = vrot.slane %v3673_v51, 1  ;;  %v3521_v57 = vmax.f32 %v8732_v59, %v3405_v23 }
 0x1be   : > { %v8798_v14 = vadd.f32 %v6919_v28, %v8638_v48  ;;  %v4410_v48 = vld [vmem:[%s10698_s3 + $0x228] sm:$0xff] }
 0x1bf   : > { %v2524_v25 = vpop.f32.mrf.mxu0  ;;  %7039 = vmatprep.subr.mxu0 %v4410_v48  ;;  %v8821_v55 = vpop.f32.mrf.mxu1  ;;  %v3979_v56 = vsel %vm342_vm0, %v3673_v51, %v3724_v29 }
 0x1c0   : > { %v8806_v60 = vadd.f32 %v2524_v25, %v8643_v16  ;;  %7040 = vmatpush3.msra.mxu0 %v4410_v48  ;;  %v4409_v16 = vld [vmem:[%s10698_s3 + $0x220] sm:$0xff]  ;;  %10961 = vst [vmem:[#allocation11_spill] sm:$0xff] %v8821_v55  ;;  %v3758_v48 = vrot.slane %v3673_v51, 2 }
 0x1c1   : > { %v6922_v28 = vpop.f32.mrf.mxu0  ;;  %7041 = vmatprep.subr.mxu0 %v4409_v16  ;;  %v8834_v55 = vpop.f32.mrf.mxu1 }
 0x1c2   : > { %v8816_v37 = vadd.f32 %v6922_v28, %v8645_v35  ;;  %v3558_v35 = vsel %vm1161_vm3, %v3555_v27, %v10801_v34  ;;  %7042 = vmatpush3.msra.mxu0 %v4409_v16  ;;  %v3997_v27 = vsel %vm3996_vm4, %v3979_v56, %v3758_v48 }
 0x1c3   : > { %v2534_v25 = vpop.f32.mrf.mxu0  ;;  %v8836_v23 = vmax.f32 %v3521_v57, %v3558_v35  ;;  %v8848_v29 = vpop.f32.mrf.mxu1 }
 0x1c4   : > { %v8825_v2 = vadd.f32 %v2534_v25, %v8649_v61  ;;  %v3792_v25 = vrot.slane %v3673_v51, 3 }
 0x1c5   : > { %v6925_v28 = vpop.f32.mrf.mxu0  ;;  %v3843_v35 = vrot.slane %v8836_v23, 4  ;;  %v3877_v48 = vrot.slane %v8836_v23, 5 }
 0x1c6   : > { %v8831_v63 = vadd.f32 %v6925_v28, %v8651_v0  ;;  %v4408_v0 = vld [vmem:[%s10698_s3 + $0x218] sm:$0xff]  ;;  %v4015_v51 = vsel %vm4014_vm5, %v3997_v27, %v3792_v25  ;;  %v2326_v28 = vadd.f32 %v8546_v52, %v8555_v4  ;;  %v8868_v27 = vpop.f32.mrf.mxu1 }
 0x1c7   : > { %v2544_v59 = vpop.f32.mrf.mxu0  ;;  %7043 = vmatprep.subr.mxu0 %v4408_v0  ;;  %v4033_v52 = vsel %vm4032_vm6, %v4015_v51, %v3843_v35 }
 0x1c8   : > { %v8839_v61 = vadd.f32 %v2544_v59, %v8654_v17  ;;  %7044 = vmatpush3.msra.mxu0 %v4408_v0  ;;  %v10962_v59 = vld [vmem:[#allocation18_spill] sm:$0xff]  ;;  %v6978_v51 = vpop.f32.mrf.mxu1 }
 0x1c9   : > { %v6928_v39 = vpop.f32.mrf.mxu0  ;;  %v2328_v25 = vadd.f32 %v10962_v59, %v8566_v19  ;;  %v2845_v59 = vadd.f32 %v8690_v20, %v8695_v8  ;;  %v8919_v20 = vadd.f32 %v8707_v49, %v8715_v22  ;;  %v8923_v8 = vadd.f32 %v8712_v38, %v8720_v1 }
 0x1ca   : > { %v8846_v16 = vadd.f32 %v6928_v39, %v8657_v15  ;;  %v2329_v15 = vadd.f32 %v8553_v36, %v8564_v10  ;;  %v2583_v36 = vadd.f32 %v8680_v21, %v2326_v28  ;;  %v4051_v21 = vsel %vm4050_vm7, %v4033_v52, %v3877_v48  ;;  %v10969_v52 = vld [vmem:[#allocation4_spill] sm:$0xff] }
 0x1cb   : > { %v2554_v57 = vpop.f32.mrf.mxu0  ;;  %v2585_v19 = vadd.f32 %v8688_v47, %v2328_v25  ;;  %v3945_v48 = vrot.slane %v8836_v23, 7  ;;  %v10968_v25 = vld [vmem:[#allocation25_spill] sm:$0xff] }
 0x1cc   : > { %v8852_v17 = vadd.f32 %v2554_v57, %v8660_v46  ;;  %v4407_v46 = vld [vmem:[%s10698_s3 + $0x210] sm:$0xff]  ;;  %v2586_v4 = vadd.f32 %v8684_v30, %v2329_v15  ;;  %v2841_v30 = vadd.f32 %v8668_v24, %v8678_v7  ;;  %v2840_v47 = vadd.f32 %v8673_v58, %v2583_v36  ;;  %v8906_v58 = vld [vmem:[%s10697_s2] ss:$0 sm:$0xff] }
 0x1cd   : > { %v6931_v56 = vpop.f32.mrf.mxu0  ;;  %7045 = vmatprep.subr.mxu0 %v4407_v46  ;;  %v8901_v24 = vadd.f32 %v8692_v62, %v8700_v32  ;;  %v8927_v32 = vadd.f32 %v8717_v53, %v8725_v54  ;;  %v10970_v36 = vrot.slane %v10969_v52, 1 }
 0x1ce   : > { %v8860_v39 = vadd.f32 %v6931_v56, %v8663_v6  ;;  %7046 = vmatpush3.msra.mxu0 %v4407_v46  ;;  %v4406_v6 = vld [vmem:[%s10698_s3 + $0x208] sm:$0xff]  ;;  %v3911_v56 = vrot.slane %v8836_v23, 6  ;;  %v2843_v15 = vadd.f32 %v8682_v5, %v2586_v4  ;;  %v2842_v46 = vadd.f32 %v8686_v40, %v2585_v19  ;;  %v10967_v23 = vld [vmem:[#allocation32_spill] sm:$0xff] }
 0x1cf   : > { %v2564_v0 = vpop.f32.mrf.mxu0  ;;  %7047 = vmatprep.subr.mxu0 %v4406_v6  ;;  %v8911_v5 = vadd.f32 %v8697_v42, %v8705_v11  ;;  %v8915_v40 = vadd.f32 %v8702_v33, %v8710_v13  ;;  %v8931_v42 = vadd.f32 %v8722_v31, %v8730_v41  ;;  %v8935_v33 = vadd.f32 %v8727_v44, %v8737_v45  ;;  %v8937_v11 = vpop.f32.mrf.mxu1  ;;  %v10963_v13 = vld [vmem:[#allocation19_spill] sm:$0xff]  ;;  %v10964_v31 = vld [vmem:[#allocation21_spill] sm:$0xff]  ;;  %v10965_v41 = vld [vmem:[#allocation28_spill] sm:$0xff] }
 0x1d0   : > { %v8874_v10 = vadd.f32 %v2564_v0, %v8666_v9  ;;  %7048 = vmatpush3.msra.mxu0 %v4406_v6  ;;  %v4405_v9 = vld [vmem:[%s10698_s3 + $0x200] sm:$0xff]  ;;  %v8941_v22 = vadd.f32 %v10963_v13, %v8742_v3  ;;  %v8949_v54 = vadd.f32 %v10964_v31, %v8751_v18  ;;  %v10966_v44 = vld [vmem:[#allocation24_spill] sm:$0xff]  ;;  %v8957_v0 = vadd.f32 %v10968_v25, %v10967_v23  ;;  %v10971_v4 = vld [vmem:[#allocation3_spill] sm:$0xff] }
 0x1d1   : > { %v6934_v57 = vpop.f32.mrf.mxu0  ;;  %7049 = vmatprep.subr.mxu0 %v4405_v9  ;;  %v8953_v45 = vadd.f32 %v10966_v44, %v10965_v41  ;;  %v10972_v6 = vrot.slane %v10971_v4, 1  ;;  %v8985_v13 = vadd.f32 %v8803_v43, %v8806_v60  ;;  %v10979_v23 = vld [vmem:[#allocation11_spill] sm:$0xff]  ;;  %v9002_v43 = vadd.f32 %v8868_v27, %v8839_v61 }
 0x1d2   : > { %v8882_v35 = vadd.f32 %v6934_v57, %v8671_v50  ;;  %7050 = vmatpush3.msra.mxu0 %v4405_v9  ;;  %v10973_v57 = vld [vmem:[#allocation36_spill] sm:$0xff]  ;;  %v8990_v25 = vadd.f32 %v10979_v23, %v8816_v37 }
 0x1d3   : > { %v2574_v28 = vpop.f32.mrf.mxu0  ;;  %v8964_v19 = vsel %vm501_vm2, %v10972_v6, %v10970_v36  ;;  %v9007_v6 = vadd.f32 %v6978_v51, %v8846_v16 }
 0x1d4   : > { %v8893_v50 = vadd.f32 %v2574_v28, %v8675_v12  ;;  %v4068_v12 = vsel %vm1161_vm3, %v4051_v21, %v3911_v56  ;;  %v10974_v56 = vld [vmem:[#allocation29_spill] sm:$0xff] }
 0x1d5   : > { %v6989_v7 = vpop.f32.mrf.mxu0  ;;  %v8945_v53 = vsel %vm501_vm2, %v4068_v12, %v3945_v48  ;;  %v8968_v18 = vadd.f32 %v10974_v56, %v10973_v57  ;;  %v10975_v28 = vld [vmem:[#allocation41_spill] sm:$0xff] }
 0x1d6   : > { %v3098_v62 = vadd.f32 %v6989_v7, %v2841_v30  ;;  %v10977_v7 = vld [vmem:[#allocation38_spill] sm:$0xff] }
 0x1d7   : > { %v2938_v49 = vpop.f32.mrf.mxu0  ;;  %v8977_v12 = vadd.f32 %v10977_v7, %v8794_v26  ;;  %v8994_v26 = vadd.f32 %v8834_v55, %v8825_v2 }
 0x1d8   : > { %v3137_v38 = vadd.f32 %v8906_v58, %v3098_v62  ;;  %v3097_v1 = vadd.f32 %v2938_v49, %v2840_v47  ;;  %v10976_v47 = vld [vmem:[#allocation33_spill] sm:$0xff]  ;;  %v10978_v62 = vld [vmem:[#allocation42_spill] sm:$0xff] }
 0x1d9   : > { %v6992_v3 = vpop.f32.mrf.mxu0  ;;  %v8973_v48 = vadd.f32 %v10976_v47, %v10975_v28  ;;  %v8981_v49 = vadd.f32 %v10978_v62, %v8798_v14  ;;  %v8998_v14 = vadd.f32 %v8848_v29, %v8831_v63 }
 0x1da   : > { %v3169_v21 = vmax.f32 %v3137_v38, 0.0  ;;  %v3136_v9 = vadd.f32 %v8906_v58, %v3097_v1  ;;  %v3100_v30 = vadd.f32 %v6992_v3, %v2843_v15  ;;  %v6981_v38 = vpop.f32.mrf.mxu1 }
 0x1db   : > { %v2948_v31 = vpop.f32.mrf.mxu0 }
 0x1dc   : > { %v3236_v1 = vrot.slane %v3169_v21, 7  ;;  %v3168_v15 = vmax.f32 %v3136_v9, 0.0  ;;  %v3139_v41 = vadd.f32 %v8906_v58, %v3100_v30  ;;  %v3099_v44 = vadd.f32 %v2948_v31, %v2842_v46  ;;  %v2821_v55 = vpop.f32.mrf.mxu1 }
 0x1dd   : > { %v6995_v60 = vpop.f32.mrf.mxu0 }
 0x1de   : > { %v3351_v3 = vsel %vm342_vm0, %v3236_v1, -inf  ;;  %v3235_v46 = vrot.slane %v3168_v15, 7  ;;  %v3171_v36 = vmax.f32 %v3139_v41, 0.0  ;;  %v3138_v37 = vadd.f32 %v8906_v58, %v3099_v44 }
 0x1df   : > { %v3409_v2 = vrot.slane %v3351_v3, 1  ;;  %v3562_v57 = vrot.slane %v3351_v3, 2  ;;  %v3102_v56 = vadd.f32 %v6995_v60, %v2845_v59  ;;  %v2958_v63 = vpop.f32.mrf.mxu0  ;;  %v6984_v59 = vpop.f32.mrf.mxu1 }
 0x1e0   : > { %v3237_v29 = vsel %vm342_vm0, %v3235_v46, %v3236_v1  ;;  %v3334_v61 = vsel %vm342_vm0, -inf, %v3235_v46  ;;  %v3239_v27 = vrot.slane %v3171_v36, 7  ;;  %v3170_v21 = vmax.f32 %v3138_v37, 0.0 }
 0x1e1   : > { %v3406_v9 = vrot.slane %v3334_v61, 1  ;;  %v3407_v30 = vrot.slane %v3237_v29, 1  ;;  %v3559_v28 = vrot.slane %v3334_v61, 2  ;;  %v3560_v47 = vrot.slane %v3237_v29, 2  ;;  %v6998_v7 = vpop.f32.mrf.mxu0 }
 0x1e2   : > { %v3352_v62 = vsel %vm342_vm0, %v3239_v27, -inf  ;;  %v3238_v16 = vrot.slane %v3170_v21, 7  ;;  %v3141_v51 = vadd.f32 %v8906_v58, %v3102_v56  ;;  %v3101_v31 = vadd.f32 %v2958_v63, %v8901_v24 }
 0x1e3   : > { %v3408_v15 = vsel %vm501_vm2, %v3406_v9, %v3407_v30  ;;  %v3410_v1 = vsel %vm501_vm2, %v3407_v30, %v3409_v2  ;;  %v3561_v41 = vsel %vm1161_vm3, %v3559_v28, %v3560_v47  ;;  %v3563_v44 = vsel %vm1161_vm3, %v3560_v47, %v3562_v57  ;;  %v2968_v23 = vpop.f32.mrf.mxu0  ;;  %v2831_v57 = vpop.f32.mrf.mxu1 }
 0x1e4   : > { %v3522_v60 = vmax.f32 %v3334_v61, %v3408_v15  ;;  %v3523_v3 = vmax.f32 %v3237_v29, %v3410_v1  ;;  %v3414_v46 = vrot.slane %v3352_v62, 1  ;;  %v3567_v36 = vrot.slane %v3352_v62, 2 }
 0x1e5   : > { %v3240_v37 = vsel %vm342_vm0, %v3238_v16, %v3239_v27  ;;  %v3335_v56 = vsel %vm342_vm0, -inf, %v3238_v16  ;;  %v3173_v21 = vmax.f32 %v3141_v51, 0.0  ;;  %v3140_v24 = vadd.f32 %v8906_v58, %v3101_v31  ;;  %v7001_v28 = vpop.f32.mrf.mxu0 }
 0x1e6   : > { %v9021_v63 = vmax.f32 %v3522_v60, %v3561_v41  ;;  %v9023_v9 = vmax.f32 %v3523_v3, %v3563_v44  ;;  %v3411_v2 = vrot.slane %v3335_v56, 1  ;;  %v3412_v30 = vrot.slane %v3240_v37, 1 }
 0x1e7   : > { %v3564_v47 = vrot.slane %v3335_v56, 2  ;;  %v3565_v61 = vrot.slane %v3240_v37, 2  ;;  %v3242_v29 = vrot.slane %v3173_v21, 7  ;;  %v3172_v15 = vmax.f32 %v3140_v24, 0.0 }
 0x1e8   : > { %v9027_v27 = vadd.f32 %v8937_v11, %v8852_v17  ;;  %v9030_v62 = vadd.f32 %v6981_v38, %v8860_v39  ;;  %v9033_v16 = vadd.f32 %v2821_v55, %v8874_v10  ;;  %v9036_v51 = vadd.f32 %v6984_v59, %v8882_v35  ;;  %v2978_v10 = vpop.f32.mrf.mxu0 }
 0x1e9   : > { %v3413_v31 = vsel %vm501_vm2, %v3411_v2, %v3412_v30  ;;  %v3415_v1 = vsel %vm501_vm2, %v3412_v30, %v3414_v46  ;;  %v3566_v41 = vsel %vm1161_vm3, %v3564_v47, %v3565_v61  ;;  %v3568_v44 = vsel %vm1161_vm3, %v3565_v61, %v3567_v36 }
 0x1ea   : > { %v9043_v17 = vadd.f32 %v2831_v57, %v8893_v50  ;;  %v3725_v39 = vrot.slane %v9021_v63, 1  ;;  %v3524_v11 = vmax.f32 %v3335_v56, %v3413_v31  ;;  %v3525_v38 = vmax.f32 %v3240_v37, %v3415_v1 }
 0x1eb   : > { %v3759_v55 = vrot.slane %v9021_v63, 2  ;;  %v3353_v59 = vsel %vm342_vm0, %v3242_v29, -inf  ;;  %v3241_v60 = vrot.slane %v3172_v15, 7  ;;  %v3104_v36 = vadd.f32 %v6998_v7, %v8911_v5  ;;  %v7004_v7 = vpop.f32.mrf.mxu0 }
 0x1ec   : > { %v9049_v3 = vmax.f32 %v3524_v11, %v3566_v41  ;;  %v9051_v46 = vmax.f32 %v3525_v38, %v3568_v44  ;;  %v3103_v50 = vadd.f32 %v2968_v23, %v8915_v40  ;;  %v3106_v56 = vadd.f32 %v7001_v28, %v8919_v20 }
 0x1ed   : > { %v3243_v21 = vsel %vm342_vm0, %v3241_v60, %v3242_v29  ;;  %v3336_v37 = vsel %vm342_vm0, -inf, %v3241_v60  ;;  %v3105_v24 = vadd.f32 %v2978_v10, %v8923_v8  ;;  %v3980_v30 = vsel %vm342_vm0, %v9021_v63, %v3725_v39 }
 0x1ee   : > { %v3419_v57 = vrot.slane %v3353_v59, 1  ;;  %v3416_v47 = vrot.slane %v3336_v37, 1  ;;  %v3417_v61 = vrot.slane %v3243_v21, 1  ;;  %v3569_v15 = vrot.slane %v3336_v37, 2 }
 0x1ef   : > { %v3570_v5 = vrot.slane %v3243_v21, 2  ;;  %v3143_v40 = vadd.f32 %v8906_v58, %v3104_v36  ;;  %v3572_v23 = vrot.slane %v3353_v59, 2  ;;  %v3142_v29 = vadd.f32 %v8906_v58, %v3103_v50  ;;  %v2988_v50 = vpop.f32.mrf.mxu0 }
 0x1f0   : > { %v3145_v20 = vadd.f32 %v8906_v58, %v3106_v56  ;;  %v3144_v8 = vadd.f32 %v8906_v58, %v3105_v24  ;;  %v3726_v28 = vrot.slane %v9049_v3, 1  ;;  %v3418_v31 = vsel %vm501_vm2, %v3416_v47, %v3417_v61 }
 0x1f1   : > { %v3420_v1 = vsel %vm501_vm2, %v3417_v61, %v3419_v57  ;;  %v3571_v41 = vsel %vm1161_vm3, %v3569_v15, %v3570_v5  ;;  %v3526_v44 = vmax.f32 %v3336_v37, %v3418_v31  ;;  %v3573_v11 = vsel %vm1161_vm3, %v3570_v5, %v3572_v23 }
 0x1f2   : > { %v3527_v39 = vmax.f32 %v3243_v21, %v3420_v1  ;;  %v3175_v38 = vmax.f32 %v3143_v40, 0.0  ;;  %v3174_v10 = vmax.f32 %v3142_v29, 0.0  ;;  %v3177_v59 = vmax.f32 %v3145_v20, 0.0 }
 0x1f3   : > { %v3176_v60 = vmax.f32 %v3144_v8, 0.0  ;;  %v3108_v36 = vadd.f32 %v7004_v7, %v8927_v32  ;;  %v9073_v56 = vsel %vm3996_vm4, %v3980_v30, %v3759_v55  ;;  %v9075_v24 = vmax.f32 %v3526_v44, %v3571_v41 }
 0x1f4   : > { %v9077_v47 = vmax.f32 %v3527_v39, %v3573_v11  ;;  %v3245_v57 = vrot.slane %v3175_v38, 7  ;;  %v3760_v37 = vrot.slane %v9049_v3, 2  ;;  %v3244_v61 = vrot.slane %v3174_v10, 7  ;;  %v7007_v11 = vpop.f32.mrf.mxu0 }
 0x1f5   : > { %v3248_v15 = vrot.slane %v3177_v59, 7  ;;  %v3981_v5 = vsel %vm342_vm0, %v9049_v3, %v3726_v28  ;;  %v3247_v40 = vrot.slane %v3176_v60, 7  ;;  %v3147_v32 = vadd.f32 %v8906_v58, %v3108_v36 }
 0x1f6   : > { %v3107_v55 = vadd.f32 %v2988_v50, %v8931_v42  ;;  %v3354_v30 = vsel %vm342_vm0, %v3245_v57, -inf  ;;  %v3246_v7 = vsel %vm342_vm0, %v3244_v61, %v3245_v57  ;;  %v3337_v23 = vsel %vm342_vm0, -inf, %v3244_v61 }
 0x1f7   : > { %v3355_v29 = vsel %vm342_vm0, %v3248_v15, -inf  ;;  %v3727_v20 = vrot.slane %v9075_v24, 1  ;;  %v3761_v8 = vrot.slane %v9075_v24, 2  ;;  %v3424_v31 = vrot.slane %v3354_v30, 1 }
 0x1f8   : > { %v3421_v1 = vrot.slane %v3337_v23, 1  ;;  %v3577_v28 = vrot.slane %v3354_v30, 2  ;;  %v3422_v41 = vrot.slane %v3246_v7, 1  ;;  %v3574_v44 = vrot.slane %v3337_v23, 2 }
 0x1f9   : > { %v3575_v39 = vrot.slane %v3246_v7, 2  ;;  %v3429_v42 = vrot.slane %v3355_v29, 1  ;;  %v3582_v38 = vrot.slane %v3355_v29, 2  ;;  %v3249_v10 = vsel %vm342_vm0, %v3247_v40, %v3248_v15  ;;  %v2998_v15 = vpop.f32.mrf.mxu0 }
 0x1fa   : > { %v3338_v59 = vsel %vm342_vm0, -inf, %v3247_v40  ;;  %v3423_v60 = vsel %vm501_vm2, %v3421_v1, %v3422_v41  ;;  %v3425_v36 = vsel %vm501_vm2, %v3422_v41, %v3424_v31  ;;  %v3427_v2 = vrot.slane %v3249_v10, 1 }
 0x1fb   : > { %v3576_v50 = vsel %vm1161_vm3, %v3574_v44, %v3575_v39  ;;  %v3578_v57 = vsel %vm1161_vm3, %v3575_v39, %v3577_v28  ;;  %v3528_v61 = vmax.f32 %v3337_v23, %v3423_v60  ;;  %v3529_v30 = vmax.f32 %v3246_v7, %v3425_v36 }
 0x1fc   : > { %v3426_v34 = vrot.slane %v3338_v59, 1  ;;  %v3579_v21 = vrot.slane %v3338_v59, 2  ;;  %v3580_v35 = vrot.slane %v3249_v10, 2  ;;  %v3179_v4 = vmax.f32 %v3147_v32, 0.0 }
 0x1fd   : > { %v3146_v29 = vadd.f32 %v8906_v58, %v3107_v55  ;;  %v9098_v52 = vmax.f32 %v3528_v61, %v3576_v50  ;;  %v9100_v40 = vmax.f32 %v3529_v30, %v3578_v57  ;;  %v3430_v1 = vsel %vm501_vm2, %v3427_v2, %v3429_v42 }
 0x1fe   : > { %v3428_v31 = vsel %vm501_vm2, %v3426_v34, %v3427_v2  ;;  %v3531_v28 = vmax.f32 %v3249_v10, %v3430_v1  ;;  %v3581_v7 = vsel %vm1161_vm3, %v3579_v21, %v3580_v35  ;;  %v3583_v23 = vsel %vm1161_vm3, %v3580_v35, %v3582_v38  ;;  %v7010_v21 = vpop.f32.mrf.mxu0 }
 0x1ff   : > { %v3530_v41 = vmax.f32 %v3338_v59, %v3428_v31  ;;  %v9107_v44 = vsel %vm3996_vm4, %v3981_v5, %v3760_v37  ;;  %v3982_v55 = vsel %vm342_vm0, %v9075_v24, %v3727_v20  ;;  %v3728_v39 = vrot.slane %v9098_v52, 1 }
 0x200   : > { %v3762_v34 = vrot.slane %v9098_v52, 2  ;;  %v9116_v2 = vmax.f32 %v3531_v28, %v3583_v23  ;;  %v3251_v42 = vrot.slane %v3179_v4, 7  ;;  %v3178_v37 = vmax.f32 %v3146_v29, 0.0  ;;  %v3008_v30 = vpop.f32.mrf.mxu0 }
 0x201   : > { %v9114_v60 = vmax.f32 %v3530_v41, %v3581_v7  ;;  %v3983_v35 = vsel %vm342_vm0, %v9098_v52, %v3728_v39  ;;  %v3110_v5 = vadd.f32 %v7007_v11, %v8935_v33  ;;  %v3109_v38 = vadd.f32 %v2998_v15, %v8941_v22 }
 0x202   : > { %v9124_v10 = vsel %vm3996_vm4, %v3982_v55, %v3761_v8  ;;  %v3356_v50 = vsel %vm342_vm0, %v3251_v42, -inf  ;;  %v3250_v57 = vrot.slane %v3178_v37, 7  ;;  %v9132_v33 = vsel %vm3996_vm4, %v3983_v35, %v3762_v34 }
 0x203   : > { %v3149_v61 = vadd.f32 %v8906_v58, %v3110_v5  ;;  %v3729_v22 = vrot.slane %v9114_v60, 1  ;;  %v3434_v11 = vrot.slane %v3356_v50, 1  ;;  %v3148_v8 = vadd.f32 %v8906_v58, %v3109_v38 }
 0x204   : > { %v3587_v29 = vrot.slane %v3356_v50, 2  ;;  %v3252_v15 = vsel %vm342_vm0, %v3250_v57, %v3251_v42  ;;  %v3339_v31 = vsel %vm342_vm0, -inf, %v3250_v57  ;;  %v3112_v34 = vadd.f32 %v7010_v21, %v8949_v54  ;;  %v7013_v50 = vpop.f32.mrf.mxu0 }
 0x205   : > { %v3181_v1 = vmax.f32 %v3149_v61, 0.0  ;;  %v3431_v41 = vrot.slane %v3339_v31, 1  ;;  %v3432_v28 = vrot.slane %v3252_v15, 1  ;;  %v3584_v7 = vrot.slane %v3339_v31, 2 }
 0x206   : > { %v3585_v23 = vrot.slane %v3252_v15, 2  ;;  %v3180_v39 = vmax.f32 %v3148_v8, 0.0  ;;  %v3111_v35 = vadd.f32 %v3008_v30, %v8953_v45  ;;  %v3151_v54 = vadd.f32 %v8906_v58, %v3112_v34 }
 0x207   : > { %v3254_v55 = vrot.slane %v3181_v1, 7  ;;  %v3433_v37 = vsel %vm501_vm2, %v3431_v41, %v3432_v28  ;;  %v3435_v5 = vsel %vm501_vm2, %v3432_v28, %v3434_v11 }
 0x208   : > { %v3586_v38 = vsel %vm1161_vm3, %v3584_v7, %v3585_v23  ;;  %v3588_v42 = vsel %vm1161_vm3, %v3585_v23, %v3587_v29  ;;  %v3532_v57 = vmax.f32 %v3339_v31, %v3433_v37  ;;  %v3533_v61 = vmax.f32 %v3252_v15, %v3435_v5  ;;  %v3018_v7 = vpop.f32.mrf.mxu0 }
 0x209   : > { %v3357_v4 = vsel %vm342_vm0, %v3254_v55, -inf  ;;  %v3253_v36 = vrot.slane %v3180_v39, 7  ;;  %v3150_v45 = vadd.f32 %v8906_v58, %v3111_v35  ;;  %v3763_v23 = vrot.slane %v9114_v60, 2 }
 0x20a   : > { %v3439_v1 = vrot.slane %v3357_v4, 1  ;;  %v3592_v8 = vrot.slane %v3357_v4, 2  ;;  %v9147_v21 = vmax.f32 %v3532_v57, %v3586_v38  ;;  %v9149_v30 = vmax.f32 %v3533_v61, %v3588_v42  ;;  %v7016_v20 = vpop.f32.mrf.mxu0 }
 0x20b   : > { %v3255_v11 = vsel %vm342_vm0, %v3253_v36, %v3254_v55  ;;  %v3340_v29 = vsel %vm342_vm0, -inf, %v3253_v36  ;;  %v3984_v4 = vsel %vm342_vm0, %v9114_v60, %v3729_v22  ;;  %v3183_v34 = vmax.f32 %v3151_v54, 0.0 }
 0x20c   : > { %v3436_v41 = vrot.slane %v3340_v29, 1  ;;  %v3437_v31 = vrot.slane %v3255_v11, 1  ;;  %v3589_v15 = vrot.slane %v3340_v29, 2  ;;  %v3590_v28 = vrot.slane %v3255_v11, 2 }
 0x20d   : > { %v3730_v39 = vrot.slane %v9147_v21, 1  ;;  %v3257_v57 = vrot.slane %v3183_v34, 7  ;;  %v3182_v59 = vmax.f32 %v3150_v45, 0.0  ;;  %v3114_v22 = vadd.f32 %v7013_v50, %v8957_v0 }
 0x20e   : > { %v3438_v35 = vsel %vm501_vm2, %v3436_v41, %v3437_v31  ;;  %v3440_v37 = vsel %vm501_vm2, %v3437_v31, %v3439_v1  ;;  %v3591_v55 = vsel %vm1161_vm3, %v3589_v15, %v3590_v28  ;;  %v3593_v36 = vsel %vm1161_vm3, %v3590_v28, %v3592_v8 }
 0x20f   : > { %v3534_v38 = vmax.f32 %v3340_v29, %v3438_v35  ;;  %v3535_v42 = vmax.f32 %v3255_v11, %v3440_v37  ;;  %v3113_v54 = vadd.f32 %v3018_v7, %v8968_v18  ;;  %v9166_v41 = vsel %vm3996_vm4, %v3984_v4, %v3763_v23  ;;  %v3028_v35 = vpop.f32.mrf.mxu0 }
 0x210   : > { %v3358_v8 = vsel %vm342_vm0, %v3257_v57, -inf  ;;  %v3764_v11 = vrot.slane %v9147_v21, 2  ;;  %v3985_v29 = vsel %vm342_vm0, %v9147_v21, %v3730_v39  ;;  %v3256_v45 = vrot.slane %v3182_v59, 7 }
 0x211   : > { %v9168_v1 = vmax.f32 %v3534_v38, %v3591_v55  ;;  %v9170_v31 = vmax.f32 %v3535_v42, %v3593_v36  ;;  %v3153_v0 = vadd.f32 %v8906_v58, %v3114_v22  ;;  %v3444_v50 = vrot.slane %v3358_v8, 1 }
 0x212   : > { %v3597_v15 = vrot.slane %v3358_v8, 2  ;;  %v3116_v28 = vadd.f32 %v7016_v20, %v8973_v48  ;;  %v3258_v7 = vsel %vm342_vm0, %v3256_v45, %v3257_v57  ;;  %v3341_v23 = vsel %vm342_vm0, -inf, %v3256_v45 }
 0x213   : > { %v3731_v18 = vrot.slane %v9168_v1, 1  ;;  %v3185_v4 = vmax.f32 %v3153_v0, 0.0  ;;  %v3152_v34 = vadd.f32 %v8906_v58, %v3113_v54  ;;  %v3765_v37 = vrot.slane %v9168_v1, 2 }
 0x214   : > { %v3441_v39 = vrot.slane %v3341_v23, 1  ;;  %v3442_v59 = vrot.slane %v3258_v7, 1  ;;  %v3594_v55 = vrot.slane %v3341_v23, 2  ;;  %v3595_v38 = vrot.slane %v3258_v7, 2 }
 0x215   : > { %v3986_v36 = vsel %vm342_vm0, %v9168_v1, %v3731_v18  ;;  %v3260_v42 = vrot.slane %v3185_v4, 7  ;;  %v3184_v22 = vmax.f32 %v3152_v34, 0.0  ;;  %v3155_v57 = vadd.f32 %v8906_v58, %v3116_v28 }
 0x216   : > { %v3443_v48 = vsel %vm501_vm2, %v3441_v39, %v3442_v59  ;;  %v3445_v20 = vsel %vm501_vm2, %v3442_v59, %v3444_v50  ;;  %v3115_v54 = vadd.f32 %v3028_v35, %v8977_v12  ;;  %v3596_v0 = vsel %vm1161_vm3, %v3594_v55, %v3595_v38 }
 0x217   : > { %v3536_v8 = vmax.f32 %v3341_v23, %v3443_v48  ;;  %v3537_v45 = vmax.f32 %v3258_v7, %v3445_v20  ;;  %v3598_v61 = vsel %vm1161_vm3, %v3595_v38, %v3597_v15  ;;  %v3359_v5 = vsel %vm342_vm0, %v3260_v42, -inf }
 0x218   : > { %v3259_v18 = vrot.slane %v3184_v22, 7  ;;  %v3187_v32 = vmax.f32 %v3155_v57, 0.0  ;;  %v3154_v4 = vadd.f32 %v8906_v58, %v3115_v54  ;;  %v9195_v50 = vsel %vm3996_vm4, %v3985_v29, %v3764_v11 }
 0x219   : > { %v9197_v28 = vmax.f32 %v3536_v8, %v3596_v0  ;;  %v9199_v12 = vmax.f32 %v3537_v45, %v3598_v61  ;;  %v9206_v55 = vsel %vm3996_vm4, %v3986_v36, %v3765_v37  ;;  %v3449_v38 = vrot.slane %v3359_v5, 1 }
 0x21a   : > { %v3261_v7 = vsel %vm342_vm0, %v3259_v18, %v3260_v42  ;;  %v3342_v23 = vsel %vm342_vm0, -inf, %v3259_v18  ;;  %v3263_v15 = vrot.slane %v3187_v32, 7  ;;  %v3186_v35 = vmax.f32 %v3154_v4, 0.0 }
 0x21b   : > { %v3732_v11 = vrot.slane %v9197_v28, 1  ;;  %v3446_v29 = vrot.slane %v3342_v23, 1  ;;  %v3447_v22 = vrot.slane %v3261_v7, 1  ;;  %v3599_v61 = vrot.slane %v3342_v23, 2 }
 0x21c   : > { %v3766_v48 = vrot.slane %v9197_v28, 2  ;;  %v3602_v42 = vrot.slane %v3359_v5, 2  ;;  %v3600_v20 = vrot.slane %v3261_v7, 2  ;;  %v3262_v57 = vrot.slane %v3186_v35, 7 }
 0x21d   : > { %v3448_v54 = vsel %vm501_vm2, %v3446_v29, %v3447_v22  ;;  %v3450_v8 = vsel %vm501_vm2, %v3447_v22, %v3449_v38  ;;  %v3360_v37 = vsel %vm342_vm0, %v3263_v15, -inf  ;;  %v3987_v5 = vsel %vm342_vm0, %v9197_v28, %v3732_v11  ;;  %v9221_v29 = vpop.f32.mrf.mxu0 }
 0x21e   : > { %v3538_v36 = vmax.f32 %v3342_v23, %v3448_v54  ;;  %v3539_v45 = vmax.f32 %v3261_v7, %v3450_v8  ;;  %v3601_v0 = vsel %vm1161_vm3, %v3599_v61, %v3600_v20  ;;  %v3603_v18 = vsel %vm1161_vm3, %v3600_v20, %v3602_v42  ;;  %v4355_v61 = vld [vmem:[%s10698_s3 + $0x70] sm:$0xff] }
 0x21f   : > { %v3264_v35 = vsel %vm342_vm0, %v3262_v57, %v3263_v15  ;;  %v3343_v32 = vsel %vm342_vm0, -inf, %v3262_v57  ;;  %v3454_v54 = vrot.slane %v3360_v37, 1  ;;  %v9227_v8 = vsel %vm3996_vm4, %v3987_v5, %v3766_v48  ;;  %v4372_v57 = vld [vmem:[%s10698_s3 + $0xf8] sm:$0xff]  ;;  %v9239_v5 = vpop.f32.mrf.mxu0 }
 0x220   : > { %v3691_v38 = vmax.f32 %v3538_v36, %v3601_v0  ;;  %v9223_v22 = vmax.f32 %v3539_v45, %v3603_v18  ;;  %v3451_v23 = vrot.slane %v3343_v32, 1  ;;  %v3452_v7 = vrot.slane %v3264_v35, 1  ;;  %10980 = vst [vmem:[#allocation14_spill] sm:$0xff] %v9227_v8  ;;  %v4356_v36 = vld [vmem:[%s10698_s3 + $0x78] sm:$0xff]  ;;  %6287 = vmatprep.subr.mxu1 %v4372_v57 }
 0x221   : > { %v3604_v42 = vrot.slane %v3343_v32, 2  ;;  %v3605_v20 = vrot.slane %v3264_v35, 2  ;;  %v3607_v15 = vrot.slane %v3360_v37, 2  ;;  %v3845_v48 = vrot.slane %v9051_v46, 4  ;;  %v4371_v37 = vld [vmem:[%s10698_s3 + $0xf0] sm:$0xff]  ;;  %6288 = vmatpush3.msra.mxu1 %v4356_v36 }
 0x222   : > { %v3733_v11 = vrot.slane %v3691_v38, 1  ;;  %v3767_v4 = vrot.slane %v3691_v38, 2  ;;  %v3453_v45 = vsel %vm501_vm2, %v3451_v23, %v3452_v7  ;;  %v3455_v0 = vsel %vm501_vm2, %v3452_v7, %v3454_v54  ;;  %v4370_v54 = vld [vmem:[%s10698_s3 + $0xe8] sm:$0xff]  ;;  %6289 = vmatprep.subr.mxu1 %v4371_v37 }
 0x223   : > { %v3606_v18 = vsel %vm1161_vm3, %v3604_v42, %v3605_v20  ;;  %v3540_v23 = vmax.f32 %v3343_v32, %v3453_v45  ;;  %v3541_v39 = vmax.f32 %v3264_v35, %v3455_v0  ;;  %v3608_v7 = vsel %vm1161_vm3, %v3605_v20, %v3607_v15  ;;  %v4354_v32 = vld [vmem:[%s10698_s3 + $0x68] sm:$0xff]  ;;  %6290 = vmatpush3.msra.mxu1 %v4355_v61  ;;  %v4353_v61 = vld [vmem:[%s10698_s3 + $0x60] sm:$0xff] }
 0x224   : > { %v3988_v59 = vsel %vm342_vm0, %v3691_v38, %v3733_v11  ;;  %v3801_v42 = vrot.slane %v3691_v38, 3  ;;  %v3878_v34 = vrot.slane %v9023_v9, 5  ;;  %v3879_v8 = vrot.slane %v9051_v46, 5  ;;  %6291 = vmatprep.subr.mxu1 %v4370_v54 }
 0x225   : > { %v4006_v57 = vsel %vm3996_vm4, %v3988_v59, %v3767_v4  ;;  %v3852_v35 = vrot.slane %v9223_v22, 4  ;;  %v9260_v11 = vmax.f32 %v3540_v23, %v3606_v18  ;;  %v9262_v15 = vmax.f32 %v3541_v39, %v3608_v7  ;;  %v4369_v59 = vld [vmem:[%s10698_s3 + $0xe0] sm:$0xff]  ;;  %v7022_v18 = vpop.f32.mrf.mxu0  ;;  %6292 = vmatpush3.msra.mxu1 %v4354_v32 }
 0x226   : > { %v3912_v4 = vrot.slane %v9023_v9, 6  ;;  %v3913_v38 = vrot.slane %v9051_v46, 6  ;;  %v10981_v36 = vrot.slane %v9021_v63, 3  ;;  %v10982_v0 = vrot.slane %v9049_v3, 3  ;;  %v4368_v3 = vld [vmem:[%s10698_s3 + $0xd8] sm:$0xff]  ;;  %6293 = vmatprep.subr.mxu1 %v4369_v59 }
 0x227   : > { %v9281_v37 = vsel %vm4014_vm5, %v4006_v57, %v3801_v42  ;;  %v3946_v23 = vrot.slane %v9023_v9, 7  ;;  %v3947_v63 = vrot.slane %v9051_v46, 7  ;;  %v10983_v7 = vrot.slane %v9023_v9, 4  ;;  %v4352_v46 = vld [vmem:[%s10698_s3 + $0x58] sm:$0xff]  ;;  %6294 = vmatpush3.msra.mxu1 %v4353_v61 }
 0x228   : > { %v4016_v45 = vsel %vm4014_vm5, %v9073_v56, %v10981_v36  ;;  %v4017_v39 = vsel %vm4014_vm5, %v9107_v44, %v10982_v0  ;;  %v3880_v56 = vrot.slane %v9077_v47, 5  ;;  %v3734_v44 = vrot.slane %v9260_v11, 1  ;;  %6295 = vmatprep.subr.mxu1 %v4368_v3 }
 0x229   : > { %v4034_v54 = vsel %vm4032_vm6, %v4016_v45, %v10983_v7  ;;  %v4035_v42 = vsel %vm4032_vm6, %v4017_v39, %v3845_v48  ;;  %v3914_v57 = vrot.slane %v9077_v47, 6  ;;  %v3768_v32 = vrot.slane %v9260_v11, 2  ;;  %v4367_v48 = vld [vmem:[%s10698_s3 + $0xd0] sm:$0xff]  ;;  %v3048_v7 = vpop.f32.mrf.mxu0  ;;  %6296 = vmatpush3.msra.mxu1 %v4352_v46 }
 0x22a   : > { %v4052_v36 = vsel %vm4050_vm7, %v4034_v54, %v3878_v34  ;;  %v4053_v0 = vsel %vm4050_vm7, %v4035_v42, %v3879_v8  ;;  %v10984_v20 = vrot.slane %v9075_v24, 3  ;;  %v3948_v39 = vrot.slane %v9077_v47, 7  ;;  %v4351_v24 = vld [vmem:[%s10698_s3 + $0x50] sm:$0xff]  ;;  %6297 = vmatprep.subr.mxu1 %v4367_v48 }
 0x22b   : > { %v4069_v59 = vsel %vm1161_vm3, %v4052_v36, %v3912_v4  ;;  %v4070_v45 = vsel %vm1161_vm3, %v4053_v0, %v3913_v38  ;;  %v10985_v34 = vrot.slane %v9077_v47, 4  ;;  %v3118_v38 = vadd.f32 %v9221_v29, %v8981_v49  ;;  %v4366_v47 = vld [vmem:[%s10698_s3 + $0xc8] sm:$0xff]  ;;  %6298 = vmatpush3.msra.mxu1 %v4351_v24  ;;  %v7025_v48 = vpop.f32.mrf.mxu0 }
 0x22c   : > { %v4018_v9 = vsel %vm4014_vm5, %v9124_v10, %v10984_v20  ;;  %v4086_v10 = vsel %vm501_vm2, %v4069_v59, %v3946_v23  ;;  %v9319_v20 = vsel %vm501_vm2, %v4070_v45, %v3947_v63  ;;  %v3117_v23 = vadd.f32 %v9239_v5, %v8985_v13  ;;  %v4365_v13 = vld [vmem:[%s10698_s3 + $0xc0] sm:$0xff]  ;;  %6299 = vmatprep.subr.mxu1 %v4366_v47  ;;  %v4364_v59 = vld [vmem:[%s10698_s3 + $0xb8] sm:$0xff] }
 0x22d   : > { %v4036_v8 = vsel %vm4032_vm6, %v4018_v9, %v10985_v34  ;;  %v4102_v61 = vmax.f32 %v8945_v53, %v4086_v10  ;;  %v3120_v63 = vadd.f32 %v7022_v18, %v8990_v25  ;;  %v3802_v49 = vrot.slane %v9260_v11, 3 }
 0x22e   : > { %v4054_v4 = vsel %vm4050_vm7, %v4036_v8, %v3880_v56  ;;  %v4350_v56 = vld [vmem:[%s10698_s3 + $0x48] sm:$0xff]  ;;  %v3157_v54 = vadd.f32 %v8906_v58, %v3118_v38  ;;  %v3119_v53 = vadd.f32 %v3048_v7, %v8994_v26  ;;  %v3156_v18 = vadd.f32 %v8906_v58, %v3117_v23  ;;  %v4349_v26 = vld [vmem:[%s10698_s3 + $0x40] sm:$0xff]  ;;  %v4363_v38 = vld [vmem:[%s10698_s3 + $0xb0] sm:$0xff] }
 0x22f   : > { %v4071_v3 = vsel %vm1161_vm3, %v4054_v4, %v3914_v57  ;;  %v9345_v25 = vmax.f32 %v4102_v61, %v9319_v20  ;;  %v3159_v42 = vadd.f32 %v8906_v58, %v3120_v63  ;;  %v3915_v36 = vrot.slane %v9100_v40, 6  ;;  %6300 = vmatpush3.msra.mxu1 %v4350_v56 }
 0x230   : > { %v9337_v29 = vsel %vm501_vm2, %v4071_v3, %v3948_v39  ;;  %v3189_v57 = vmax.f32 %v3157_v54, 0.0  ;;  %v3158_v46 = vadd.f32 %v8906_v58, %v3119_v53  ;;  %v10986_v0 = vrot.slane %v9098_v52, 3  ;;  %6301 = vmatprep.subr.mxu1 %v4365_v13  ;;  %v4348_v52 = vld [vmem:[%s10698_s3 + $0x38] sm:$0xff]  ;;  %v4362_v13 = vld [vmem:[%s10698_s3 + $0xa8] sm:$0xff] }
 0x231   : > { %v4103_v5 = vmax.f32 %v9319_v20, %v9337_v29  ;;  %v4126_v45 = vrot.slane %v9345_v25, 7  ;;  %v3188_v39 = vmax.f32 %v3156_v18, 0.0  ;;  %v3191_v34 = vmax.f32 %v3159_v42, 0.0  ;;  %6302 = vmatpush3.msra.mxu1 %v4349_v26  ;;  %v4358_v20 = vld [vmem:[%s10698_s3 + $0x88] sm:$0xff] }
 0x232   : > { %v4019_v9 = vsel %vm4014_vm5, %v9132_v33, %v10986_v0  ;;  %v10987_v8 = vrot.slane %v9100_v40, 4  ;;  %v3266_v33 = vrot.slane %v3189_v57, 7  ;;  %v3190_v7 = vmax.f32 %v3158_v46, 0.0  ;;  %6303 = vmatprep.subr.mxu1 %v4364_v59 }
 0x233   : > { %v3949_v24 = vrot.slane %v9100_v40, 7  ;;  %v10988_v10 = vrot.slane %v9100_v40, 5  ;;  %v9380_v47 = vsel %vm342_vm0, 0.0, %v4126_v45  ;;  %v3265_v61 = vrot.slane %v3188_v39, 7  ;;  %v4347_v40 = vld [vmem:[%s10698_s3 + $0x30] sm:$0xff]  ;;  %6304 = vmatpush3.msra.mxu1 %v4348_v52 }
 0x234   : > { %v4037_v58 = vsel %vm4032_vm6, %v4019_v9, %v10987_v8  ;;  %v3269_v3 = vrot.slane %v3191_v34, 7  ;;  %v9383_v23 = vadd.f32 %v7025_v48, %v8998_v14  ;;  %v7109_v63 = vpack.i.bf16 %v8964_v19, %v9380_v47  ;;  %6305 = vmatprep.subr.mxu1 %v4363_v38  ;;  %v4346_v19 = vld [vmem:[%s10698_s3 + $0x28] sm:$0xff]  ;;  %v4361_v9 = vld [vmem:[%s10698_s3 + $0xa0] sm:$0xff] }
 0x235   : > { %v4055_v4 = vsel %vm4050_vm7, %v4037_v58, %v10988_v10  ;;  %v3361_v56 = vsel %vm342_vm0, %v3266_v33, -inf  ;;  %v3268_v54 = vrot.slane %v3190_v7, 7  ;;  %v3267_v42 = vsel %vm342_vm0, %v3265_v61, %v3266_v33  ;;  %6306 = vmatpush3.msra.mxu1 %v4347_v40  ;;  %v4345_v8 = vld [vmem:[%s10698_s3 + $0x20] sm:$0xff]  ;;  %v4360_v10 = vld [vmem:[%s10698_s3 + $0x98] sm:$0xff] }
 0x236   : > { %v4072_v53 = vsel %vm1161_vm3, %v4055_v4, %v3915_v36  ;;  %v3459_v14 = vrot.slane %v3361_v56, 1  ;;  %v3612_v18 = vrot.slane %v3361_v56, 2  ;;  %v3344_v26 = vsel %vm342_vm0, -inf, %v3265_v61  ;;  %7110 = vrot.lane.b32.xlu0 %v7109_v63, %s7165_s26  ;;  %6307 = vmatprep.subr.mxu1 %v4362_v13  ;;  %v4359_v13 = vld [vmem:[%s10698_s3 + $0x90] sm:$0xff] }
 0x237   : > { %v3456_v57 = vrot.slane %v3344_v26, 1  ;;  %v3457_v46 = vrot.slane %v3267_v42, 1  ;;  %v3609_v36 = vrot.slane %v3344_v26, 2  ;;  %v3610_v0 = vrot.slane %v3267_v42, 2  ;;  %6308 = vmatpush3.msra.mxu1 %v4346_v19  ;;  %v4343_v19 = vld [vmem:[%s10698_s3 + $0x10] sm:$0xff] }
 0x238   : > { %v3362_v48 = vsel %vm342_vm0, %v3269_v3, -inf  ;;  %v3270_v59 = vsel %vm342_vm0, %v3268_v54, %v3269_v3  ;;  %v3345_v39 = vsel %vm342_vm0, -inf, %v3268_v54  ;;  %v9408_v34 = vsel %vm501_vm2, %v4072_v53, %v3949_v24  ;;  %6309 = vmatprep.subr.mxu1 %v4361_v9  ;;  %v4344_v3 = vld [vmem:[%s10698_s3 + $0x18] sm:$0xff]  ;;  %v3058_v53 = vpop.f32.mrf.mxu0  ;;  %v4342_v9 = vld [vmem:[%s10698_s3 + $0x8] sm:$0xff] }
 0x239   : > { %v3458_v58 = vsel %vm501_vm2, %v3456_v57, %v3457_v46  ;;  %v3460_v52 = vsel %vm501_vm2, %v3457_v46, %v3459_v14  ;;  %v3611_v33 = vsel %vm1161_vm3, %v3609_v36, %v3610_v0  ;;  %v3613_v7 = vsel %vm1161_vm3, %v3610_v0, %v3612_v18  ;;  %6310 = vmatpush3.msra.mxu1 %v4345_v8 }
 0x23a   : > { %v3542_v24 = vmax.f32 %v3344_v26, %v3458_v58  ;;  %v3543_v4 = vmax.f32 %v3267_v42, %v3460_v52  ;;  %v3464_v38 = vrot.slane %v3362_v48, 1  ;;  %v3617_v61 = vrot.slane %v3362_v48, 2  ;;  %6311 = vmatprep.subr.mxu1 %v4360_v10 }
 0x23b   : > { %v3461_v40 = vrot.slane %v3345_v39, 1  ;;  %v3462_v63 = vrot.slane %v3270_v59, 1  ;;  %v3614_v56 = vrot.slane %v3345_v39, 2  ;;  %v3615_v54 = vrot.slane %v3270_v59, 2  ;;  %6312 = vmatpush3.msra.mxu1 %v4344_v3 }
 0x23c   : > { %v9429_v14 = vsel %vm342_vm0, %v4126_v45, 0.0  ;;  %v3695_v18 = vmax.f32 %v3542_v24, %v3611_v33  ;;  %v9431_v42 = vmax.f32 %v3543_v4, %v3613_v7  ;;  %v4111_v26 = vmax.f32 %v4103_v5, %v9408_v34  ;;  %6313 = vmatprep.subr.mxu1 %v4359_v13  ;;  %v7028_v33 = vpop.f32.mrf.mxu0  ;;  %v4357_v7 = vld [vmem:[%s10698_s3 + $0x80] sm:$0xff] }
 0x23d   : > { %v3463_v57 = vsel %vm501_vm2, %v3461_v40, %v3462_v63  ;;  %v3465_v25 = vsel %vm501_vm2, %v3462_v63, %v3464_v38  ;;  %v3616_v45 = vsel %vm1161_vm3, %v3614_v56, %v3615_v54  ;;  %v3618_v46 = vsel %vm1161_vm3, %v3615_v54, %v3617_v61  ;;  %6314 = vmatpush3.msra.mxu1 %v4343_v19  ;;  %v4341_v4 = vld [vmem:[%s10698_s3] sm:$0xff] }
 0x23e   : > { %v3853_v29 = vrot.slane %v9262_v15, 4  ;;  %v3989_v5 = vsel %vm342_vm0, %v9260_v11, %v3734_v44  ;;  %v3735_v36 = vrot.slane %v3695_v18, 1  ;;  %v3769_v0 = vrot.slane %v3695_v18, 2  ;;  %6315 = vmatprep.subr.mxu1 %v4358_v20 }
 0x23f   : > { %v3544_v48 = vmax.f32 %v3345_v39, %v3463_v57  ;;  %v3545_v8 = vmax.f32 %v3270_v59, %v3465_v25  ;;  %v4127_v58 = vrot.slane %v4111_v26, 7  ;;  %v4173_v52 = vrot.slane %v9380_v47, 1  ;;  %v9465_v39 = vld [vmem:[%s10697_s2] ss:$0 sm:$0xff]  ;;  %6316 = vmatpush3.msra.mxu1 %v4342_v9 }
 0x240   : > { %v3887_v44 = vrot.slane %v9262_v15, 5  ;;  %v3990_v10 = vsel %vm342_vm0, %v3695_v18, %v3735_v36  ;;  %v4174_v24 = vrot.slane %v9429_v14, 1  ;;  %v3161_v59 = vadd.f32 %v9465_v39, %v9383_v23  ;;  %6317 = vmatprep.subr.mxu1 %v4357_v7 }
 0x241   : > { %v9472_v38 = vmax.f32 %v3544_v48, %v3616_v45  ;;  %v9474_v61 = vmax.f32 %v3545_v8, %v3618_v46  ;;  %v9477_v3 = vsel %vm342_vm0, 0.0, %v4127_v58  ;;  %v3121_v40 = vadd.f32 %v3058_v53, %v9002_v43  ;;  %v3068_v53 = vpop.f32.mrf.mxu0  ;;  %6318 = vmatpush3.msra.mxu1 %v4341_v4 }
 0x242   : > { %v9483_v63 = vsel %vm3996_vm4, %v3989_v5, %v3768_v32  ;;  %v4008_v23 = vsel %vm3996_vm4, %v3990_v10, %v3769_v0  ;;  %v3193_v56 = vmax.f32 %v3161_v59, 0.0  ;;  %v9487_v54 = vsel %vm342_vm0, %v4127_v58, 0.0 }
 0x243   : > { %v3803_v13 = vrot.slane %v3695_v18, 3  ;;  %v3736_v19 = vrot.slane %v9472_v38, 1  ;;  %v9492_v43 = vsel %vm501_vm2, %v4173_v52, %v4174_v24  ;;  %v4198_v45 = vrot.slane %v9477_v3, 2 }
 0x244   : > { %v7114_v57 = vpack.i.bf16 %v9492_v43, %v9477_v3  ;;  %v3272_v25 = vrot.slane %v3193_v56, 7  ;;  %v4199_v18 = vrot.slane %v9487_v54, 2  ;;  %v3160_v20 = vadd.f32 %v9465_v39, %v3121_v40 }
 0x245   : > { %v9499_v46 = vsel %vm4014_vm5, %v4008_v23, %v3803_v13  ;;  %v3124_v5 = vadd.f32 %v7028_v33, %v9007_v6  ;;  %v3770_v36 = vrot.slane %v9472_v38, 2  ;;  %v3804_v0 = vrot.slane %v9472_v38, 3 }
 0x246   : > { %7115 = vrot.lane.b32.xlu0 %v7114_v57, %s7165_s26  ;;  %v3363_v9 = vsel %vm342_vm0, %v3272_v25, -inf  ;;  %v3123_v48 = vadd.f32 %v3068_v53, %v9027_v27  ;;  %v9512_v58 = vsel %vm342_vm0, %v9472_v38, %v3736_v19  ;;  %v9515_v52 = vsel %vm1161_vm3, %v4198_v45, %v4199_v18 }
 0x247   : > { %v3192_v6 = vmax.f32 %v3160_v20, 0.0  ;;  %v3469_v33 = vrot.slane %v3363_v9, 1  ;;  %7051 = vmatprep.mubr.msk.f32.mxu0 %vm4315_vm8, %v9515_v52  ;;  %v3163_v7 = vadd.f32 %v9465_v39, %v3124_v5  ;;  %v3849_v27 = vrot.slane %v9149_v30, 4 }
 0x248   : > { %v3162_v10 = vadd.f32 %v9465_v39, %v3123_v48  ;;  %v3622_v24 = vrot.slane %v3363_v9, 2  ;;  %v3882_v4 = vrot.slane %v9116_v2, 5  ;;  %v3883_v40 = vrot.slane %v9149_v30, 5 }
 0x249   : > { %v3271_v59 = vrot.slane %v3192_v6, 7  ;;  %v3195_v23 = vmax.f32 %v3163_v7, 0.0  ;;  %v3916_v13 = vrot.slane %v9116_v2, 6  ;;  %v10989_v19 = vrot.slane %v9114_v60, 3 }
 0x24a   : > { %v3194_v56 = vmax.f32 %v3162_v10, 0.0  ;;  %v10990_v18 = vrot.slane %v9147_v21, 3  ;;  %v10991_v5 = vrot.slane %v9116_v2, 4  ;;  %v3955_v11 = vrot.slane %v9262_v15, 7 }
 0x24b   : > { %v4020_v53 = vsel %vm4014_vm5, %v9166_v41, %v10989_v19  ;;  %v3273_v57 = vsel %vm342_vm0, %v3271_v59, %v3272_v25  ;;  %v3346_v45 = vsel %vm342_vm0, -inf, %v3271_v59  ;;  %v3275_v10 = vrot.slane %v3195_v23, 7 }
 0x24c   : > { %v4021_v20 = vsel %vm4014_vm5, %v9195_v50, %v10990_v18  ;;  %v4038_v9 = vsel %vm4032_vm6, %v4020_v53, %v10991_v5  ;;  %v3466_v48 = vrot.slane %v3346_v45, 1  ;;  %v3467_v6 = vrot.slane %v3273_v57, 1 }
 0x24d   : > { %v3619_v7 = vrot.slane %v3346_v45, 2  ;;  %v3620_v60 = vrot.slane %v3273_v57, 2  ;;  %v3274_v32 = vrot.slane %v3194_v56, 7  ;;  %v4039_v41 = vsel %vm4032_vm6, %v4021_v20, %v3849_v27 }
 0x24e   : > { %v4056_v25 = vsel %vm4050_vm7, %v4038_v9, %v3882_v4  ;;  %v3468_v59 = vsel %vm501_vm2, %v3466_v48, %v3467_v6  ;;  %v3470_v21 = vsel %vm501_vm2, %v3467_v6, %v3469_v33  ;;  %v3364_v5 = vsel %vm342_vm0, %v3275_v10, -inf  ;;  %v7031_v6 = vpop.f32.mrf.mxu0 }
 0x24f   : > { %v3621_v50 = vsel %vm1161_vm3, %v3619_v7, %v3620_v60  ;;  %v3623_v19 = vsel %vm1161_vm3, %v3620_v60, %v3622_v24  ;;  %v3546_v18 = vmax.f32 %v3346_v45, %v3468_v59  ;;  %v3547_v53 = vmax.f32 %v3273_v57, %v3470_v21 }
 0x250   : > { %v3276_v8 = vsel %vm342_vm0, %v3274_v32, %v3275_v10  ;;  %v3474_v23 = vrot.slane %v3364_v5, 1  ;;  %v3347_v56 = vsel %vm342_vm0, -inf, %v3274_v32  ;;  %v3917_v4 = vrot.slane %v9149_v30, 6 }
 0x251   : > { %v3472_v27 = vrot.slane %v3276_v8, 1  ;;  %v3699_v20 = vmax.f32 %v3546_v18, %v3621_v50  ;;  %v9548_v9 = vmax.f32 %v3547_v53, %v3623_v19  ;;  %v3471_v33 = vrot.slane %v3347_v56, 1 }
 0x252   : > { %v3624_v48 = vrot.slane %v3347_v56, 2  ;;  %v3625_v45 = vrot.slane %v3276_v8, 2  ;;  %v4057_v57 = vsel %vm4050_vm7, %v4039_v41, %v3883_v40  ;;  %v4073_v7 = vsel %vm1161_vm3, %v4056_v25, %v3916_v13  ;;  %v3078_v13 = vpop.f32.mrf.mxu0 }
 0x253   : > { %v3475_v24 = vsel %vm501_vm2, %v3472_v27, %v3474_v23  ;;  %v3737_v60 = vrot.slane %v3699_v20, 1  ;;  %v3771_v10 = vrot.slane %v3699_v20, 2  ;;  %v3627_v59 = vrot.slane %v3364_v5, 2 }
 0x254   : > { %v3950_v32 = vrot.slane %v9116_v2, 7  ;;  %v3473_v21 = vsel %vm501_vm2, %v3471_v33, %v3472_v27  ;;  %v3549_v50 = vmax.f32 %v3276_v8, %v3475_v24  ;;  %v3626_v19 = vsel %vm1161_vm3, %v3624_v48, %v3625_v45 }
 0x255   : > { %v3951_v18 = vrot.slane %v9149_v30, 7  ;;  %v3992_v53 = vsel %vm342_vm0, %v3699_v20, %v3737_v60  ;;  %v3548_v23 = vmax.f32 %v3347_v56, %v3473_v21  ;;  %v3628_v26 = vsel %vm1161_vm3, %v3625_v45, %v3627_v59 }
 0x256   : > { %v4074_v40 = vsel %vm1161_vm3, %v4057_v57, %v3917_v4  ;;  %v4010_v41 = vsel %vm3996_vm4, %v3992_v53, %v3771_v10  ;;  %v9561_v25 = vmax.f32 %v3549_v50, %v3628_v26  ;;  %v4090_v2 = vsel %vm501_vm2, %v4073_v7, %v3950_v32  ;;  %v7034_v57 = vpop.f32.mrf.mxu0 }
 0x257   : > { %v9565_v8 = vsel %vm501_vm2, %v4074_v40, %v3951_v18  ;;  %v3805_v5 = vrot.slane %v3699_v20, 3  ;;  %v9567_v27 = vmax.f32 %v3548_v23, %v3626_v19  ;;  %v4104_v30 = vmax.f32 %v9408_v34, %v4090_v2 }
 0x258   : > { %v4176_v56 = vrot.slane %v9477_v3, 1  ;;  %v3889_v33 = vrot.slane %v9474_v61, 5  ;;  %v9576_v26 = vsel %vm3996_vm4, %v9512_v58, %v3770_v36  ;;  %v3856_v4 = vrot.slane %v9548_v9, 4  ;;  %v3088_v2 = vpop.f32.mrf.mxu0 }
 0x259   : > { %v4177_v48 = vrot.slane %v9487_v54, 1  ;;  %v3890_v20 = vrot.slane %v9548_v9, 5  ;;  %v9582_v24 = vsel %vm4014_vm5, %v4010_v41, %v3805_v5  ;;  %v3857_v34 = vrot.slane %v9561_v25, 4 }
 0x25a   : > { %v4112_v45 = vmax.f32 %v4104_v30, %v9565_v8  ;;  %v3738_v7 = vrot.slane %v9567_v27, 1  ;;  %v3884_v36 = vrot.slane %v9170_v31, 5  ;;  %v10992_v58 = vrot.slane %v9168_v1, 3 }
 0x25b   : > { %v9588_v60 = vsel %vm501_vm2, %v4176_v56, %v4177_v48  ;;  %v3918_v59 = vrot.slane %v9170_v31, 6  ;;  %v10993_v32 = vrot.slane %v9170_v31, 4  ;;  %v3126_v50 = vadd.f32 %v7031_v6, %v9030_v62 }
 0x25c   : > { %v4022_v54 = vsel %vm4014_vm5, %v9206_v55, %v10992_v58  ;;  %v4128_v10 = vrot.slane %v4112_v45, 7  ;;  %v3952_v19 = vrot.slane %v9170_v31, 7  ;;  %v3125_v53 = vadd.f32 %v3078_v13, %v9033_v16 }
 0x25d   : > { %v4040_v21 = vsel %vm4032_vm6, %v4022_v54, %v10993_v32  ;;  %v3128_v1 = vadd.f32 %v7034_v57, %v9036_v51  ;;  %v3165_v41 = vadd.f32 %v9465_v39, %v3126_v50  ;;  %v3127_v48 = vadd.f32 %v3088_v2, %v9043_v17 }
 0x25e   : > { %v4058_v18 = vsel %vm4050_vm7, %v4040_v21, %v3884_v36  ;;  %v9605_v23 = vsel %vm342_vm0, 0.0, %v4128_v10  ;;  %v9608_v55 = vsel %vm342_vm0, %v4128_v10, 0.0  ;;  %v3164_v5 = vadd.f32 %v9465_v39, %v3125_v53  ;;  %v10995_v10 = vld [vmem:[#allocation14_spill] sm:$0xff] }
 0x25f   : > { %v4075_v40 = vsel %vm1161_vm3, %v4058_v18, %v3918_v59  ;;  %v4202_v62 = vrot.slane %v9608_v55, 2  ;;  %v7119_v31 = vpack.i.bf16 %v9588_v60, %v9605_v23  ;;  %v4201_v51 = vrot.slane %v9605_v23, 2 }
 0x260   : > { %v4092_v16 = vsel %vm501_vm2, %v4075_v40, %v3952_v19  ;;  %v3197_v13 = vmax.f32 %v3165_v41, 0.0  ;;  %v3167_v30 = vadd.f32 %v9465_v39, %v3128_v1  ;;  %v3919_v45 = vrot.slane %v9199_v12, 6 }
 0x261   : > { %v4105_v6 = vmax.f32 %v9565_v8, %v4092_v16  ;;  %7120 = vrot.lane.b32.xlu1 %v7119_v31, %s7165_s26  ;;  %v9622_v56 = vsel %vm1161_vm3, %v4201_v51, %v4202_v62  ;;  %v3953_v57 = vrot.slane %v9199_v12, 7  ;;  %v3196_v8 = vmax.f32 %v3164_v5, 0.0 }
 0x262   : > { %v3278_v36 = vrot.slane %v3197_v13, 7  ;;  %7052 = vmatmul.mubr.msk.f32.vlgmr.msra.gmra.mxu0 %vm4315_vm8, %v9622_v56  ;;  %v3199_v58 = vmax.f32 %v3167_v30, 0.0  ;;  %v10994_v54 = vrot.slane %v9197_v28, 3  ;;  %v3166_v32 = vadd.f32 %v9465_v39, %v3127_v48 }
 0x263   : > { %v10996_v21 = vrot.slane %v9199_v12, 4  ;;  %v4179_v50 = vrot.slane %v9605_v23, 1  ;;  %v4180_v19 = vrot.slane %v9608_v55, 1  ;;  %v3277_v53 = vrot.slane %v3196_v8, 7 }
 0x264   : > { %v4023_v59 = vsel %vm4014_vm5, %v10995_v10, %v10994_v54  ;;  %v3365_v18 = vsel %vm342_vm0, %v3278_v36, -inf  ;;  %v3281_v1 = vrot.slane %v3199_v58, 7  ;;  %v10997_v40 = vrot.slane %v9199_v12, 5 }
 0x265   : > { %v4041_v17 = vsel %vm4032_vm6, %v4023_v59, %v10996_v21  ;;  %v3479_v41 = vrot.slane %v3365_v18, 1  ;;  %v3632_v2 = vrot.slane %v3365_v18, 2  ;;  %v3198_v62 = vmax.f32 %v3166_v32, 0.0 }
 0x266   : > { %v4059_v28 = vsel %vm4050_vm7, %v4041_v17, %v10997_v40  ;;  %v3279_v31 = vsel %vm342_vm0, %v3277_v53, %v3278_v36  ;;  %v3348_v16 = vsel %vm342_vm0, -inf, %v3277_v53  ;;  %v3366_v51 = vsel %vm342_vm0, %v3281_v1, -inf }
 0x267   : > { %v4076_v39 = vsel %vm1161_vm3, %v4059_v28, %v3919_v45  ;;  %v3476_v13 = vrot.slane %v3348_v16, 1  ;;  %v3477_v5 = vrot.slane %v3279_v31, 1  ;;  %v3629_v30 = vrot.slane %v3348_v16, 2 }
 0x268   : > { %v9648_v55 = vsel %vm501_vm2, %v4076_v39, %v3953_v57  ;;  %v3630_v12 = vrot.slane %v3279_v31, 2  ;;  %v3484_v48 = vrot.slane %v3366_v51, 1  ;;  %v3637_v8 = vrot.slane %v3366_v51, 2  ;;  %v4404_v57 = vld [vmem:[%s10698_s3 + $0x1f8] sm:$0xff] }
 0x269   : > { %v3280_v58 = vrot.slane %v3198_v62, 7  ;;  %v4113_v54 = vmax.f32 %v4105_v6, %v9648_v55  ;;  %v3478_v45 = vsel %vm501_vm2, %v3476_v13, %v3477_v5  ;;  %v3480_v36 = vsel %vm501_vm2, %v3477_v5, %v3479_v41  ;;  %6343 = vmatprep.subr.mxu1 %v4404_v57 }
 0x26a   : > { %v3631_v10 = vsel %vm1161_vm3, %v3629_v30, %v3630_v12  ;;  %v3633_v59 = vsel %vm1161_vm3, %v3630_v12, %v3632_v2  ;;  %v3550_v32 = vmax.f32 %v3348_v16, %v3478_v45  ;;  %v3551_v21 = vmax.f32 %v3279_v31, %v3480_v36 }
 0x26b   : > { %v3282_v17 = vsel %vm342_vm0, %v3280_v58, %v3281_v1  ;;  %v3349_v18 = vsel %vm342_vm0, -inf, %v3280_v58  ;;  %v3772_v41 = vrot.slane %v9567_v27, 2  ;;  %v4129_v2 = vrot.slane %v4113_v54, 7 }
 0x26c   : > { %v3481_v6 = vrot.slane %v3349_v18, 1  ;;  %v3482_v53 = vrot.slane %v3282_v17, 1  ;;  %v3634_v40 = vrot.slane %v3349_v18, 2  ;;  %v3635_v28 = vrot.slane %v3282_v17, 2 }
 0x26d   : > { %v3703_v62 = vmax.f32 %v3550_v32, %v3631_v10  ;;  %v9661_v39 = vmax.f32 %v3551_v21, %v3633_v59  ;;  %v3993_v13 = vsel %vm342_vm0, %v9567_v27, %v3738_v7  ;;  %v9672_v12 = vsel %vm501_vm2, %v4179_v50, %v4180_v19 }
 0x26e   : > { %v3483_v51 = vsel %vm501_vm2, %v3481_v6, %v3482_v53  ;;  %v3485_v16 = vsel %vm501_vm2, %v3482_v53, %v3484_v48  ;;  %v3636_v31 = vsel %vm1161_vm3, %v3634_v40, %v3635_v28  ;;  %v3638_v1 = vsel %vm1161_vm3, %v3635_v28, %v3637_v8 }
 0x26f   : > { %v3739_v5 = vrot.slane %v3703_v62, 1  ;;  %v3773_v30 = vrot.slane %v3703_v62, 2  ;;  %v3807_v58 = vrot.slane %v3703_v62, 3  ;;  %v3552_v54 = vmax.f32 %v3349_v18, %v3483_v51 }
 0x270   : > { %v3553_v45 = vmax.f32 %v3282_v17, %v3485_v16  ;;  %v9675_v36 = vsel %vm342_vm0, 0.0, %v4129_v2  ;;  %v4153_v10 = vsel %vm342_vm0, %v4129_v2, 0.0  ;;  %v3806_v32 = vrot.slane %v9567_v27, 3 }
 0x271   : > { %v3994_v48 = vsel %vm342_vm0, %v3703_v62, %v3739_v5  ;;  %v7124_v8 = vpack.i.bf16 %v9672_v12, %v9675_v36  ;;  %v4204_v7 = vrot.slane %v9675_v36, 2  ;;  %v9683_v57 = vmax.f32 %v3552_v54, %v3636_v31 }
 0x272   : > { %v4012_v59 = vsel %vm3996_vm4, %v3994_v48, %v3773_v30  ;;  %v9685_v50 = vmax.f32 %v3553_v45, %v3638_v1  ;;  %v4205_v19 = vrot.slane %v4153_v10, 2  ;;  %v3891_v21 = vrot.slane %v9561_v25, 5 }
 0x273   : > { %v4011_v17 = vsel %vm3996_vm4, %v3993_v13, %v3772_v41  ;;  %v3858_v18 = vrot.slane %v9661_v39, 4  ;;  %7125 = vrot.lane.b32.xlu1 %v7124_v8, %s7165_s26  ;;  %v3892_v6 = vrot.slane %v9661_v39, 5  ;;  %v9694_v53 = vsel %vm4014_vm5, %v4012_v59, %v3807_v58 }
 0x274   : > { %v3740_v40 = vrot.slane %v9683_v57, 1  ;;  %v3920_v28 = vrot.slane %v9223_v22, 6  ;;  %v9699_v62 = vsel %vm1161_vm3, %v4204_v7, %v4205_v19  ;;  %v3921_v27 = vrot.slane %v9262_v15, 6 }
 0x275   : > { %v3954_v41 = vrot.slane %v9223_v22, 7  ;;  %v4025_v2 = vsel %vm4014_vm5, %v9483_v63, %v3802_v49  ;;  %v3774_v51 = vrot.slane %v9683_v57, 2  ;;  %7054 = vmatprep.mubr.msk.f32.mxu0 %vm4315_vm8, %v9699_v62  ;;  %v4042_v16 = vsel %vm4032_vm6, %v9281_v37, %v3852_v35 }
 0x276   : > { %v4043_v31 = vsel %vm4032_vm6, %v4025_v2, %v3853_v29  ;;  %v4182_v1 = vrot.slane %v9675_v36, 1  ;;  %v10998_v49 = vrot.slane %v9223_v22, 5  ;;  %v4183_v5 = vrot.slane %v4153_v10, 1 }
 0x277   : > { %v4061_v13 = vsel %vm4050_vm7, %v4043_v31, %v3887_v44  ;;  %v3808_v30 = vrot.slane %v9683_v57, 3  ;;  %v3995_v35 = vsel %vm342_vm0, %v9683_v57, %v3740_v40  ;;  %v3922_v54 = vrot.slane %v9431_v42, 6 }
 0x278   : > { %v4060_v63 = vsel %vm4050_vm7, %v4042_v16, %v10998_v49  ;;  %v4078_v29 = vsel %vm1161_vm3, %v4061_v13, %v3921_v27  ;;  %v3923_v15 = vrot.slane %v9474_v61, 6  ;;  %v9736_v45 = vsel %vm501_vm2, %v4182_v1, %v4183_v5 }
 0x279   : > { %v4077_v37 = vsel %vm1161_vm3, %v4060_v63, %v3920_v28  ;;  %v4095_v22 = vsel %vm501_vm2, %v4078_v29, %v3955_v11  ;;  %v4027_v48 = vsel %vm4014_vm5, %v9576_v26, %v3804_v0  ;;  %v10999_v8 = vrot.slane %v9431_v42, 4 }
 0x27a   : > { %v4094_v58 = vsel %vm501_vm2, %v4077_v37, %v3954_v41  ;;  %v3956_v7 = vrot.slane %v9431_v42, 7  ;;  %v3957_v59 = vrot.slane %v9474_v61, 7  ;;  %v11000_v19 = vrot.slane %v9474_v61, 4 }
 0x27b   : > { %v4106_v44 = vmax.f32 %v9648_v55, %v4094_v58  ;;  %v4044_v10 = vsel %vm4032_vm6, %v9499_v46, %v10999_v8  ;;  %v11001_v40 = vrot.slane %v9431_v42, 5  ;;  %v3924_v46 = vrot.slane %v9548_v9, 6 }
 0x27c   : > { %v4045_v55 = vsel %vm4032_vm6, %v4027_v48, %v11000_v19  ;;  %v3925_v2 = vrot.slane %v9561_v25, 6  ;;  %v4029_v16 = vsel %vm4014_vm5, %v4011_v17, %v3806_v32  ;;  %v4046_v61 = vsel %vm4032_vm6, %v9582_v24, %v3856_v4 }
 0x27d   : > { %v4062_v38 = vsel %vm4050_vm7, %v4044_v10, %v11001_v40  ;;  %v4114_v28 = vmax.f32 %v4106_v44, %v4095_v22  ;;  %v4063_v0 = vsel %vm4050_vm7, %v4045_v55, %v3889_v33  ;;  %v3958_v33 = vrot.slane %v9548_v9, 7 }
 0x27e   : > { %v4079_v26 = vsel %vm1161_vm3, %v4062_v38, %v3922_v54  ;;  %v4080_v27 = vsel %vm1161_vm3, %v4063_v0, %v3923_v15  ;;  %v3959_v11 = vrot.slane %v9561_v25, 7  ;;  %v4047_v49 = vsel %vm4032_vm6, %v4029_v16, %v3857_v34 }
 0x27f   : > { %v4096_v41 = vsel %vm501_vm2, %v4079_v26, %v3956_v7  ;;  %v4130_v42 = vrot.slane %v4114_v28, 7  ;;  %v4097_v31 = vsel %vm501_vm2, %v4080_v27, %v3957_v59  ;;  %v4064_v32 = vsel %vm4050_vm7, %v4046_v61, %v3890_v20 }
 0x280   : > { %v4107_v1 = vmax.f32 %v4095_v22, %v4096_v41  ;;  %v4065_v4 = vsel %vm4050_vm7, %v4047_v49, %v3891_v21  ;;  %v4081_v20 = vsel %vm1161_vm3, %v4064_v32, %v3924_v46  ;;  %v4013_v58 = vsel %vm3996_vm4, %v3995_v35, %v3774_v51 }
 0x281   : > { %v9777_v17 = vsel %vm342_vm0, 0.0, %v4130_v42  ;;  %v4154_v63 = vsel %vm342_vm0, %v4130_v42, 0.0  ;;  %v4082_v29 = vsel %vm1161_vm3, %v4065_v4, %v3925_v2  ;;  %v4098_v22 = vsel %vm501_vm2, %v4081_v20, %v3958_v33 }
 0x282   : > { %v4115_v13 = vmax.f32 %v4107_v1, %v4097_v31  ;;  %v7129_v24 = vpack.i.bf16 %v9736_v45, %v9777_v17  ;;  %v4207_v5 = vrot.slane %v9777_v17, 2  ;;  %v4208_v25 = vrot.slane %v4154_v63, 2 }
 0x283   : > { %v4185_v34 = vrot.slane %v9777_v17, 1  ;;  %v4186_v9 = vrot.slane %v4154_v63, 1  ;;  %v4099_v54 = vsel %vm501_vm2, %v4082_v29, %v3959_v11  ;;  %v4108_v35 = vmax.f32 %v4097_v31, %v4098_v22 }
 0x284   : > { %v4131_v37 = vrot.slane %v4115_v13, 7  ;;  %7130 = vrot.lane.b32.xlu0 %v7129_v24, %s7165_s26  ;;  %v9790_v21 = vsel %vm1161_vm3, %v4207_v5, %v4208_v25  ;;  %v3859_v59 = vrot.slane %v9685_v50, 4  ;;  %v3893_v19 = vrot.slane %v9685_v50, 5 }
 0x285   : > { %7055 = vmatmul.mubr.msk.f32.gmra.mxu0 %vm4315_vm8, %v9790_v21  ;;  %v9800_v44 = vsel %vm501_vm2, %v4185_v34, %v4186_v9  ;;  %v4116_v55 = vmax.f32 %v4108_v35, %v4099_v54  ;;  %v3926_v28 = vrot.slane %v9661_v39, 6  ;;  %v3927_v0 = vrot.slane %v9685_v50, 6 }
 0x286   : > { %v9797_v15 = vsel %vm342_vm0, 0.0, %v4131_v37  ;;  %v4155_v51 = vsel %vm342_vm0, %v4131_v37, 0.0  ;;  %v4031_v26 = vsel %vm4014_vm5, %v4013_v58, %v3808_v30  ;;  %v3960_v27 = vrot.slane %v9661_v39, 7 }
 0x287   : > { %v7134_v48 = vpack.i.bf16 %v9800_v44, %v9797_v15  ;;  %v4210_v8 = vrot.slane %v9797_v15, 2  ;;  %v4211_v10 = vrot.slane %v4155_v51, 2  ;;  %v4188_v7 = vrot.slane %v9797_v15, 1 }
 0x288   : > { %v4189_v40 = vrot.slane %v4155_v51, 1  ;;  %v4132_v46 = vrot.slane %v4116_v55, 7  ;;  %v4048_v41 = vsel %vm4032_vm6, %v9694_v53, %v3858_v18  ;;  %v4049_v2 = vsel %vm4032_vm6, %v4031_v26, %v3859_v59  ;;  %v11002_v51 = vld [vmem:[#allocation4_spill] sm:$0xff]  ;;  %v4388_v26 = vld [vmem:[%s10698_s3 + $0x178] sm:$0xff] }
 0x289   : > { %7135 = vrot.lane.b32.xlu1 %v7134_v48, %s7165_s26  ;;  %v9811_v38 = vsel %vm1161_vm3, %v4210_v8, %v4211_v10  ;;  %v3961_v57 = vrot.slane %v9685_v50, 7  ;;  %v4066_v30 = vsel %vm4050_vm7, %v4048_v41, %v3892_v6  ;;  %v4067_v42 = vsel %vm4050_vm7, %v4049_v2, %v3893_v19  ;;  %v11004_v48 = vld [vmem:[#allocation3_spill] sm:$0xff] }
 0x28a   : > { %7057 = vmatprep.mubr.msk.f32.mxu0 %vm4315_vm8, %v9811_v38  ;;  %v9827_v16 = vsel %vm501_vm2, %v4188_v7, %v4189_v40  ;;  %v9835_v31 = vsel %vm342_vm0, 0.0, %v4132_v46  ;;  %v4156_v1 = vsel %vm342_vm0, %v4132_v46, 0.0  ;;  %v4083_v18 = vsel %vm1161_vm3, %v4066_v30, %v3926_v28  ;;  %v4403_v46 = vld [vmem:[%s10698_s3 + $0x1f0] sm:$0xff]  ;;  %v4402_v41 = vld [vmem:[%s10698_s3 + $0x1e8] sm:$0xff]  ;;  %v4385_v30 = vld [vmem:[%s10698_s3 + $0x160] sm:$0xff] }
 0x28b   : > { %v4084_v53 = vsel %vm1161_vm3, %v4067_v42, %v3927_v0  ;;  %v7139_v61 = vpack.i.bf16 %v9827_v16, %v9835_v31  ;;  %v4213_v50 = vrot.slane %v9835_v31, 2  ;;  %v4214_v33 = vrot.slane %v4156_v1, 2  ;;  %v4386_v2 = vld [vmem:[%s10698_s3 + $0x168] sm:$0xff]  ;;  %v4400_v42 = vld [vmem:[%s10698_s3 + $0x1d8] sm:$0xff] }
 0x28c   : > { %v4100_v39 = vsel %vm501_vm2, %v4083_v18, %v3960_v27  ;;  %v4195_v6 = vrot.slane %v9380_v47, 2  ;;  %v4196_v11 = vrot.slane %v9429_v14, 2  ;;  %v4101_v49 = vsel %vm501_vm2, %v4084_v53, %v3961_v57  ;;  %v4387_v27 = vld [vmem:[%s10698_s3 + $0x170] sm:$0xff]  ;;  %v4401_v57 = vld [vmem:[%s10698_s3 + $0x1e0] sm:$0xff] }
 0x28d   : > { %v4109_v32 = vmax.f32 %v4099_v54, %v4100_v39  ;;  %7140 = vrot.lane.b32.xlu0 %v7139_v61, %s7165_s26  ;;  %v9849_v63 = vsel %vm1161_vm3, %v4213_v50, %v4214_v33  ;;  %v4191_v4 = vrot.slane %v9835_v31, 1  ;;  %v4192_v24 = vrot.slane %v4156_v1, 1  ;;  %v4384_v1 = vld [vmem:[%s10698_s3 + $0x158] sm:$0xff]  ;;  %v4399_v18 = vld [vmem:[%s10698_s3 + $0x1d0] sm:$0xff]  ;;  %v4398_v61 = vld [vmem:[%s10698_s3 + $0x1c8] sm:$0xff] }
 0x28e   : > { %7058 = vmatmul.mubr.msk.f32.gmra.mxu0 %vm4315_vm8, %v9849_v63  ;;  %v4197_v5 = vsel %vm1161_vm3, %v4195_v6, %v4196_v11  ;;  %v11003_v35 = vrot.slane %v11002_v51, 2  ;;  %v11005_v8 = vrot.slane %v11004_v48, 2  ;;  %v4383_v53 = vld [vmem:[%s10698_s3 + $0x150] sm:$0xff]  ;;  %v4382_v33 = vld [vmem:[%s10698_s3 + $0x148] sm:$0xff]  ;;  %v4397_v11 = vld [vmem:[%s10698_s3 + $0x1c0] sm:$0xff] }
 0x28f   : > { %v4117_v13 = vmax.f32 %v4109_v32, %v4101_v49  ;;  %v9860_v34 = vsel %vm501_vm2, %v4191_v4, %v4192_v24  ;;  %v4396_v4 = vld [vmem:[%s10698_s3 + $0x1b8] sm:$0xff]  ;;  %v4390_v51 = vld [vmem:[%s10698_s3 + $0x188] sm:$0xff] }
 0x290   : > { %v4194_v10 = vsel %vm1161_vm3, %v11005_v8, %v11003_v35  ;;  %v4380_v24 = vld [vmem:[%s10698_s3 + $0x138] sm:$0xff]  ;;  %v4374_v35 = vld [vmem:[%s10698_s3 + $0x108] sm:$0xff]  ;;  %v4389_v8 = vld [vmem:[%s10698_s3 + $0x180] sm:$0xff] }
 0x291   : > { %v4133_v25 = vrot.slane %v4117_v13, 7  ;;  %4288 = vrot.lane.b32.xlu0 %v4197_v5, %s7165_s26  ;;  %v4381_v13 = vld [vmem:[%s10698_s3 + $0x140] sm:$0xff] }
 0x293   : > { %v9857_v14 = vsel %vm342_vm0, 0.0, %v4133_v25  ;;  %v4157_v37 = vsel %vm342_vm0, %v4133_v25, 0.0  ;;  %v4394_v25 = vld [vmem:[%s10698_s3 + $0x1a8] sm:$0xff] }
 0x294   : > { %v7144_v9 = vpack.i.bf16 %v9860_v34, %v9857_v14  ;;  %v4237_v20 = vrot.slane %v9857_v14, 2  ;;  %v4238_v29 = vrot.slane %v4157_v37, 2  ;;  %v4226_v58 = vrot.slane %v9857_v14, 1 }
 0x295   : > { %v4227_v22 = vrot.slane %v4157_v37, 1  ;;  %4292 = vrot.lane.b32.xlu0 %v9622_v56, %s7165_s26  ;;  %v4378_v37 = vld [vmem:[%s10698_s3 + $0x128] sm:$0xff] }
 0x296   : > { %7145 = vrot.lane.b32.xlu1 %v7144_v9, %s7165_s26  ;;  %v4239_v54 = vsel %vm1161_vm3, %v4237_v20, %v4238_v29  ;;  %v4393_v9 = vld [vmem:[%s10698_s3 + $0x1a0] sm:$0xff]  ;;  %v4392_v29 = vld [vmem:[%s10698_s3 + $0x198] sm:$0xff] }
 0x297   : > { %7060 = vmatprep.mubr.msk.f32.mxu0 %vm4315_vm8, %v4239_v54  ;;  %v9879_v7 = vsel %vm501_vm2, %v4226_v58, %v4227_v22  ;;  %v4377_v20 = vld [vmem:[%s10698_s3 + $0x120] sm:$0xff]  ;;  %v4376_v58 = vld [vmem:[%s10698_s3 + $0x118] sm:$0xff]  ;;  %v4391_v22 = vld [vmem:[%s10698_s3 + $0x190] sm:$0xff] }
 0x298   : > { %7061 = vmatmul.mubr.msk.f32.gmra.mxu0 %vm4315_vm8, %v4194_v10  ;;  %v7149_v59 = vpack.i.bf16 %v9849_v63, %v9879_v7 }
 0x299   : > { %4296 = vrot.lane.b32.xlu0 %v9790_v21, %s7165_s26 }
 0x29a   : > { %4290 = vrot.lane.b32.xlu1 %v9515_v52, %s7165_s26 }
 0x29d   : > { %7150 = vrot.lane.b32.xlu0 %v7149_v59, %s7165_s26 }
 0x29e   : > { %4294 = vrot.lane.b32.xlu1 %v9699_v62, %s7165_s26 }
 0x2a2   : > { %4298 = vrot.lane.b32.xlu1 %v9811_v38, %s7165_s26 }
 0x2a6   : > { %4302 = vrot.lane.b32.xlu1 %v4239_v54, %s7165_s26  ;;  %v4375_v54 = vld [vmem:[%s10698_s3 + $0x110] sm:$0xff] }
 0x2a8   : > { %v7111_v19 = vpop.permute.xlu0 %7110 }
 0x2a9   : > { %v7113_v55 = vunpack.i.h.bf16 %v7111_v19  ;;  %v7112_v40 = vunpack.i.l.bf16 %v7111_v19 }
 0x2ab   : > { %v9895_v28 = vsel %vm4315_vm8, %v11004_v48, %v7113_v55  ;;  %v4324_v0 = vsel %vm4315_vm8, %v4194_v10, %v7112_v40  ;;  %v4373_v10 = vld [vmem:[%s10698_s3 + $0x100] sm:$0xff] }
 0x2ac   : > { %4500 = vmatprep.mubr.f32.mxu1 %v4324_v0 }
 0x2ad   : > { %4501 = vmatmul.mubr.f32.vlgmr.msra.gmra.mxu1 %v9895_v28 }
 0x2ae   : > { %6344 = vmatpush3.msra.mxu1 %v4388_v26 }
 0x2af   : > { %6345 = vmatprep.subr.mxu1 %v4403_v46 }
 0x2b0   : > { %6346 = vmatpush3.msra.mxu1 %v4387_v27 }
 0x2b1   : > { %6347 = vmatprep.subr.mxu1 %v4402_v41 }
 0x2b2   : > { %6348 = vmatpush3.msra.mxu1 %v4386_v2 }
 0x2b3   : > { %6349 = vmatprep.subr.mxu1 %v4401_v57 }
 0x2b4   : > { %6350 = vmatpush3.msra.mxu1 %v4385_v30 }
 0x2b5   : > { %6351 = vmatprep.subr.mxu1 %v4400_v42 }
 0x2b6   : > { %6352 = vmatpush3.msra.mxu1 %v4384_v1 }
 0x2b7   : > { %6353 = vmatprep.subr.mxu1 %v4399_v18 }
 0x2b8   : > { %v7116_v50 = vpop.permute.xlu0 %7115  ;;  %6354 = vmatpush3.msra.mxu1 %v4383_v53 }
 0x2b9   : > { %v7118_v39 = vunpack.i.h.bf16 %v7116_v50  ;;  %v7117_v6 = vunpack.i.l.bf16 %v7116_v50  ;;  %6355 = vmatprep.subr.mxu1 %v4398_v61 }
 0x2ba   : > { %6356 = vmatpush3.msra.mxu1 %v4382_v33 }
 0x2bb   : > { %v4325_v49 = vsel %vm4315_vm8, %v4197_v5, %v7117_v6  ;;  %v4317_v32 = vsel %vm4315_vm8, %v9380_v47, %v7118_v39  ;;  %6357 = vmatprep.subr.mxu1 %v4397_v11  ;;  %v4395_v47 = vld [vmem:[%s10698_s3 + $0x1b0] sm:$0xff] }
 0x2bc   : > { %4505 = vmatprep.mubr.f32.mxu1 %v4325_v49  ;;  %6358 = vmatpush3.msra.mxu1 %v4381_v13  ;;  %v4379_v5 = vld [vmem:[%s10698_s3 + $0x130] sm:$0xff] }
 0x2bd   : > { %4506 = vmatmul.mubr.f32.gmra.mxu1 %v4317_v32  ;;  %6359 = vmatprep.subr.mxu1 %v4396_v4 }
 0x2be   : > { %6360 = vmatpush3.msra.mxu1 %v4380_v24 }
 0x2bf   : > { %6361 = vmatprep.subr.mxu1 %v4395_v47 }
 0x2c0   : > { %6362 = vmatpush3.msra.mxu1 %v4379_v5 }
 0x2c1   : > { %6363 = vmatprep.subr.mxu1 %v4394_v25 }
 0x2c2   : > { %6364 = vmatpush3.msra.mxu1 %v4378_v37 }
 0x2c3   : > { %6365 = vmatprep.subr.mxu1 %v4393_v9 }
 0x2c4   : > { %6366 = vmatpush3.msra.mxu1 %v4377_v20  ;;  %v5103_v20 = vld [vmem:[%s10700_s5 + $0x68] sm:$0xff] }
 0x2c5   : > { %6367 = vmatprep.subr.mxu1 %v4392_v29  ;;  %v5118_v29 = vld [vmem:[%s10700_s5 + $0xe0] sm:$0xff] }
 0x2c6   : > { %6368 = vmatpush3.msra.mxu1 %v4376_v58  ;;  %v5153_v58 = vld [vmem:[%s10700_s5 + $0x1f8] sm:$0xff] }
 0x2c7   : > { %6369 = vmatprep.subr.mxu1 %v4391_v22  ;;  %6453 = vmatprep.subr.mxu0 %v5153_v58  ;;  %v5102_v22 = vld [vmem:[%s10700_s5 + $0x60] sm:$0xff] }
 0x2c8   : > { %6370 = vmatpush3.msra.mxu1 %v4375_v54  ;;  %v5137_v54 = vld [vmem:[%s10700_s5 + $0x178] sm:$0xff] }
 0x2c9   : > { %6371 = vmatprep.subr.mxu1 %v4390_v51  ;;  %v5117_v51 = vld [vmem:[%s10700_s5 + $0xd8] sm:$0xff]  ;;  %6454 = vmatpush3.msra.mxu0 %v5137_v54 }
 0x2ca   : > { %6372 = vmatpush3.msra.mxu1 %v4374_v35  ;;  %v5152_v35 = vld [vmem:[%s10700_s5 + $0x1f0] sm:$0xff] }
 0x2cb   : > { %6373 = vmatprep.subr.mxu1 %v4389_v8  ;;  %6455 = vmatprep.subr.mxu0 %v5152_v35  ;;  %v5101_v8 = vld [vmem:[%s10700_s5 + $0x58] sm:$0xff] }
 0x2cc   : > { %6374 = vmatpush3.msra.mxu1 %v4373_v10  ;;  %v5136_v10 = vld [vmem:[%s10700_s5 + $0x170] sm:$0xff] }
 0x2cd   : > { %6456 = vmatpush3.msra.mxu0 %v5136_v10 }
 0x2d3   : > { %v7121_v59 = vpop.permute.xlu1 %7120 }
 0x2d4   : > { %v7123_v19 = vunpack.i.h.bf16 %v7121_v59  ;;  %v7122_v55 = vunpack.i.l.bf16 %v7121_v59  ;;  %v5116_v59 = vld [vmem:[%s10700_s5 + $0xd0] sm:$0xff] }
 0x2d6   : > { %v4326_v40 = vsel %vm4315_vm8, %v9515_v52, %v7122_v55  ;;  %v4318_v0 = vsel %vm4315_vm8, %v9477_v3, %v7123_v19  ;;  %v5151_v19 = vld [vmem:[%s10700_s5 + $0x1e8] sm:$0xff]  ;;  %v5100_v55 = vld [vmem:[%s10700_s5 + $0x50] sm:$0xff] }
 0x2d7   : > { %4510 = vmatprep.mubr.f32.mxu1 %v4326_v40  ;;  %v5135_v40 = vld [vmem:[%s10700_s5 + $0x168] sm:$0xff]  ;;  %6457 = vmatprep.subr.mxu0 %v5151_v19 }
 0x2d8   : > { %4511 = vmatmul.mubr.f32.gmra.mxu1 %v4318_v0  ;;  %6458 = vmatpush3.msra.mxu0 %v5135_v40 }
 0x2e5   : > { %v7126_v26 = vpop.permute.xlu1 %7125 }
 0x2e6   : > { %v7128_v46 = vunpack.i.h.bf16 %v7126_v26  ;;  %v7127_v27 = vunpack.i.l.bf16 %v7126_v26  ;;  %v5150_v26 = vld [vmem:[%s10700_s5 + $0x1e0] sm:$0xff] }
 0x2e7   : > { %6459 = vmatprep.subr.mxu0 %v5150_v26 }
 0x2e8   : > { %v4327_v41 = vsel %vm4315_vm8, %v9622_v56, %v7127_v27  ;;  %v4319_v2 = vsel %vm4315_vm8, %v9605_v23, %v7128_v46  ;;  %v5099_v46 = vld [vmem:[%s10700_s5 + $0x48] sm:$0xff]  ;;  %v5134_v27 = vld [vmem:[%s10700_s5 + $0x160] sm:$0xff] }
 0x2e9   : > { %4515 = vmatprep.mubr.f32.mxu1 %v4327_v41  ;;  %v5114_v41 = vld [vmem:[%s10700_s5 + $0xc0] sm:$0xff]  ;;  %6460 = vmatpush3.msra.mxu0 %v5134_v27 }
 0x2ea   : > { %4516 = vmatmul.mubr.f32.gmra.mxu1 %v4319_v2 }
 0x2f6   : > { %v7131_v57 = vpop.permute.xlu0 %7130 }
 0x2f7   : > { %v7133_v30 = vunpack.i.h.bf16 %v7131_v57  ;;  %v7132_v42 = vunpack.i.l.bf16 %v7131_v57  ;;  %v5098_v57 = vld [vmem:[%s10700_s5 + $0x40] sm:$0xff] }
 0x2f9   : > { %v4328_v52 = vsel %vm4315_vm8, %v9699_v62, %v7132_v42  ;;  %v4320_v3 = vsel %vm4315_vm8, %v9675_v36, %v7133_v30  ;;  %v5133_v30 = vld [vmem:[%s10700_s5 + $0x158] sm:$0xff] }
 0x2fa   : > { %4520 = vmatprep.mubr.f32.mxu1 %v4328_v52  ;;  %v5113_v42 = vld [vmem:[%s10700_s5 + $0xb8] sm:$0xff]  ;;  %v5148_v52 = vld [vmem:[%s10700_s5 + $0x1d0] sm:$0xff] }
 0x2fb   : > { %v7136_v1 = vpop.permute.xlu1 %7135  ;;  %4521 = vmatmul.mubr.f32.gmra.mxu1 %v4320_v3 }
 0x2fc   : > { %v7138_v18 = vunpack.i.h.bf16 %v7136_v1  ;;  %v7137_v53 = vunpack.i.l.bf16 %v7136_v1  ;;  %v5132_v1 = vld [vmem:[%s10700_s5 + $0x150] sm:$0xff] }
 0x2fe   : > { %v4329_v56 = vsel %vm4315_vm8, %v9790_v21, %v7137_v53  ;;  %v4321_v23 = vsel %vm4315_vm8, %v9777_v17, %v7138_v18  ;;  %v5112_v18 = vld [vmem:[%s10700_s5 + $0xb0] sm:$0xff]  ;;  %v5147_v53 = vld [vmem:[%s10700_s5 + $0x1c8] sm:$0xff] }
 0x2ff   : > { %4525 = vmatprep.mubr.f32.mxu1 %v4329_v56  ;;  %v7141_v61 = vpop.permute.xlu0 %7140  ;;  %v5096_v56 = vld [vmem:[%s10700_s5 + $0x30] sm:$0xff] }
 0x300   : > { %4526 = vmatmul.mubr.f32.gmra.mxu1 %v4321_v23  ;;  %v7143_v50 = vunpack.i.h.bf16 %v7141_v61  ;;  %v7142_v33 = vunpack.i.l.bf16 %v7141_v61  ;;  %v5111_v61 = vld [vmem:[%s10700_s5 + $0xa8] sm:$0xff] }
 0x302   : > { %v4330_v62 = vsel %vm4315_vm8, %v9811_v38, %v7142_v33  ;;  %v4322_v36 = vsel %vm4315_vm8, %v9797_v15, %v7143_v50  ;;  %v5146_v50 = vld [vmem:[%s10700_s5 + $0x1c0] sm:$0xff]  ;;  %v5095_v33 = vld [vmem:[%s10700_s5 + $0x28] sm:$0xff] }
 0x303   : > { %4530 = vmatprep.mubr.f32.mxu1 %v4330_v62  ;;  %v4289_v49 = vpop.permute.xlu0 %4288  ;;  %v5130_v62 = vld [vmem:[%s10700_s5 + $0x140] sm:$0xff] }
 0x304   : > { %4531 = vmatmul.mubr.f32.gmra.mxu1 %v4322_v36  ;;  %v4332_v38 = vsel %vm4315_vm8, %v9492_v43, %v4289_v49  ;;  %v5093_v49 = vld [vmem:[%s10700_s5 + $0x18] sm:$0xff] }
 0x307   : > { %v4293_v15 = vpop.permute.xlu0 %4292 }
 0x308   : > { %v7146_v39 = vpop.permute.xlu1 %7145 }
 0x309   : > { %v7148_v6 = vunpack.i.h.bf16 %v7146_v39  ;;  %v7147_v11 = vunpack.i.l.bf16 %v7146_v39  ;;  %v5145_v39 = vld [vmem:[%s10700_s5 + $0x1b8] sm:$0xff] }
 0x30b   : > { %v4331_v21 = vsel %vm4315_vm8, %v9849_v63, %v7147_v11  ;;  %v4323_v17 = vsel %vm4315_vm8, %v9835_v31, %v7148_v6  ;;  %v4334_v63 = vsel %vm4315_vm8, %v9672_v12, %v4293_v15  ;;  %v4297_v31 = vpop.permute.xlu0 %4296  ;;  %v5094_v6 = vld [vmem:[%s10700_s5 + $0x20] sm:$0xff]  ;;  %v5129_v11 = vld [vmem:[%s10700_s5 + $0x138] sm:$0xff]  ;;  %v5143_v15 = vld [vmem:[%s10700_s5 + $0x1a8] sm:$0xff] }
 0x30c   : > { %4535 = vmatprep.mubr.f32.mxu1 %v4331_v21  ;;  %v4291_v32 = vpop.permute.xlu1 %4290  ;;  %v4336_v47 = vsel %vm4315_vm8, %v9800_v44, %v4297_v31  ;;  %v5109_v21 = vld [vmem:[%s10700_s5 + $0x98] sm:$0xff]  ;;  %v5107_v31 = vld [vmem:[%s10700_s5 + $0x88] sm:$0xff] }
 0x30d   : > { %4536 = vmatmul.mubr.f32.gmra.mxu1 %v4323_v17  ;;  %v4333_v13 = vsel %vm4315_vm8, %v9588_v60, %v4291_v32  ;;  %v5108_v32 = vld [vmem:[%s10700_s5 + $0x90] sm:$0xff] }
 0x30e   : > { %4605 = vmatprep.mubr.f32.mxu1 %v4318_v0  ;;  %v5115_v0 = vld [vmem:[%s10700_s5 + $0xc8] sm:$0xff] }
 0x30f   : > { %v7151_v43 = vpop.permute.xlu0 %7150 }
 0x310   : > { %v4295_v4 = vpop.permute.xlu1 %4294  ;;  %v7152_v5 = vunpack.i.l.bf16 %v7151_v43  ;;  %v7153_v25 = vunpack.i.h.bf16 %v7151_v43  ;;  %v5126_v43 = vld [vmem:[%s10700_s5 + $0x120] sm:$0xff] }
 0x311   : > { %4606 = vmatmul.mubr.f32.vlgmr.msra.gmra.mxu1 %v4332_v38  ;;  %v4335_v24 = vsel %vm4315_vm8, %v9736_v45, %v4295_v4  ;;  %v5128_v38 = vld [vmem:[%s10700_s5 + $0x130] sm:$0xff]  ;;  %v5142_v4 = vld [vmem:[%s10700_s5 + $0x1a0] sm:$0xff] }
 0x312   : > { %4610 = vmatprep.mubr.f32.mxu1 %v4319_v2  ;;  %v4340_v37 = vsel %vm4315_vm8, %v9857_v14, %v7152_v5  ;;  %v4338_v45 = vsel %vm4315_vm8, %v9860_v34, %v7153_v25  ;;  %v5105_v14 = vld [vmem:[%s10700_s5 + $0x78] sm:$0xff]  ;;  %v5120_v34 = vld [vmem:[%s10700_s5 + $0xf0] sm:$0xff] }
 0x313   : > { %v5149_v2 = vld [vmem:[%s10700_s5 + $0x1d8] sm:$0xff] }
 0x314   : > { %v4299_v60 = vpop.permute.xlu1 %4298  ;;  %6461 = vmatprep.subr.mxu0 %v5149_v2  ;;  %v5141_v5 = vld [vmem:[%s10700_s5 + $0x198] sm:$0xff] }
 0x315   : > { %4611 = vmatmul.mubr.f32.gmra.mxu1 %v4333_v13  ;;  %v4337_v12 = vsel %vm4315_vm8, %v9827_v16, %v4299_v60  ;;  %v5121_v16 = vld [vmem:[%s10700_s5 + $0xf8] sm:$0xff]  ;;  %6462 = vmatpush3.msra.mxu0 %v5133_v30  ;;  %v5092_v13 = vld [vmem:[%s10700_s5 + $0x10] sm:$0xff]  ;;  %v5090_v60 = vld [vmem:[%s10700_s5] sm:$0xff] }
 0x316   : > { %4615 = vmatprep.mubr.f32.mxu1 %v4320_v3  ;;  %6415 = vmatprep.subr.mxu1 %v5121_v16  ;;  %v5097_v3 = vld [vmem:[%s10700_s5 + $0x38] sm:$0xff]  ;;  %v5138_v16 = vld [vmem:[%s10700_s5 + $0x180] sm:$0xff] }
 0x317   : > { %6416 = vmatpush3.msra.mxu1 %v5105_v14  ;;  %6463 = vmatprep.subr.mxu0 %v5148_v52  ;;  %v5125_v25 = vld [vmem:[%s10700_s5 + $0x118] sm:$0xff]  ;;  %v5122_v14 = vld [vmem:[%s10700_s5 + $0x100] sm:$0xff] }
 0x318   : > { %v4303_v9 = vpop.permute.xlu1 %4302  ;;  %6417 = vmatprep.subr.mxu1 %v5120_v34  ;;  %6464 = vmatpush3.msra.mxu0 %v5132_v1  ;;  %v5217_v34 = vld [vmem:[%s10700_s5 + $0x3f8] sm:$0xff] }
 0x319   : > { %4616 = vmatmul.mubr.f32.gmra.mxu1 %v4334_v63  ;;  %v4339_v44 = vsel %vm4315_vm8, %v9879_v7, %v4303_v9  ;;  %v5119_v7 = vld [vmem:[%s10700_s5 + $0xe8] sm:$0xff]  ;;  %6465 = vmatprep.subr.mxu0 %v5147_v53 }
 0x31a   : > { %4620 = vmatprep.mubr.f32.mxu1 %v4321_v23  ;;  %v5131_v23 = vld [vmem:[%s10700_s5 + $0x148] sm:$0xff] }
 0x31b   : > { %6466 = vmatpush3.msra.mxu0 %v5131_v23  ;;  %v5127_v63 = vld [vmem:[%s10700_s5 + $0x128] sm:$0xff] }
 0x31c   : > { %6467 = vmatprep.subr.mxu0 %v5146_v50  ;;  %v5139_v9 = vld [vmem:[%s10700_s5 + $0x188] sm:$0xff] }
 0x31d   : > { %4621 = vmatmul.mubr.f32.gmra.mxu1 %v4335_v24  ;;  %6468 = vmatpush3.msra.mxu0 %v5130_v62  ;;  %v5091_v24 = vld [vmem:[%s10700_s5 + $0x8] sm:$0xff] }
 0x31e   : > { %4625 = vmatprep.mubr.f32.mxu1 %v4322_v36  ;;  %v5110_v36 = vld [vmem:[%s10700_s5 + $0xa0] sm:$0xff]  ;;  %6469 = vmatprep.subr.mxu0 %v5145_v39 }
 0x31f   : > { %6470 = vmatpush3.msra.mxu0 %v5129_v11 }
 0x321   : > { %4626 = vmatmul.mubr.f32.gmra.mxu1 %v4336_v47  ;;  %v5106_v47 = vld [vmem:[%s10700_s5 + $0x80] sm:$0xff] }
 0x322   : > { %4630 = vmatprep.mubr.f32.mxu1 %v4323_v17  ;;  %v5144_v17 = vld [vmem:[%s10700_s5 + $0x1b0] sm:$0xff] }
 0x323   : > { %6471 = vmatprep.subr.mxu0 %v5144_v17 }
 0x324   : > { %6472 = vmatpush3.msra.mxu0 %v5128_v38 }
 0x325   : > { %4631 = vmatmul.mubr.f32.gmra.mxu1 %v4337_v12  ;;  %6473 = vmatprep.subr.mxu0 %v5143_v15  ;;  %v5140_v12 = vld [vmem:[%s10700_s5 + $0x190] sm:$0xff] }
 0x326   : > { %4635 = vmatprep.mubr.f32.mxu1 %v4340_v37  ;;  %6474 = vmatpush3.msra.mxu0 %v5127_v63  ;;  %v5185_v37 = vld [vmem:[%s10700_s5 + $0x2f8] sm:$0xff] }
 0x327   : > { %6475 = vmatprep.subr.mxu0 %v5142_v4 }
 0x328   : > { %6476 = vmatpush3.msra.mxu0 %v5126_v43 }
 0x329   : > { %4636 = vmatmul.mubr.f32.gmra.mxu1 %v4338_v45  ;;  %6477 = vmatprep.subr.mxu0 %v5141_v5  ;;  %v5124_v45 = vld [vmem:[%s10700_s5 + $0x110] sm:$0xff]  ;;  %v10258_v5 = vsel %vm4050_vm7, %v11004_v48, 0.0 }
 0x32a   : > { %4640 = vmatprep.mubr.f32.mxu1 %v9895_v28  ;;  %v5104_v28 = vld [vmem:[%s10700_s5 + $0x70] sm:$0xff]  ;;  %6478 = vmatpush3.msra.mxu0 %v5125_v25 }
 0x32b   : > { %6418 = vmatpush3.msra.mxu1 %v5104_v28  ;;  %6479 = vmatprep.subr.mxu0 %v5140_v12 }
 0x32c   : > { %6419 = vmatprep.subr.mxu1 %v5119_v7  ;;  %6480 = vmatpush3.msra.mxu0 %v5124_v45 }
 0x32d   : > { %4641 = vmatmul.mubr.f32.gmra.mxu1 %v4339_v44  ;;  %v5123_v44 = vld [vmem:[%s10700_s5 + $0x108] sm:$0xff]  ;;  %6481 = vmatprep.subr.mxu0 %v5139_v9 }
 0x32e   : > { %6420 = vmatpush3.msra.mxu1 %v5103_v20  ;;  %6482 = vmatpush3.msra.mxu0 %v5123_v44 }
 0x32f   : > { %6421 = vmatprep.subr.mxu1 %v5118_v29  ;;  %6483 = vmatprep.subr.mxu0 %v5138_v16 }
 0x330   : > { %6422 = vmatpush3.msra.mxu1 %v5102_v22  ;;  %6484 = vmatpush3.msra.mxu0 %v5122_v14 }
 0x331   : > { %6423 = vmatprep.subr.mxu1 %v5117_v51  ;;  %6529 = vmatprep.subr.mxu0 %v5217_v34 }
 0x332   : > { %6424 = vmatpush3.msra.mxu1 %v5101_v8 }
 0x333   : > { %6425 = vmatprep.subr.mxu1 %v5116_v59 }
 0x334   : > { %6426 = vmatpush3.msra.mxu1 %v5100_v55  ;;  %v11006_v55 = vld [vmem:[#allocation39_spill] sm:$0xff] }
 0x335   : > { %6427 = vmatprep.subr.mxu1 %v5115_v0  ;;  %v11007_v40 = vrot.slane %v11006_v55, 1  ;;  %v11008_v0 = vld [vmem:[#allocation22_spill] sm:$0xff]  ;;  %v11010_v2 = vrot.slane %v11006_v55, 2 }
 0x336   : > { %6428 = vmatpush3.msra.mxu1 %v5099_v46  ;;  %v11009_v26 = vrot.slane %v11008_v0, 1 }
 0x337   : > { %6429 = vmatprep.subr.mxu1 %v5114_v41 }
 0x338   : > { %6430 = vmatpush3.msra.mxu1 %v5098_v57  ;;  %v4815_v46 = vsel %vm501_vm2, %v11009_v26, %v11007_v40  ;;  %v11011_v57 = vrot.slane %v11008_v0, 2 }
 0x339   : > { %6431 = vmatprep.subr.mxu1 %v5113_v42  ;;  %v4849_v41 = vmax.f32 %v11008_v0, %v4815_v46 }
 0x33a   : > { %6432 = vmatpush3.msra.mxu1 %v5097_v3  ;;  %v4858_v30 = vsel %vm1161_vm3, %v11011_v57, %v11010_v2 }
 0x33b   : > { %6433 = vmatprep.subr.mxu1 %v5112_v18  ;;  %v4892_v3 = vmax.f32 %v4849_v41, %v4858_v30  ;;  %v10250_v18 = vld [vmem:[%s10699_s4] ss:$0 sm:$0xff] }
 0x33c   : > { %6434 = vmatpush3.msra.mxu1 %v5096_v56  ;;  %v7053_v56 = vpop.f32.mrf.mxu0 }
 0x33d   : > { %6435 = vmatprep.subr.mxu1 %v5111_v61  ;;  %v4910_v61 = vrot.slane %v4892_v3, 1  ;;  %v4946_v4 = vrot.slane %v4892_v3, 3 }
 0x33e   : > { %6436 = vmatpush3.msra.mxu1 %v5095_v33  ;;  %v4712_v11 = vpop.f32.mrf.mxu0 }
 0x33f   : > { %6437 = vmatprep.subr.mxu1 %v5110_v36 }
 0x340   : > { %6438 = vmatpush3.msra.mxu1 %v5094_v6  ;;  %v4928_v6 = vrot.slane %v4892_v3, 2 }
 0x341   : > { %6439 = vmatprep.subr.mxu1 %v5109_v21 }
 0x342   : > { %6440 = vmatpush3.msra.mxu1 %v5093_v49  ;;  %v4964_v49 = vsel %vm342_vm0, %v4892_v3, %v4910_v61 }
 0x343   : > { %6441 = vmatprep.subr.mxu1 %v5108_v32 }
 0x344   : > { %6442 = vmatpush3.msra.mxu1 %v5092_v13 }
 0x345   : > { %6443 = vmatprep.subr.mxu1 %v5107_v31 }
 0x346   : > { %6444 = vmatpush3.msra.mxu1 %v5091_v24 }
 0x347   : > { %6445 = vmatprep.subr.mxu1 %v5106_v47  ;;  %v4973_v47 = vsel %vm3996_vm4, %v4964_v49, %v4928_v6 }
 0x348   : > { %6446 = vmatpush3.msra.mxu1 %v5090_v60  ;;  %v7056_v60 = vpop.f32.mrf.mxu0 }
 0x349   : > { %6491 = vmatprep.subr.mxu1 %v5185_v37 }
 0x36d   : > { %v6319_v28 = vpop.f32.mrf.mxu1 }
 0x36f   : > { %v6320_v7 = vpop.f32.mrf.mxu1 }
 0x370   : > { %v6321_v1 = vadd.f32 %v6320_v7, %v6319_v28  ;;  %v10264_v28 = vsel %vm4014_vm5, %v4973_v47, %v4946_v4  ;;  %v5021_v7 = vrot.slane %v10258_v5, 1 }
 0x372   : > { %v4503_v50 = vadd.f32 %v6321_v1, %v10250_v18 }
 0x37d   : > { %v6322_v20 = vpop.f32.mrf.mxu1 }
 0x37f   : > { %v6323_v29 = vpop.f32.mrf.mxu1 }
 0x380   : > { %v6324_v33 = vadd.f32 %v6323_v29, %v6322_v20 }
 0x382   : > { %v4508_v38 = vadd.f32 %v6324_v33, %v10250_v18 }
 0x398   : > { %v6325_v58 = vpop.f32.mrf.mxu1 }
 0x39a   : > { %v6326_v22 = vpop.f32.mrf.mxu1 }
 0x39b   : > { %v6327_v21 = vadd.f32 %v6326_v22, %v6325_v58  ;;  %v4722_v22 = vpop.f32.mrf.mxu0 }
 0x39d   : > { %v4513_v25 = vadd.f32 %v6327_v21, %v10250_v18 }
 0x3aa   : > { %v6328_v54 = vpop.f32.mrf.mxu1 }
 0x3ac   : > { %v6329_v51 = vpop.f32.mrf.mxu1 }
 0x3ad   : > { %v6330_v13 = vadd.f32 %v6329_v51, %v6328_v54 }
 0x3af   : > { %v4518_v16 = vadd.f32 %v6330_v13, %v10250_v18 }
 0x3bb   : > { %v6331_v35 = vpop.f32.mrf.mxu1 }
 0x3bd   : > { %v6332_v8 = vpop.f32.mrf.mxu1 }
 0x3be   : > { %v6333_v63 = vadd.f32 %v6332_v8, %v6331_v35 }
 0x3c0   : > { %v6334_v10 = vpop.f32.mrf.mxu1  ;;  %v4523_v14 = vadd.f32 %v6333_v63, %v10250_v18 }
 0x3c2   : > { %v6335_v59 = vpop.f32.mrf.mxu1 }
 0x3c3   : > { %v6336_v37 = vadd.f32 %v6335_v59, %v6334_v10 }
 0x3c4   : > { %v6337_v19 = vpop.f32.mrf.mxu1 }
 0x3c5   : > { %v10270_v59 = vadd.f32 %v6336_v37, %v10250_v18 }
 0x3c6   : > { %v6338_v27 = vpop.f32.mrf.mxu1 }
 0x3c7   : > { %v6339_v26 = vadd.f32 %v6338_v27, %v6337_v19 }
 0x3cd   : > { %v6340_v42 = vpop.f32.mrf.mxu1 }
 0x3cf   : > { %v6341_v52 = vpop.f32.mrf.mxu1 }
 0x3d0   : > { %v6342_v46 = vadd.f32 %v6341_v52, %v6340_v42 }
 0x3d1   : > { %v6375_v53 = vpop.f32.mrf.mxu1 }
 0x3d3   : > { %v6376_v23 = vpop.f32.mrf.mxu1 }
 0x3d4   : > { %v6377_v62 = vadd.f32 %v6376_v23, %v6375_v53 }
 0x3d5   : > { %v6378_v36 = vpop.f32.mrf.mxu1 }
 0x3d6   : > { %v4608_v39 = vadd.f32 %v6377_v62, %v4503_v50  ;;  %v10276_v62 = vpop.f32.mrf.mxu0 }
 0x3d7   : > { %v6379_v17 = vpop.f32.mrf.mxu1 }
 0x3d8   : > { %v4713_v32 = vadd.f32 %v4712_v11, %v4608_v39  ;;  %v6380_v15 = vadd.f32 %v6379_v17, %v6378_v36  ;;  %v10281_v36 = vadd.f32 %v6339_v26, %v10250_v18  ;;  %v10284_v39 = vadd.f32 %v6342_v46, %v10250_v18  ;;  %v4732_v4 = vpop.f32.mrf.mxu0 }
 0x3d9   : > { %v6381_v31 = vpop.f32.mrf.mxu1 }
 0x3da   : > { %v4751_v24 = vmax.f32 %v4713_v32, 0.0  ;;  %v4613_v43 = vadd.f32 %v6380_v15, %v4508_v38 }
 0x3db   : > { %v6382_v12 = vpop.f32.mrf.mxu1 }
 0x3dc   : > { %v4767_v45 = vrot.slane %v4751_v24, 7  ;;  %v4718_v9 = vadd.f32 %v7053_v56, %v4613_v43  ;;  %v6383_v44 = vadd.f32 %v6382_v12, %v6381_v31 }
 0x3dd   : > { %v6384_v34 = vpop.f32.mrf.mxu1 }
 0x3de   : > { %v4783_v48 = vsel %vm342_vm0, -inf, %v4767_v45  ;;  %v4791_v20 = vsel %vm342_vm0, %v4767_v45, -inf  ;;  %v4752_v29 = vmax.f32 %v4718_v9, 0.0  ;;  %v4618_v58 = vadd.f32 %v6383_v44, %v4513_v25 }
 0x3df   : > { %v4816_v54 = vrot.slane %v4783_v48, 1  ;;  %v4817_v51 = vrot.slane %v4791_v20, 1  ;;  %v4859_v35 = vrot.slane %v4783_v48, 2  ;;  %v4860_v8 = vrot.slane %v4791_v20, 2  ;;  %v6385_v10 = vpop.f32.mrf.mxu1 }
 0x3e0   : > { %v4768_v55 = vrot.slane %v4752_v29, 7  ;;  %v4723_v40 = vadd.f32 %v4722_v22, %v4618_v58  ;;  %v6386_v0 = vadd.f32 %v6385_v10, %v6384_v34 }
 0x3e1   : > { %v4818_v41 = vsel %vm501_vm2, %v4816_v54, %v4817_v51  ;;  %v4861_v2 = vsel %vm1161_vm3, %v4859_v35, %v4860_v8  ;;  %v6387_v57 = vpop.f32.mrf.mxu1 }
 0x3e2   : > { %v4850_v30 = vmax.f32 %v4783_v48, %v4818_v41  ;;  %v4784_v3 = vsel %vm342_vm0, -inf, %v4768_v55  ;;  %v4792_v1 = vsel %vm342_vm0, %v4768_v55, -inf  ;;  %v4753_v53 = vmax.f32 %v4723_v40, 0.0 }
 0x3e3   : > { %v4819_v56 = vrot.slane %v4784_v3, 1  ;;  %v4820_v23 = vrot.slane %v4792_v1, 1  ;;  %v4862_v61 = vrot.slane %v4784_v3, 2  ;;  %v4863_v50 = vrot.slane %v4792_v1, 2  ;;  %v6388_v33 = vpop.f32.mrf.mxu1 }
 0x3e4   : > { %v10278_v19 = vmax.f32 %v4850_v30, %v4861_v2  ;;  %v4769_v27 = vrot.slane %v4753_v53, 7  ;;  %v4623_v42 = vadd.f32 %v6386_v0, %v4518_v16  ;;  %v6389_v52 = vadd.f32 %v6388_v33, %v6387_v57  ;;  %v7062_v30 = vpop.f32.mrf.mxu0 }
 0x3e5   : > { %v4821_v6 = vsel %vm501_vm2, %v4819_v56, %v4820_v23  ;;  %v4864_v11 = vsel %vm1161_vm3, %v4862_v61, %v4863_v50  ;;  %v6390_v21 = vpop.f32.mrf.mxu1 }
 0x3e6   : > { %v4911_v17 = vrot.slane %v10278_v19, 1  ;;  %v4929_v49 = vrot.slane %v10278_v19, 2  ;;  %v4947_v38 = vrot.slane %v10278_v19, 3  ;;  %v4851_v32 = vmax.f32 %v4784_v3, %v4821_v6 }
 0x3e7   : > { %v4785_v15 = vsel %vm342_vm0, -inf, %v4769_v27  ;;  %v4793_v13 = vsel %vm342_vm0, %v4769_v27, -inf  ;;  %v4728_v63 = vadd.f32 %v7056_v60, %v4623_v42  ;;  %v4628_v31 = vadd.f32 %v6389_v52, %v4523_v14  ;;  %v6391_v18 = vpop.f32.mrf.mxu1 }
 0x3e8   : > { %v4965_v24 = vsel %vm342_vm0, %v10278_v19, %v4911_v17  ;;  %v4894_v43 = vmax.f32 %v4851_v32, %v4864_v11  ;;  %v4822_v47 = vrot.slane %v4785_v15, 1  ;;  %v4823_v25 = vrot.slane %v4793_v13, 1  ;;  %v4742_v32 = vpop.f32.mrf.mxu0 }
 0x3e9   : > { %v4865_v12 = vrot.slane %v4785_v15, 2  ;;  %v4866_v37 = vrot.slane %v4793_v13, 2  ;;  %v4754_v45 = vmax.f32 %v4728_v63, 0.0  ;;  %v4733_v9 = vadd.f32 %v4732_v4, %v4628_v31  ;;  %v6393_v44 = vpop.f32.mrf.mxu1 }
 0x3ea   : > { %v4912_v16 = vrot.slane %v4894_v43, 1  ;;  %v4930_v34 = vrot.slane %v4894_v43, 2  ;;  %v4948_v48 = vrot.slane %v4894_v43, 3  ;;  %v4824_v20 = vsel %vm501_vm2, %v4822_v47, %v4823_v25 }
 0x3eb   : > { %v4852_v60 = vmax.f32 %v4785_v15, %v4824_v20  ;;  %v4867_v14 = vsel %vm1161_vm3, %v4865_v12, %v4866_v37  ;;  %v4770_v29 = vrot.slane %v4754_v45, 7  ;;  %v4755_v58 = vmax.f32 %v4733_v9, 0.0  ;;  %v6394_v22 = vpop.f32.mrf.mxu1 }
 0x3ec   : > { %v4966_v54 = vsel %vm342_vm0, %v4894_v43, %v4912_v16  ;;  %v6392_v51 = vadd.f32 %v6391_v18, %v6390_v21  ;;  %v6395_v35 = vadd.f32 %v6394_v22, %v6393_v44  ;;  %v4974_v8 = vsel %vm3996_vm4, %v4965_v24, %v4929_v49 }
 0x3ed   : > { %v4895_v10 = vmax.f32 %v4852_v60, %v4867_v14  ;;  %v4786_v55 = vsel %vm342_vm0, -inf, %v4770_v29  ;;  %v4794_v40 = vsel %vm342_vm0, %v4770_v29, -inf  ;;  %v4771_v0 = vrot.slane %v4755_v58, 7  ;;  %v6396_v26 = vpop.f32.mrf.mxu1 }
 0x3ee   : > { %v4825_v46 = vrot.slane %v4786_v55, 1  ;;  %v4826_v41 = vrot.slane %v4794_v40, 1  ;;  %v4868_v2 = vrot.slane %v4786_v55, 2  ;;  %v4869_v57 = vrot.slane %v4794_v40, 2 }
 0x3ef   : > { %v4913_v3 = vrot.slane %v4895_v10, 1  ;;  %v4931_v1 = vrot.slane %v4895_v10, 2  ;;  %v4949_v53 = vrot.slane %v4895_v10, 3  ;;  %v4787_v56 = vsel %vm342_vm0, -inf, %v4771_v0  ;;  %v6397_v23 = vpop.f32.mrf.mxu1 }
 0x3f0   : > { %v4827_v61 = vsel %vm501_vm2, %v4825_v46, %v4826_v41  ;;  %v4870_v50 = vsel %vm1161_vm3, %v4868_v2, %v4869_v57  ;;  %v4795_v33 = vsel %vm342_vm0, %v4771_v0, -inf  ;;  %v4828_v19 = vrot.slane %v4787_v56, 1 }
 0x3f1   : > { %v4967_v27 = vsel %vm342_vm0, %v4895_v10, %v4913_v3  ;;  %v4853_v42 = vmax.f32 %v4786_v55, %v4827_v61  ;;  %v4829_v52 = vrot.slane %v4795_v33, 1  ;;  %v4871_v6 = vrot.slane %v4787_v56, 2 }
 0x3f2   : > { %v4872_v11 = vrot.slane %v4795_v33, 2  ;;  %v4633_v21 = vadd.f32 %v6392_v51, %v10270_v59  ;;  %v6398_v17 = vadd.f32 %v6397_v23, %v6396_v26  ;;  %v4638_v49 = vadd.f32 %v6395_v35, %v10281_v36 }
 0x3f3   : > { %v10308_v15 = vmax.f32 %v4853_v42, %v4870_v50  ;;  %v4830_v13 = vsel %vm501_vm2, %v4828_v19, %v4829_v52  ;;  %v4975_v63 = vsel %vm3996_vm4, %v4966_v54, %v4930_v34  ;;  %v4983_v31 = vsel %vm4014_vm5, %v4974_v8, %v4947_v38 }
 0x3f4   : > { %v4854_v18 = vmax.f32 %v4787_v56, %v4830_v13  ;;  %v4873_v4 = vsel %vm1161_vm3, %v4871_v6, %v4872_v11  ;;  %v4738_v24 = vadd.f32 %v10276_v62, %v4633_v21  ;;  %v4643_v43 = vadd.f32 %v6398_v17, %v10284_v39 }
 0x3f5   : > { %v4914_v59 = vrot.slane %v10308_v15, 1  ;;  %v4932_v36 = vrot.slane %v10308_v15, 2  ;;  %v4743_v47 = vadd.f32 %v4742_v32, %v4638_v49  ;;  %v10319_v25 = vsel %vm4014_vm5, %v4975_v63, %v4948_v48 }
 0x3f6   : > { %v10321_v12 = vmax.f32 %v4854_v18, %v4873_v4  ;;  %v4756_v37 = vmax.f32 %v4738_v24, 0.0  ;;  %v4748_v45 = vadd.f32 %v7062_v30, %v4643_v43  ;;  %v4991_v38 = vmax.f32 %v10264_v28, %v4983_v31 }
 0x3f7   : > { %v4757_v9 = vmax.f32 %v4743_v47, 0.0  ;;  %v4950_v44 = vrot.slane %v10308_v15, 3  ;;  %v4968_v62 = vsel %vm342_vm0, %v10308_v15, %v4914_v59  ;;  %v4976_v39 = vsel %vm3996_vm4, %v4967_v27, %v4931_v1 }
 0x3f8   : > { %v4915_v16 = vrot.slane %v10321_v12, 1  ;;  %v4933_v34 = vrot.slane %v10321_v12, 2  ;;  %v4951_v48 = vrot.slane %v10321_v12, 3  ;;  %v4772_v20 = vrot.slane %v4756_v37, 7 }
 0x3f9   : > { %v4758_v60 = vmax.f32 %v4748_v45, 0.0  ;;  %v4773_v14 = vrot.slane %v4757_v9, 7  ;;  %v4995_v29 = vmax.f32 %v4991_v38, %v10319_v25  ;;  %v4977_v28 = vsel %vm3996_vm4, %v4968_v62, %v4932_v36 }
 0x3fa   : > { %v4969_v58 = vsel %vm342_vm0, %v10321_v12, %v4915_v16  ;;  %v4788_v22 = vsel %vm342_vm0, -inf, %v4772_v20  ;;  %v4796_v54 = vsel %vm342_vm0, %v4772_v20, -inf  ;;  %v4985_v51 = vsel %vm4014_vm5, %v4976_v39, %v4949_v53 }
 0x3fb   : > { %v4831_v35 = vrot.slane %v4788_v22, 1  ;;  %v4832_v8 = vrot.slane %v4796_v54, 1  ;;  %v4874_v10 = vrot.slane %v4788_v22, 2  ;;  %v4875_v55 = vrot.slane %v4796_v54, 2 }
 0x3fc   : > { %v4774_v40 = vrot.slane %v4758_v60, 7  ;;  %v4789_v0 = vsel %vm342_vm0, -inf, %v4773_v14  ;;  %v4797_v26 = vsel %vm342_vm0, %v4773_v14, -inf  ;;  %v5003_v46 = vrot.slane %v4995_v29, 7 }
 0x3fd   : > { %v4833_v41 = vsel %vm501_vm2, %v4831_v35, %v4832_v8  ;;  %v4876_v2 = vsel %vm1161_vm3, %v4874_v10, %v4875_v55  ;;  %v4834_v57 = vrot.slane %v4789_v0, 1  ;;  %v4835_v30 = vrot.slane %v4797_v26, 1  ;;  %v5183_v8 = vld [vmem:[%s10700_s5 + $0x2e8] sm:$0xff] }
 0x3fe   : > { %v4855_v3 = vmax.f32 %v4788_v22, %v4833_v41  ;;  %v4790_v1 = vsel %vm342_vm0, -inf, %v4774_v40  ;;  %v4798_v53 = vsel %vm342_vm0, %v4774_v40, -inf  ;;  %v4877_v56 = vrot.slane %v4789_v0, 2  ;;  %v5168_v22 = vld [vmem:[%s10700_s5 + $0x270] sm:$0xff] }
 0x3ff   : > { %v4837_v23 = vrot.slane %v4790_v1, 1  ;;  %v4838_v61 = vrot.slane %v4798_v53, 1  ;;  %v4880_v50 = vrot.slane %v4790_v1, 2  ;;  %v4881_v33 = vrot.slane %v4798_v53, 2 }
 0x400   : > { %v4898_v19 = vmax.f32 %v4855_v3, %v4876_v2  ;;  %v4836_v27 = vsel %vm501_vm2, %v4834_v57, %v4835_v30  ;;  %v4878_v42 = vrot.slane %v4797_v26, 2  ;;  %v5011_v52 = vsel %vm342_vm0, 0.0, %v5003_v46  ;;  %v5182_v57 = vld [vmem:[%s10700_s5 + $0x2e0] sm:$0xff] }
 0x401   : > { %v4839_v6 = vsel %vm501_vm2, %v4837_v23, %v4838_v61  ;;  %v4882_v11 = vsel %vm1161_vm3, %v4880_v50, %v4881_v33  ;;  %v4856_v21 = vmax.f32 %v4789_v0, %v4836_v27  ;;  %v10349_v17 = vsel %vm4050_vm7, %v5011_v52, 0.0  ;;  %v5167_v0 = vld [vmem:[%s10700_s5 + $0x268] sm:$0xff]  ;;  %v5181_v61 = vld [vmem:[%s10700_s5 + $0x2d8] sm:$0xff] }
 0x402   : > { %v4916_v49 = vrot.slane %v4898_v19, 1  ;;  %v4934_v32 = vrot.slane %v4898_v19, 2  ;;  %v4952_v15 = vrot.slane %v4898_v19, 3  ;;  %v4857_v13 = vmax.f32 %v4790_v1, %v4839_v6  ;;  %v5165_v27 = vld [vmem:[%s10700_s5 + $0x258] sm:$0xff]  ;;  %v5216_v6 = vld [vmem:[%s10700_s5 + $0x3f0] sm:$0xff] }
 0x403   : > { %v4879_v63 = vsel %vm1161_vm3, %v4877_v56, %v4878_v42  ;;  %v5026_v31 = vrot.slane %v10349_v17, 1  ;;  %v5045_v18 = vrot.slane %v10349_v17, 4  ;;  %v4978_v4 = vsel %vm3996_vm4, %v4969_v58, %v4933_v34  ;;  %v5166_v56 = vld [vmem:[%s10700_s5 + $0x260] sm:$0xff] }
 0x404   : > { %v4970_v24 = vsel %vm342_vm0, %v4898_v19, %v4916_v49  ;;  %v4900_v43 = vmax.f32 %v4857_v13, %v4882_v11  ;;  %v4899_v59 = vmax.f32 %v4856_v21, %v4879_v63  ;;  %v4986_v36 = vsel %vm4014_vm5, %v4977_v28, %v4950_v44  ;;  %v5169_v44 = vld [vmem:[%s10700_s5 + $0x278] sm:$0xff]  ;;  %v5180_v11 = vld [vmem:[%s10700_s5 + $0x2d0] sm:$0xff]  ;;  %v5215_v13 = vld [vmem:[%s10700_s5 + $0x3e8] sm:$0xff] }
 0x405   : > { %v5046_v47 = vrot.slane %v5026_v31, 4  ;;  %v5075_v12 = vsel %vm4032_vm6, %v10258_v5, %v5045_v18  ;;  %v4987_v37 = vsel %vm4014_vm5, %v4978_v4, %v4951_v48  ;;  %v4992_v45 = vmax.f32 %v10319_v25, %v4985_v51  ;;  %v5184_v25 = vld [vmem:[%s10700_s5 + $0x2f0] sm:$0xff]  ;;  %v5201_v19 = vld [vmem:[%s10700_s5 + $0x378] sm:$0xff]  ;;  %v5179_v63 = vld [vmem:[%s10700_s5 + $0x2c8] sm:$0xff] }
 0x406   : > { %v4918_v38 = vrot.slane %v4900_v43, 1  ;;  %v4936_v9 = vrot.slane %v4900_v43, 2  ;;  %v4917_v62 = vrot.slane %v4899_v59, 1  ;;  %v4935_v39 = vrot.slane %v4899_v59, 2  ;;  %v5199_v4 = vld [vmem:[%s10700_s5 + $0x368] sm:$0xff] }
 0x407   : > { %v4953_v16 = vrot.slane %v4899_v59, 3  ;;  %v5076_v34 = vsel %vm4032_vm6, %v5021_v7, %v5046_v47  ;;  %v4993_v20 = vmax.f32 %v4986_v36, %v4987_v37  ;;  %v4996_v60 = vmax.f32 %v4992_v45, %v4986_v36  ;;  %v5198_v37 = vld [vmem:[%s10700_s5 + $0x360] sm:$0xff] }
 0x408   : > { %v4971_v14 = vsel %vm342_vm0, %v4899_v59, %v4917_v62  ;;  %5305 = vmatprep.mubr.f32.mxu1 %v5076_v34  ;;  %v5028_v48 = vrot.slane %v10349_v17, 2  ;;  %v4979_v29 = vsel %vm3996_vm4, %v4970_v24, %v4934_v32  ;;  %v4954_v28 = vrot.slane %v4900_v43, 3  ;;  %v5200_v32 = vld [vmem:[%s10700_s5 + $0x370] sm:$0xff]  ;;  %v5163_v24 = vld [vmem:[%s10700_s5 + $0x248] sm:$0xff]  ;;  %v5178_v59 = vld [vmem:[%s10700_s5 + $0x2c0] sm:$0xff] }
 0x409   : > { %v4980_v58 = vsel %vm3996_vm4, %v4971_v14, %v4935_v39  ;;  %5306 = vmatmul.mubr.f32.vlgmr.msra.gmra.mxu1 %v5075_v12  ;;  %v5004_v54 = vrot.slane %v4996_v60, 7  ;;  %v4988_v51 = vsel %vm4014_vm5, %v4979_v29, %v4952_v15  ;;  %v4972_v35 = vsel %vm342_vm0, %v4900_v43, %v4918_v38  ;;  %v5164_v15 = vld [vmem:[%s10700_s5 + $0x250] sm:$0xff]  ;;  %v5214_v43 = vld [vmem:[%s10700_s5 + $0x3e0] sm:$0xff]  ;;  %v5213_v38 = vld [vmem:[%s10700_s5 + $0x3d8] sm:$0xff] }
 0x40a   : > { %6492 = vmatpush3.msra.mxu1 %v5169_v44  ;;  %v4997_v10 = vmax.f32 %v4993_v20, %v4988_v51  ;;  %v4981_v55 = vsel %vm3996_vm4, %v4972_v35, %v4936_v9  ;;  %v4989_v40 = vsel %vm4014_vm5, %v4980_v58, %v4953_v16  ;;  %v5023_v30 = vrot.slane %v10258_v5, 2  ;;  %v5162_v45 = vld [vmem:[%s10700_s5 + $0x240] sm:$0xff]  ;;  %v5197_v39 = vld [vmem:[%s10700_s5 + $0x358] sm:$0xff]  ;;  %v5212_v44 = vld [vmem:[%s10700_s5 + $0x3d0] sm:$0xff] }
 0x40b   : > { %6493 = vmatprep.subr.mxu1 %v5184_v25  ;;  %v5012_v26 = vsel %vm342_vm0, 0.0, %v5004_v54  ;;  %v4990_v46 = vsel %vm4014_vm5, %v4981_v55, %v4954_v28  ;;  %v4994_v41 = vmax.f32 %v4988_v51, %v4989_v40  ;;  %v5047_v3 = vrot.slane %v5028_v48, 4  ;;  %v5177_v16 = vld [vmem:[%s10700_s5 + $0x2b8] sm:$0xff]  ;;  %v5196_v14 = vld [vmem:[%s10700_s5 + $0x350] sm:$0xff]  ;;  %v5195_v35 = vld [vmem:[%s10700_s5 + $0x348] sm:$0xff] }
 0x40c   : > { %6494 = vmatpush3.msra.mxu1 %v5168_v22  ;;  %v10392_v2 = vsel %vm4050_vm7, %v5012_v26, 0.0  ;;  %v5005_v1 = vrot.slane %v4997_v10, 7  ;;  %v5161_v60 = vld [vmem:[%s10700_s5 + $0x238] sm:$0xff]  ;;  %v5176_v29 = vld [vmem:[%s10700_s5 + $0x2b0] sm:$0xff]  ;;  %v5211_v22 = vld [vmem:[%s10700_s5 + $0x3c8] sm:$0xff] }
 0x40d   : > { %6495 = vmatprep.subr.mxu1 %v5183_v8  ;;  %v5048_v53 = vrot.slane %v10392_v2, 4  ;;  %v4998_v23 = vmax.f32 %v4994_v41, %v4990_v46  ;;  %v5077_v52 = vsel %vm4032_vm6, %v5023_v30, %v5047_v3  ;;  %v5031_v36 = vrot.slane %v10392_v2, 1  ;;  %v5160_v54 = vld [vmem:[%s10700_s5 + $0x230] sm:$0xff]  ;;  %v5175_v8 = vld [vmem:[%s10700_s5 + $0x2a8] sm:$0xff]  ;;  %v5210_v10 = vld [vmem:[%s10700_s5 + $0x3c0] sm:$0xff] }
 0x40e   : > { %6496 = vmatpush3.msra.mxu1 %v5167_v0  ;;  %v5013_v50 = vsel %vm342_vm0, 0.0, %v5005_v1  ;;  %v5033_v47 = vrot.slane %v10392_v2, 2  ;;  %v5159_v55 = vld [vmem:[%s10700_s5 + $0x228] sm:$0xff]  ;;  %v5174_v26 = vld [vmem:[%s10700_s5 + $0x2a0] sm:$0xff]  ;;  %v5209_v46 = vld [vmem:[%s10700_s5 + $0x3b8] sm:$0xff] }
 0x40f   : > { %v5078_v33 = vsel %vm4032_vm6, %v10349_v17, %v5048_v53  ;;  %6497 = vmatprep.subr.mxu1 %v5182_v57  ;;  %v10417_v42 = vsel %vm4050_vm7, %v5013_v50, 0.0  ;;  %v5006_v49 = vrot.slane %v4998_v23, 7  ;;  %v5158_v41 = vld [vmem:[%s10700_s5 + $0x220] sm:$0xff]  ;;  %v5193_v57 = vld [vmem:[%s10700_s5 + $0x338] sm:$0xff]  ;;  %v5208_v53 = vld [vmem:[%s10700_s5 + $0x3b0] sm:$0xff] }
 0x410   : > { %5380 = vmatprep.mubr.f32.mxu0 %v5078_v33  ;;  %6498 = vmatpush3.msra.mxu1 %v5166_v56  ;;  %v5036_v21 = vrot.slane %v10417_v42, 1  ;;  %v5051_v62 = vrot.slane %v10417_v42, 4  ;;  %v5050_v20 = vrot.slane %v5033_v47, 4  ;;  %v5037_v58 = vrot.slane %v10417_v42, 2  ;;  %v5173_v3 = vld [vmem:[%s10700_s5 + $0x298] sm:$0xff]  ;;  %v5192_v23 = vld [vmem:[%s10700_s5 + $0x330] sm:$0xff] }
 0x411   : > { %5381 = vmatmul.mubr.f32.vlgmr.msra.gmra.mxu0 %v5077_v52  ;;  %6499 = vmatprep.subr.mxu1 %v5181_v61  ;;  %v5014_v12 = vsel %vm342_vm0, 0.0, %v5006_v49  ;;  %v5157_v56 = vld [vmem:[%s10700_s5 + $0x218] sm:$0xff]  ;;  %v5172_v61 = vld [vmem:[%s10700_s5 + $0x290] sm:$0xff]  ;;  %v5207_v50 = vld [vmem:[%s10700_s5 + $0x3a8] sm:$0xff] }
 0x412   : > { %6530 = vmatpush3.msra.mxu0 %v5201_v19  ;;  %6500 = vmatpush3.msra.mxu1 %v5165_v27  ;;  %v5052_v18 = vrot.slane %v5036_v21, 4  ;;  %v10478_v34 = vsel %vm4050_vm7, %v5014_v12, 0.0  ;;  %v10491_v25 = vsel %vm4032_vm6, %v10392_v2, %v5051_v62  ;;  %v5080_v51 = vsel %vm4032_vm6, %v5028_v48, %v5050_v20  ;;  %v5194_v48 = vld [vmem:[%s10700_s5 + $0x340] sm:$0xff]  ;;  %v5156_v33 = vld [vmem:[%s10700_s5 + $0x210] sm:$0xff]  ;;  %v5191_v19 = vld [vmem:[%s10700_s5 + $0x328] sm:$0xff] }
 0x413   : > { %6531 = vmatprep.subr.mxu0 %v5216_v6  ;;  %6501 = vmatprep.subr.mxu1 %v5180_v11  ;;  %v5063_v28 = vrot.slane %v10478_v34, 4  ;;  %v5053_v0 = vrot.slane %v5037_v58, 4  ;;  %v5043_v27 = vrot.slane %v10478_v34, 2  ;;  %v5171_v52 = vld [vmem:[%s10700_s5 + $0x288] sm:$0xff]  ;;  %v5206_v6 = vld [vmem:[%s10700_s5 + $0x3a0] sm:$0xff]  ;;  %v5189_v2 = vld [vmem:[%s10700_s5 + $0x318] sm:$0xff] }
 0x414   : > { %6532 = vmatpush3.msra.mxu0 %v5200_v32  ;;  %6502 = vmatpush3.msra.mxu1 %v5164_v15  ;;  %v5082_v9 = vsel %vm4032_vm6, %v5031_v36, %v5052_v18  ;;  %v5155_v11 = vld [vmem:[%s10700_s5 + $0x208] sm:$0xff]  ;;  %v5190_v49 = vld [vmem:[%s10700_s5 + $0x320] sm:$0xff]  ;;  %v5049_v32 = vrot.slane %v5031_v36, 4  ;;  %v5188_v36 = vld [vmem:[%s10700_s5 + $0x310] sm:$0xff] }
 0x415   : > { %6533 = vmatprep.subr.mxu0 %v5215_v13  ;;  %6503 = vmatprep.subr.mxu1 %v5179_v63  ;;  %v5084_v40 = vsel %vm4032_vm6, %v10417_v42, %v5063_v28  ;;  %v10543_v1 = vsel %vm4032_vm6, %v5033_v47, %v5053_v0  ;;  %v5170_v15 = vld [vmem:[%s10700_s5 + $0x280] sm:$0xff]  ;;  %v5205_v13 = vld [vmem:[%s10700_s5 + $0x398] sm:$0xff]  ;;  %v5065_v18 = vrot.slane %v5043_v27, 4  ;;  %v5203_v12 = vld [vmem:[%s10700_s5 + $0x388] sm:$0xff] }
 0x416   : > { %6534 = vmatpush3.msra.mxu0 %v5199_v4  ;;  %6504 = vmatpush3.msra.mxu1 %v5163_v24  ;;  %v5154_v63 = vld [vmem:[%s10700_s5 + $0x200] sm:$0xff]  ;;  %v5041_v4 = vrot.slane %v10478_v34, 1  ;;  %v5204_v24 = vld [vmem:[%s10700_s5 + $0x390] sm:$0xff]  ;;  %v5229_v42 = vld [vmem:[%s10700_s5 + $0x458] sm:$0xff] }
 0x417   : > { %6535 = vmatprep.subr.mxu0 %v5214_v43  ;;  %6505 = vmatprep.subr.mxu1 %v5178_v59  ;;  %v5233_v43 = vld [vmem:[%s10700_s5 + $0x478] sm:$0xff]  ;;  %v5079_v59 = vsel %vm4032_vm6, %v5026_v31, %v5049_v32  ;;  %v5086_v47 = vsel %vm4032_vm6, %v5037_v58, %v5065_v18  ;;  %v5232_v17 = vld [vmem:[%s10700_s5 + $0x470] sm:$0xff]  ;;  %v5187_v31 = vld [vmem:[%s10700_s5 + $0x308] sm:$0xff] }
 0x418   : > { %6536 = vmatpush3.msra.mxu0 %v5198_v37  ;;  %6506 = vmatpush3.msra.mxu1 %v5162_v45  ;;  %v5064_v37 = vrot.slane %v5041_v4, 4  ;;  %v5202_v45 = vld [vmem:[%s10700_s5 + $0x380] sm:$0xff]  ;;  %v5223_v28 = vld [vmem:[%s10700_s5 + $0x428] sm:$0xff] }
 0x419   : > { %6537 = vmatprep.subr.mxu0 %v5213_v38  ;;  %5310 = vmatprep.mubr.f32.mxu1 %v5082_v9  ;;  %v5231_v38 = vld [vmem:[%s10700_s5 + $0x468] sm:$0xff]  ;;  %v5222_v58 = vld [vmem:[%s10700_s5 + $0x420] sm:$0xff] }
 0x41a   : > { %6538 = vmatpush3.msra.mxu0 %v5197_v39  ;;  %6507 = vmatprep.subr.mxu1 %v5177_v16  ;;  %v5085_v62 = vsel %vm4032_vm6, %v5036_v21, %v5064_v37  ;;  %v5067_v39 = vrot.slane %v5021_v7, 4  ;;  %v5230_v16 = vld [vmem:[%s10700_s5 + $0x460] sm:$0xff]  ;;  %v5066_v21 = vrot.slane %v10258_v5, 4 }
 0x41b   : > { %6539 = vmatprep.subr.mxu0 %v5212_v44  ;;  %5311 = vmatmul.mubr.f32.gmra.mxu1 %v10491_v25  ;;  %v5228_v44 = vld [vmem:[%s10700_s5 + $0x450] sm:$0xff] }
 0x41c   : > { %6508 = vmatpush3.msra.mxu1 %v5161_v60  ;;  %6540 = vmatpush3.msra.mxu0 %v5196_v14  ;;  %v5088_v7 = vsel %vm4032_vm6, %v5041_v4, %v5067_v39  ;;  %v5087_v20 = vsel %vm4032_vm6, %v10478_v34, %v5066_v21  ;;  %v5227_v60 = vld [vmem:[%s10700_s5 + $0x448] sm:$0xff]  ;;  %v5226_v14 = vld [vmem:[%s10700_s5 + $0x440] sm:$0xff] }
 0x41d   : > { %6509 = vmatprep.subr.mxu1 %v5176_v29  ;;  %5455 = vmatprep.mubr.f32.mxu1 %v5080_v51  ;;  %v5224_v29 = vld [vmem:[%s10700_s5 + $0x430] sm:$0xff]  ;;  %v5219_v51 = vld [vmem:[%s10700_s5 + $0x408] sm:$0xff] }
 0x41e   : > { %6541 = vmatprep.subr.mxu0 %v5211_v22  ;;  %6510 = vmatpush3.msra.mxu1 %v5160_v54  ;;  %v5221_v22 = vld [vmem:[%s10700_s5 + $0x418] sm:$0xff]  ;;  %v5220_v54 = vld [vmem:[%s10700_s5 + $0x410] sm:$0xff] }
 0x41f   : > { %6542 = vmatpush3.msra.mxu0 %v5195_v35  ;;  %6511 = vmatprep.subr.mxu1 %v5175_v8  ;;  %v5218_v35 = vld [vmem:[%s10700_s5 + $0x400] sm:$0xff]  ;;  %v5068_v8 = vrot.slane %v5023_v30, 4 }
 0x420   : > { %6543 = vmatprep.subr.mxu0 %v5210_v10  ;;  %6512 = vmatpush3.msra.mxu1 %v5159_v55 }
 0x421   : > { %6544 = vmatpush3.msra.mxu0 %v5194_v48  ;;  %5385 = vmatprep.mubr.f32.mxu0 %v5084_v40  ;;  %v5089_v10 = vsel %vm4032_vm6, %v5043_v27, %v5068_v8 }
 0x422   : > { %6513 = vmatprep.subr.mxu1 %v5174_v26  ;;  %6545 = vmatprep.subr.mxu0 %v5209_v46 }
 0x423   : > { %5386 = vmatmul.mubr.f32.gmra.mxu0 %v10543_v1  ;;  %6514 = vmatpush3.msra.mxu1 %v5158_v41 }
 0x424   : > { %6546 = vmatpush3.msra.mxu0 %v5193_v57  ;;  %6515 = vmatprep.subr.mxu1 %v5173_v3 }
 0x425   : > { %6547 = vmatprep.subr.mxu0 %v5208_v53  ;;  %5530 = vmatprep.mubr.f32.mxu0 %v5082_v9  ;;  %v5186_v9 = vld [vmem:[%s10700_s5 + $0x300] sm:$0xff] }
 0x426   : > { %6516 = vmatpush3.msra.mxu1 %v5157_v56  ;;  %6548 = vmatpush3.msra.mxu0 %v5192_v23 }
 0x427   : > { %6517 = vmatprep.subr.mxu1 %v5172_v61  ;;  %6549 = vmatprep.subr.mxu0 %v5207_v50 }
 0x428   : > { %6518 = vmatpush3.msra.mxu1 %v5156_v33  ;;  %6550 = vmatpush3.msra.mxu0 %v5191_v19  ;;  %v5986_v33 = vld [vmem:[%s10701_s6] ss:$0 sm:$0xff] }
 0x429   : > { %6519 = vmatprep.subr.mxu1 %v5171_v52  ;;  %6551 = vmatprep.subr.mxu0 %v5206_v6 }
 0x42a   : > { %6520 = vmatpush3.msra.mxu1 %v5155_v11  ;;  %6552 = vmatpush3.msra.mxu0 %v5190_v49 }
 0x42b   : > { %6521 = vmatprep.subr.mxu1 %v5170_v15  ;;  %6553 = vmatprep.subr.mxu0 %v5205_v13 }
 0x42c   : > { %6522 = vmatpush3.msra.mxu1 %v5154_v63  ;;  %6554 = vmatpush3.msra.mxu0 %v5189_v2 }
 0x42d   : > { %5456 = vmatmul.mubr.f32.vlgmr.msra.gmra.mxu1 %v5079_v59  ;;  %6555 = vmatprep.subr.mxu0 %v5204_v24 }
 0x42e   : > { %7063 = vmatprep.subr.mxu1 %v5233_v43  ;;  %5460 = vmatprep.mubr.f32.mxu1 %v5086_v47 }
 0x42f   : > { %6556 = vmatpush3.msra.mxu0 %v5188_v36  ;;  %7064 = vmatpush3.msra.mxu1 %v5233_v43 }
 0x430   : > { %6557 = vmatprep.subr.mxu0 %v5203_v12  ;;  %7065 = vmatprep.subr.mxu1 %v5232_v17 }
 0x431   : > { %6558 = vmatpush3.msra.mxu0 %v5187_v31  ;;  %7066 = vmatpush3.msra.mxu1 %v5232_v17 }
 0x432   : > { %5461 = vmatmul.mubr.f32.gmra.mxu1 %v5085_v62  ;;  %6559 = vmatprep.subr.mxu0 %v5202_v45 }
 0x433   : > { %7067 = vmatprep.subr.mxu1 %v5231_v38  ;;  %6560 = vmatpush3.msra.mxu0 %v5186_v9 }
 0x434   : > { %7068 = vmatpush3.msra.mxu1 %v5231_v38  ;;  %7095 = vmatprep.mubr.f32.mxu1 %v10543_v1 }
 0x435   : > { %5531 = vmatmul.mubr.f32.vlgmr.msra.gmra.mxu0 %v10491_v25  ;;  %7069 = vmatprep.subr.mxu1 %v5230_v16  ;;  %v5225_v25 = vld [vmem:[%s10700_s5 + $0x438] sm:$0xff] }
 0x436   : > { %5535 = vmatprep.mubr.f32.mxu0 %v5088_v7  ;;  %7070 = vmatpush3.msra.mxu1 %v5230_v16 }
 0x437   : > { %7071 = vmatprep.subr.mxu1 %v5229_v42 }
 0x438   : > { %7072 = vmatpush3.msra.mxu1 %v5229_v42 }
 0x439   : > { %5536 = vmatmul.mubr.f32.gmra.mxu0 %v5087_v20  ;;  %7073 = vmatprep.subr.mxu1 %v5228_v44 }
 0x43a   : > { %7074 = vmatpush3.msra.mxu1 %v5228_v44 }
 0x43b   : > { %7075 = vmatprep.subr.mxu1 %v5227_v60 }
 0x43c   : > { %7076 = vmatpush3.msra.mxu1 %v5227_v60 }
 0x43d   : > { %7077 = vmatprep.subr.mxu1 %v5226_v14 }
 0x43e   : > { %7078 = vmatpush3.msra.mxu1 %v5226_v14 }
 0x43f   : > { %7079 = vmatprep.subr.mxu1 %v5225_v25 }
 0x440   : > { %7080 = vmatpush3.msra.mxu1 %v5225_v25 }
 0x441   : > { %7081 = vmatprep.subr.mxu1 %v5224_v29 }
 0x442   : > { %7082 = vmatpush3.msra.mxu1 %v5224_v29 }
 0x443   : > { %7083 = vmatprep.subr.mxu1 %v5223_v28 }
 0x444   : > { %7084 = vmatpush3.msra.mxu1 %v5223_v28 }
 0x445   : > { %7085 = vmatprep.subr.mxu1 %v5222_v58 }
 0x446   : > { %7086 = vmatpush3.msra.mxu1 %v5222_v58 }
 0x447   : > { %7087 = vmatprep.subr.mxu1 %v5221_v22 }
 0x448   : > { %7088 = vmatpush3.msra.mxu1 %v5221_v22 }
 0x449   : > { %7089 = vmatprep.subr.mxu1 %v5220_v54 }
 0x44a   : > { %7090 = vmatpush3.msra.mxu1 %v5220_v54 }
 0x44b   : > { %7091 = vmatprep.subr.mxu1 %v5219_v51 }
 0x44c   : > { %7092 = vmatpush3.msra.mxu1 %v5219_v51 }
 0x44d   : > { %7093 = vmatprep.subr.mxu1 %v5218_v35 }
 0x44e   : > { %7094 = vmatpush3.msra.mxu1 %v5218_v35 }
 0x44f   : > { %7096 = vmatmul.mubr.f32.vlgmr.msra.gmra.mxu1 %v5089_v10 }
 0x4c9   : > { %v6447_v55 = vpop.f32.mrf.mxu1 }
 0x4cb   : > { %v6448_v40 = vpop.f32.mrf.mxu1 }
 0x4cc   : > { %v6449_v34 = vadd.f32 %v6448_v40, %v6447_v55 }
 0x4ce   : > { %v5308_v11 = vadd.f32 %v6449_v34, %v5986_v33 }
 0x4d1   : > { %v6485_v48 = vpop.f32.mrf.mxu0 }
 0x4d3   : > { %v6486_v0 = vpop.f32.mrf.mxu0 }
 0x4d4   : > { %v6487_v27 = vadd.f32 %v6486_v0, %v6485_v48 }
 0x4d6   : > { %v5383_v13 = vadd.f32 %v6487_v27, %v5308_v11 }
 0x4db   : > { %v6450_v26 = vpop.f32.mrf.mxu1 }
 0x4dd   : > { %v6451_v41 = vpop.f32.mrf.mxu1 }
 0x4de   : > { %v6452_v23 = vadd.f32 %v6451_v41, %v6450_v26 }
 0x4e0   : > { %v5313_v52 = vadd.f32 %v6452_v23, %v5986_v33 }
 0x4e3   : > { %v6488_v46 = vpop.f32.mrf.mxu0 }
 0x4e5   : > { %v6489_v57 = vpop.f32.mrf.mxu0 }
 0x4e6   : > { %v6490_v50 = vadd.f32 %v6489_v57, %v6488_v46 }
 0x4e8   : > { %v5388_v49 = vadd.f32 %v6490_v50, %v5313_v52 }
 0x4ed   : > { %v6523_v3 = vpop.f32.mrf.mxu1 }
 0x4ef   : > { %v6524_v30 = vpop.f32.mrf.mxu1 }
 0x4f0   : > { %v6525_v32 = vadd.f32 %v6524_v30, %v6523_v3 }
 0x4f2   : > { %v6526_v53 = vpop.f32.mrf.mxu1  ;;  %v5458_v18 = vadd.f32 %v6525_v32, %v5383_v13 }
 0x4f4   : > { %v6527_v61 = vpop.f32.mrf.mxu1 }
 0x4f5   : > { %v6561_v5 = vpop.f32.mrf.mxu0  ;;  %v6528_v6 = vadd.f32 %v6527_v61, %v6526_v53 }
 0x4f7   : > { %v6562_v1 = vpop.f32.mrf.mxu0  ;;  %v5463_v63 = vadd.f32 %v6528_v6, %v5388_v49 }
 0x4f8   : > { %v6563_v2 = vadd.f32 %v6562_v1, %v6561_v5 }
 0x4f9   : > { %v6564_v56 = vpop.f32.mrf.mxu0 }
 0x4fa   : > { %v5533_v59 = vadd.f32 %v6563_v2, %v5458_v18 }
 0x4fb   : > { %v6565_v19 = vpop.f32.mrf.mxu0 }
 0x4fc   : > { %v6566_v15 = vadd.f32 %v6565_v19, %v6564_v56 }
 0x4fe   : > { %v5538_v4 = vadd.f32 %v6566_v15, %v5463_v63 }
 0x50f   : > { %v7097_v24 = vpop.f32.mrf.mxu1 }
 0x510   : > { %v5613_v43 = vadd.f32 %v7097_v24, %v5538_v4 }
 0x511   : > { %v5607_v36 = vpop.f32.mrf.mxu1 }
 0x512   : > { %v5608_v47 = vadd.f32 %v5607_v36, %v5533_v59  ;;  %v5617_v12 = vmax.f32 %v5613_v43, 0.0 }
 0x514   : > { %v5616_v17 = vmax.f32 %v5608_v47, 0.0 }
 0x516   : > { %v5618_v37 = vadd.f32 %v5617_v12, %v5616_v17 }
 0x518   : > { %v5619_v31 = vrot.slane %v5618_v37, 4 }
 0x51a   : > { %v5620_v45 = vadd.f32 %v5619_v31, %v5618_v37 }
 0x51c   : > { %v5621_v38 = vrot.slane %v5620_v45, 2 }
 0x51e   : > { %v5622_v9 = vadd.f32 %v5621_v38, %v5620_v45 }
 0x520   : > { %v5623_v62 = vrot.slane %v5622_v9, 1 }
 0x522   : > { %v5624_v39 = vadd.f32 %v5623_v62, %v5622_v9 }
 0x524   : > { %v5625_v16 = vmul.f32 0.0625, %v5624_v39 }
 0x526   : > { %5626 = vst [vmem:[%s276_s8] sm:$0xff] %v5625_v16 }
 0x527 PF: > { %s17_s24 = sadd.s32 1, %s7161_s24  }
 0x528   : > { %p14_p4 = scmp.ge.s32.totalorder %s17_s24, 4  }
 0x52a   :  { %16 = sbr.rel (!%p14_p4) target bundleno = 1 (0x1), region = 78 }

</bundles_post_ra>
